<compile_context>
chip_gen: v6e
topology: v6e:2x2x1
jax: 0.10.0
libtpu: 0.0.40
codegen_flags: <defaults>
</compile_context>

<pallas_src>
import functools

import jax
import jax.numpy as jnp
from jax.experimental import pallas as pl
from jax.experimental.pallas import tpu as pltpu


def _round_up(x: int, m: int) -> int:
    return ((x + m - 1) // m) * m


def _make_kernel(num_hidden: int, input_size: int, activation, matmul_dtype):
    """Kernel body for a fixed (static) number of used hidden layers."""

    def dot(a, w_ref):
        return jnp.dot(
            a.astype(matmul_dtype), w_ref[...], preferred_element_type=jnp.float32
        )

    def kernel(*refs):
        # refs = (x, benc2pi, <first-layer split: Wtop, Wbot, b>,
        #         [W_h, b_h]*..., [W_last, b_last if num_hidden>0], out)
        x_ref = refs[0]
        benc_ref = refs[1]
        o_ref = refs[-1]
        prm = refs[2:-1]

        x = x_ref[...].astype(jnp.float32)          # (tile, input_size)
        b2pi = benc_ref[...]                        # (input_size, encoded), 2*pi folded in

        # Gaussian Fourier-feature projection on the VPU: v = 2*pi * x @ B^T
        # expressed as broadcast FMAs (input_size is tiny -> skip the MXU round trip).
        v = x[:, 0:1] * b2pi[0:1, :]
        for k in range(1, input_size):
            v = v + x[:, k:k + 1] * b2pi[k:k + 1, :]
        c = jnp.cos(v)
        s = jnp.sin(v)

        # First used linear, split into the rows that multiply cos and sin.
        # This replaces jnp.concatenate([cos, sin], -1) @ W with two direct matmuls.
        w_top, w_bot, b0 = prm[0], prm[1], prm[2]
        y = dot(c, w_top) + dot(s, w_bot) + b0[...]
        idx = 3

        if num_hidden > 0:
            y = activation(y)
            # Remaining hidden layers (PyTorch uses linears[1] .. linears[L-2]).
            for _ in range(1, num_hidden):
                w_ref, b_ref = prm[idx], prm[idx + 1]
                idx += 2
                y = activation(dot(y, w_ref) + b_ref[...])
            # Final linear layer (no activation).
            wL_ref, bL_ref = prm[idx], prm[idx + 1]
            y = dot(y, wL_ref) + bL_ref[...]
        # (if num_hidden == 0 the first used linear IS the final layer; no activation)

        o_ref[...] = y.astype(o_ref.dtype)

    return kernel


def multilayer_net_forward(
    x,
    b_enc,          # (encoded_size, input_size)  -- Gaussian encoding matrix B
    hidden_params,  # list of (W, b) with W: (neuron_count, neuron_count) torch layout
    last_params,    # (W, b) with W: (output_size, in_features) torch layout
    *,
    activation=jnp.tanh,
    tile_n=512,
    matmul_dtype=jnp.float32,   # set jnp.bfloat16 on v6e/v7x; transcendentals stay f32
):
    f32 = jnp.float32
    n, input_size = x.shape
    encoded_size = b_enc.shape[0]
    neuron_count = 2 * encoded_size
    output_size = last_params[0].shape[0]
    num_hidden = len(hidden_params)

    P = _round_up(neuron_count, 128)     # lane-dense hidden width
    P_out = _round_up(output_size, 128)  # lane-dense output width

    # Batch tiling: pad to a multiple of the tile; tile is the main tuning knob.
    tile = min(int(tile_n), _round_up(n, 8))
    n_pad = _round_up(n, tile)
    x = x.astype(f32)
    if n_pad != n:
        x = jnp.pad(x, ((0, n_pad - n), (0, 0)))

    def pad2(a, rows, cols):
        return jnp.pad(a, ((0, rows - a.shape[0]), (0, cols - a.shape[1])))

    # Fold 2*pi into the encoding matrix; keep it f32 (VPU path).
    benc2pi = (2.0 * jnp.pi) * b_enc.T.astype(f32)   # (input_size, encoded_size)

    flat_params = [benc2pi]
    wdt = matmul_dtype

    if num_hidden > 0:
        # First hidden layer, split into cos-rows / sin-rows and padded to P lanes.
        w1, b1 = hidden_params[0]
        w1t = w1.T.astype(f32)                               # (neuron_count, neuron_count)
        w1_top = pad2(w1t[:encoded_size], encoded_size, P).astype(wdt)
        w1_bot = pad2(w1t[encoded_size:], encoded_size, P).astype(wdt)
        b1p = pad2(b1.reshape(1, -1).astype(f32), 1, P)
        flat_params += [w1_top, w1_bot, b1p]
        # Remaining hidden layers, zero-padded to (P, P). Padded lanes stay zero
        # because biases pad with 0 and tanh(0) == 0.
        for w, b in hidden_params[1:]:
            wt = pad2(w.T.astype(f32), P, P).astype(wdt)
            bb = pad2(b.reshape(1, -1).astype(f32), 1, P)
            flat_params += [wt, bb]
        # Final layer, zero-padded to (P, P_out); padding sliced off in the wrapper.
        wL, bL = last_params
        wLt = pad2(wL.T.astype(f32), P, P_out).astype(wdt)
        bLp = pad2(bL.reshape(1, -1).astype(f32), 1, P_out)
        flat_params += [wLt, bLp]
    else:
        # layer_count == 2: the final layer acts directly on the encoding -> split it.
        wL, bL = last_params
        wLt = wL.T.astype(f32)                               # (neuron_count, output_size)
        wL_top = pad2(wLt[:encoded_size], encoded_size, P_out).astype(wdt)
        wL_bot = pad2(wLt[encoded_size:], encoded_size, P_out).astype(wdt)
        bLp = pad2(bL.reshape(1, -1).astype(f32), 1, P_out)
        flat_params += [wL_top, wL_bot, bLp]

    kernel = _make_kernel(num_hidden, input_size, activation, matmul_dtype)

    def const_spec(shape):
        return pl.BlockSpec(shape, lambda i: (0, 0))

    in_specs = [pl.BlockSpec((tile, input_size), lambda i: (i, 0))]
    in_specs += [const_spec(p.shape) for p in flat_params]
    out_spec = pl.BlockSpec((tile, P_out), lambda i: (i, 0))

    out = pl.pallas_call(
        kernel,
        out_shape=jax.ShapeDtypeStruct((n_pad, P_out), jnp.float32),
        grid=(n_pad // tile,),
        in_specs=in_specs,
        out_specs=out_spec,
        compiler_params=pltpu.CompilerParams(
            dimension_semantics=("parallel",)
        ),
    )(x, *flat_params)

    return out[:n, :output_size]


def pure_jax_reference(x, b_enc, hidden_params, last_params, activation=jnp.tanh):
    v = 2.0 * jnp.pi * (x @ b_enc.T)
    y = jnp.concatenate([jnp.cos(v), jnp.sin(v)], axis=-1)
    for w, b in hidden_params:
        y = activation(y @ w.T + b)
    wL, bL = last_params
    return y @ wL.T + bL


def _build_params(key, layer_count, neuron_count, weight_deviation,
                  fourier_deviation, input_size, output_size, batch):
    kx, kb, *kw = jax.random.split(key, 2 + layer_count)
    x = jax.random.normal(kx, (batch, input_size), dtype=jnp.float32)
    encoded_size = neuron_count // 2
    b_enc = fourier_deviation * jax.random.normal(
        kb, (encoded_size, input_size), dtype=jnp.float32
    )
    # Build all layer_count linears exactly like the module (bias = 0,
    # weight ~ N(0, weight_deviation)). linears[0] is intentionally unused
    # in forward(), matching `for i in range(1, layer_count - 1)`.
    all_linears = []
    for i in range(layer_count):
        lin_in = input_size if i == 0 else neuron_count
        lin_out = output_size if i == layer_count - 1 else neuron_count
        w = weight_deviation * jax.random.normal(kw[i], (lin_out, lin_in), jnp.float32)
        b = jnp.zeros((lin_out,), jnp.float32)
        all_linears.append((w, b))
    hidden_params = all_linears[1:layer_count - 1]
    last_params = all_linears[-1]
    return x, b_enc, hidden_params, last_params


if __name__ == "__main__":
    key = jax.random.PRNGKey(0)
    k1, k2 = jax.random.split(key)

    # --- main config (NNParameters analogue): layer_count=4, neuron_count=64 ---
    x, b_enc, hidden_params, last_params = _build_params(
        k1, layer_count=4, neuron_count=64, weight_deviation=0.1,
        fourier_deviation=1.0, input_size=2, output_size=3, batch=256,
    )

    # f32 matmuls, tile_n=128 -> 2 parallel grid steps (shards across v7x's 2 TCs).
    out = multilayer_net_forward(
        x, b_enc, hidden_params, last_params,
        activation=jnp.tanh, tile_n=128, matmul_dtype=jnp.float32,
    )
    out = jax.block_until_ready(out)
    ref = pure_jax_reference(x, b_enc, hidden_params, last_params, activation=jnp.tanh)
    assert out.shape == (256, 3)
    assert jnp.allclose(out, ref, atol=1e-4, rtol=1e-4), "f32 mismatch vs reference"

    # bf16 dot operands (v6e/v7x MXU-native); transcendentals stay f32 -> looser tol.
    out_bf16 = multilayer_net_forward(
        x, b_enc, hidden_params, last_params,
        activation=jnp.tanh, tile_n=512, matmul_dtype=jnp.bfloat16,
    )
    out_bf16 = jax.block_until_ready(out_bf16)
    assert jnp.allclose(out_bf16, ref, atol=2e-2, rtol=2e-2), "bf16 mismatch vs reference"

    # --- minimal config: layer_count=2 (no hidden layers), non-tile-multiple batch ---
    x2, b_enc2, hid2, last2 = _build_params(
        k2, layer_count=2, neuron_count=64, weight_deviation=0.1,
        fourier_deviation=1.0, input_size=2, output_size=3, batch=72,
    )
    out2 = multilayer_net_forward(x2, b_enc2, hid2, last2, activation=jnp.tanh)
    out2 = jax.block_until_ready(out2)
    ref2 = pure_jax_reference(x2, b_enc2, hid2, last2, activation=jnp.tanh)
    assert out2.shape == (72, 3)
    assert jnp.allclose(out2, ref2, atol=1e-4, rtol=1e-4), "layer_count=2 mismatch"

    print("KERNEL_OK")
</pallas_src>

<mosaic_0001>
module attributes {stable_mosaic.version = 11 : i64} {
  func.func @kernel(%arg0: i32, %arg1: memref<128x2xf32, #tpu.memory_space<vmem>>, %arg2: memref<2x32xf32, #tpu.memory_space<vmem>>, %arg3: memref<32x128xf32, #tpu.memory_space<vmem>>, %arg4: memref<32x128xf32, #tpu.memory_space<vmem>>, %arg5: memref<1x128xf32, #tpu.memory_space<vmem>>, %arg6: memref<128x128xf32, #tpu.memory_space<vmem>>, %arg7: memref<1x128xf32, #tpu.memory_space<vmem>>, %arg8: memref<128x128xf32, #tpu.memory_space<vmem>>, %arg9: memref<1x128xf32, #tpu.memory_space<vmem>>, %arg10: memref<128x128xf32, #tpu.memory_space<vmem>>) attributes {dimension_semantics = [#tpu.dimension_semantics<parallel>], iteration_bounds = array<i64: 2>, scalar_prefetch = 0 : i64, scratch_operands = 0 : i64, tpu.core_type = #tpu.core_type<tc>, window_params = [{transform_indices = @transform_0, window_bounds = array<i64: 128, 2>}, {pipeline_mode = #tpu.pipeline_mode<synchronous>, transform_indices = @transform_1, window_bounds = array<i64: 2, 32>}, {pipeline_mode = #tpu.pipeline_mode<synchronous>, transform_indices = @transform_2, window_bounds = array<i64: 32, 128>}, {pipeline_mode = #tpu.pipeline_mode<synchronous>, transform_indices = @transform_3, window_bounds = array<i64: 32, 128>}, {pipeline_mode = #tpu.pipeline_mode<synchronous>, transform_indices = @transform_4, window_bounds = array<i64: 1, 128>}, {pipeline_mode = #tpu.pipeline_mode<synchronous>, transform_indices = @transform_5, window_bounds = array<i64: 128, 128>}, {pipeline_mode = #tpu.pipeline_mode<synchronous>, transform_indices = @transform_6, window_bounds = array<i64: 1, 128>}, {pipeline_mode = #tpu.pipeline_mode<synchronous>, transform_indices = @transform_7, window_bounds = array<i64: 128, 128>}, {pipeline_mode = #tpu.pipeline_mode<synchronous>, transform_indices = @transform_8, window_bounds = array<i64: 1, 128>}, {transform_indices = @transform_9, window_bounds = array<i64: 128, 128>}]} {
    %c0 = arith.constant 0 : index
    %c0_0 = arith.constant 0 : index
    %0 = vector.load %arg1[%c0, %c0_0] : memref<128x2xf32, #tpu.memory_space<vmem>>, vector<128x2xf32>
    %c0_1 = arith.constant 0 : index
    %c0_2 = arith.constant 0 : index
    %1 = vector.load %arg2[%c0_1, %c0_2] : memref<2x32xf32, #tpu.memory_space<vmem>>, vector<2x32xf32>
    %2 = vector.extract_strided_slice %0 {offsets = [0, 0], sizes = [128, 1], strides = [1, 1]} : vector<128x2xf32> to vector<128x1xf32>
    %3 = vector.extract_strided_slice %1 {offsets = [0, 0], sizes = [1, 32], strides = [1, 1]} : vector<2x32xf32> to vector<1x32xf32>
    %4 = vector.broadcast %2 : vector<128x1xf32> to vector<128x32xf32>
    %5 = vector.broadcast %3 : vector<1x32xf32> to vector<128x32xf32>
    %6 = arith.mulf %4, %5 : vector<128x32xf32>
    %7 = vector.extract_strided_slice %0 {offsets = [0, 1], sizes = [128, 1], strides = [1, 1]} : vector<128x2xf32> to vector<128x1xf32>
    %8 = vector.extract_strided_slice %1 {offsets = [1, 0], sizes = [1, 32], strides = [1, 1]} : vector<2x32xf32> to vector<1x32xf32>
    %9 = vector.broadcast %7 : vector<128x1xf32> to vector<128x32xf32>
    %10 = vector.broadcast %8 : vector<1x32xf32> to vector<128x32xf32>
    %11 = arith.mulf %9, %10 : vector<128x32xf32>
    %12 = arith.addf %6, %11 : vector<128x32xf32>
    %13 = math.cos %12 : vector<128x32xf32>
    %14 = math.sin %12 : vector<128x32xf32>
    %c0_3 = arith.constant 0 : index
    %c0_4 = arith.constant 0 : index
    %15 = vector.load %arg3[%c0_3, %c0_4] : memref<32x128xf32, #tpu.memory_space<vmem>>, vector<32x128xf32>
    %cst = arith.constant dense<0.000000e+00> : vector<128x128xf32>
    %16 = tpu.matmul %13, %15, %cst {dimension_numbers = #tpu.dot_dimension_numbers<[1], [0], [0], [1], [0, 0, 1, 1], [], []>} : vector<128x32xf32>, vector<32x128xf32>, vector<128x128xf32> -> vector<128x128xf32>
    %c0_5 = arith.constant 0 : index
    %c0_6 = arith.constant 0 : index
    %17 = vector.load %arg4[%c0_5, %c0_6] : memref<32x128xf32, #tpu.memory_space<vmem>>, vector<32x128xf32>
    %cst_7 = arith.constant dense<0.000000e+00> : vector<128x128xf32>
    %18 = tpu.matmul %14, %17, %cst_7 {dimension_numbers = #tpu.dot_dimension_numbers<[1], [0], [0], [1], [0, 0, 1, 1], [], []>} : vector<128x32xf32>, vector<32x128xf32>, vector<128x128xf32> -> vector<128x128xf32>
    %19 = arith.addf %16, %18 : vector<128x128xf32>
    %c0_8 = arith.constant 0 : index
    %c0_9 = arith.constant 0 : index
    %20 = vector.load %arg5[%c0_8, %c0_9] : memref<1x128xf32, #tpu.memory_space<vmem>>, vector<1x128xf32>
    %21 = vector.broadcast %20 : vector<1x128xf32> to vector<128x128xf32>
    %22 = arith.addf %19, %21 : vector<128x128xf32>
    %23 = math.tanh %22 : vector<128x128xf32>
    %c0_10 = arith.constant 0 : index
    %c0_11 = arith.constant 0 : index
    %24 = vector.load %arg6[%c0_10, %c0_11] : memref<128x128xf32, #tpu.memory_space<vmem>>, vector<128x128xf32>
    %cst_12 = arith.constant dense<0.000000e+00> : vector<128x128xf32>
    %25 = tpu.matmul %23, %24, %cst_12 {dimension_numbers = #tpu.dot_dimension_numbers<[1], [0], [0], [1], [0, 0, 1, 1], [], []>} : vector<128x128xf32>, vector<128x128xf32>, vector<128x128xf32> -> vector<128x128xf32>
    %c0_13 = arith.constant 0 : index
    %c0_14 = arith.constant 0 : index
    %26 = vector.load %arg7[%c0_13, %c0_14] : memref<1x128xf32, #tpu.memory_space<vmem>>, vector<1x128xf32>
    %27 = vector.broadcast %26 : vector<1x128xf32> to vector<128x128xf32>
    %28 = arith.addf %25, %27 : vector<128x128xf32>
    %29 = math.tanh %28 : vector<128x128xf32>
    %c0_15 = arith.constant 0 : index
    %c0_16 = arith.constant 0 : index
    %30 = vector.load %arg8[%c0_15, %c0_16] : memref<128x128xf32, #tpu.memory_space<vmem>>, vector<128x128xf32>
    %cst_17 = arith.constant dense<0.000000e+00> : vector<128x128xf32>
    %31 = tpu.matmul %29, %30, %cst_17 {dimension_numbers = #tpu.dot_dimension_numbers<[1], [0], [0], [1], [0, 0, 1, 1], [], []>} : vector<128x128xf32>, vector<128x128xf32>, vector<128x128xf32> -> vector<128x128xf32>
    %c0_18 = arith.constant 0 : index
    %c0_19 = arith.constant 0 : index
    %32 = vector.load %arg9[%c0_18, %c0_19] : memref<1x128xf32, #tpu.memory_space<vmem>>, vector<1x128xf32>
    %33 = vector.broadcast %32 : vector<1x128xf32> to vector<128x128xf32>
    %34 = arith.addf %31, %33 : vector<128x128xf32>
    %c0_20 = arith.constant 0 : index
    %c0_21 = arith.constant 0 : index
    %35 = vector.load %arg10[%c0_20, %c0_21] : memref<128x128xf32, #tpu.memory_space<vmem>>, vector<128x128xf32>
    tpu.vector_store %arg10[%c0_20, %c0_21], %34 {strides = array<i32>} : memref<128x128xf32, #tpu.memory_space<vmem>>, vector<128x128xf32>,
    return
  }
  func.func @transform_0(%arg0: i32) -> (i32, i32) {
    %c0_i32 = arith.constant 0 : i32
    %c0_i32_0 = arith.constant 0 : i32
    return %arg0, %c0_i32 : i32, i32
  }
  func.func @transform_1(%arg0: i32) -> (i32, i32) {
    %c0_i32 = arith.constant 0 : i32
    %c0_i32_0 = arith.constant 0 : i32
    %c0_i32_1 = arith.constant 0 : i32
    return %c0_i32, %c0_i32_0 : i32, i32
  }
  func.func @transform_2(%arg0: i32) -> (i32, i32) {
    %c0_i32 = arith.constant 0 : i32
    %c0_i32_0 = arith.constant 0 : i32
    %c0_i32_1 = arith.constant 0 : i32
    return %c0_i32, %c0_i32_0 : i32, i32
  }
  func.func @transform_3(%arg0: i32) -> (i32, i32) {
    %c0_i32 = arith.constant 0 : i32
    %c0_i32_0 = arith.constant 0 : i32
    %c0_i32_1 = arith.constant 0 : i32
    return %c0_i32, %c0_i32_0 : i32, i32
  }
  func.func @transform_4(%arg0: i32) -> (i32, i32) {
    %c0_i32 = arith.constant 0 : i32
    %c0_i32_0 = arith.constant 0 : i32
    %c0_i32_1 = arith.constant 0 : i32
    return %c0_i32, %c0_i32_0 : i32, i32
  }
  func.func @transform_5(%arg0: i32) -> (i32, i32) {
    %c0_i32 = arith.constant 0 : i32
    %c0_i32_0 = arith.constant 0 : i32
    %c0_i32_1 = arith.constant 0 : i32
    return %c0_i32, %c0_i32_0 : i32, i32
  }
  func.func @transform_6(%arg0: i32) -> (i32, i32) {
    %c0_i32 = arith.constant 0 : i32
    %c0_i32_0 = arith.constant 0 : i32
    %c0_i32_1 = arith.constant 0 : i32
    return %c0_i32, %c0_i32_0 : i32, i32
  }
  func.func @transform_7(%arg0: i32) -> (i32, i32) {
    %c0_i32 = arith.constant 0 : i32
    %c0_i32_0 = arith.constant 0 : i32
    %c0_i32_1 = arith.constant 0 : i32
    return %c0_i32, %c0_i32_0 : i32, i32
  }
  func.func @transform_8(%arg0: i32) -> (i32, i32) {
    %c0_i32 = arith.constant 0 : i32
    %c0_i32_0 = arith.constant 0 : i32
    %c0_i32_1 = arith.constant 0 : i32
    return %c0_i32, %c0_i32_0 : i32, i32
  }
  func.func @transform_9(%arg0: i32) -> (i32, i32) {
    %c0_i32 = arith.constant 0 : i32
    %c0_i32_0 = arith.constant 0 : i32
    return %arg0, %c0_i32 : i32, i32
  }
}

</mosaic_0001>

<bundles_post_ra>
// kernel: tpu_custom_call.1
= control target key start
LH: loop header
LB: loop body
LE: loop exit
PB: predicated region body
PF: predicated region fallthrough
CT: control target
= control target key end

     0   :  { %14 = vsyncpa [#allocation3], 0  ;;  %s7702_s0 = inlined_call_operand.vmem [shape: f32[256,2], index: 0, kind: input, shape index: {}]   ;;  %s7703_s1 = inlined_call_operand.vmem [shape: f32[2,32], index: 1, kind: input, shape index: {}]   ;;  %s7704_s2 = inlined_call_operand.hbm [shape: f32[32,128], index: 2, kind: input, shape index: {}]   ;;  %s7705_s3 = inlined_call_operand.hbm [shape: f32[32,128], index: 3, kind: input, shape index: {}]   ;;  %s7706_s4 = inlined_call_operand.vmem [shape: f32[1,128], index: 4, kind: input, shape index: {}]   ;;  %s7707_s5 = inlined_call_operand.vmem [shape: f32[128,128], index: 5, kind: input, shape index: {}]   ;;  %s7708_s6 = inlined_call_operand.vmem [shape: f32[1,128], index: 6, kind: input, shape index: {}]   ;;  %s7709_s7 = inlined_call_operand.vmem [shape: f32[128,128], index: 7, kind: input, shape index: {}]   ;;  %s7710_s8 = inlined_call_operand.vmem [shape: f32[1,128], index: 8, kind: input, shape index: {}]   ;;  %s7711_s9 = inlined_call_operand.hbm [shape: f32[256,128], index: 9, kind: output, shape index: {}]  }
   0x1   :  { %15 = vsyncpa [#allocation6], 0 }
   0x2   :  { %16 = vsyncpa [#allocation4], 0 }
   0x3   :  { %18 = vsyncpa [#allocation4 + $0x1], 0  ;;  %s5709_s30 = smov 0   ;;  %s5711_s10 = smov 0  }
   0x4   :  { %s5713_s11 = smov 0   ;;  %s5715_s12 = smov 0  }
   0x5 LB: > { %s5730_s13 = sadd.s32 4294967295, %s5642_s12   ;;  %s4793_s14 = sadd.s32 4294967294, %s5642_s12   ;;  %s5642_s12 = sphi %s5715_s12, %s7967_s12   ;;  %s5638_s11 = sphi %s5713_s11, %s7966_s11   ;;  %s5634_s10 = sphi %s5711_s10, %s7965_s10   ;;  %s5630_s30 = sphi %s5709_s30, %s7964_s30  }
   0x6   : > { %s5734_s15 = sadd.s32 1, %s5642_s12   ;;  %s225_s16 = sadd.s32 1, %s5638_s11 }
   0x7   : > { %s222_s17 = ssub.s32 %s5642_s12, %s5734_s15  ;;  %p235_p0 = scmp.ne.s32.totalorder %s5638_s11, %s5634_s10 }
   0x8   : > { %p223_p1 = scmp.eq.s32.totalorder %s222_s17, 0  ;;  %p236_p2 = scmp.eq.s32.totalorder %s5730_s13, 1 }
   0x9   : > { %p241_p3 = scmp.ne.s32.totalorder %s5634_s10, %s5630_s30  ;;  %p242_p4 = scmp.eq.s32.totalorder %s4793_s14, 1 }
   0xa   : > { %s5745_s18 = scalar_select %p223_p1, %s5638_s11, %s225_s16  }
   0xb   : > { %p5747_p5 = por %p236_p2, %p235_p0  ;;  %p5751_p6 = por %p242_p4, %p241_p3 }
   0xc   : > { %p4794_p7 = scmp.ge.s32.totalorder %s5642_s12, 1  ;;  %p249_p8 = scmp.lt.s32.totalorder %s5642_s12, 3 }
   0xd   : > { %s7789_s20 = scalar_select %p5751_p6, 1, 0 }
   0xe   : > { %p7712_p9 = scmp.eq.s32.totalorder %s5730_s13, 0  ;;  %p5758_p10 = pnand %p4794_p7, %p249_p8 }
   0xf   : > { %s5644_s22 = smov [#allocation2]   ;;  %s5645_s25 = smov [#allocation5]  }
  0x10   : > { %s264_s23 = sshll.u32 %s5644_s22, 4  ;;  %p5327_p11 = pneg %p5758_p10  ;;  %s265_s23 = int_to_ptr.vmem [resolvable:$true] %s264_s23 }
  0x11   : > { %s277_s26 = sshll.u32 %s5645_s25, 4  ;;  %s5533_s27 = scalar_lea.vmem %s265_s23, 512  ;;  %s278_s26 = int_to_ptr.vmem [resolvable:$true] %s277_s26 }
  0x12   : > { %p5766_p12 = pnand %p7712_p9, %p5327_p11  ;;  %p5534_p0 = scmp.ne.s32.totalorder %s265_s23, %s5533_s27 }
  0x13   : > { %p5541_p3 = scmp.lt.s32.totalorder %s265_s23, %s265_s23  ;;  %p5542_p4 = scmp.lt.s32.totalorder %s5533_s27, %s5533_s27 }
  0x14   : > { %p5524_p13 = pneg %p5766_p12 }
  0x15   : > { %p5543_p7 = por %p5542_p4, %p5541_p3 }
  0x16   : > { %p5536_p1 = pnand %p5534_p0, %p5524_p13 }
  0x18   : > { %p5537_p2 = pneg %p5536_p1 }
  0x1a   : > { %p5544_p8 = pnand %p5543_p7, %p5537_p2 }
  0x1c   : > { %5547 = shalt.err (!%p5544_p8)
}
  0x1d   : > { %s5646_s28 = smov 128   ;;  %s5647_s29 = smov 8  }
  0x1e   : > { %5330 = dma.hbm_to_vmem [thread:$0]  (!%p5766_p12), %s7704_s2, 512, %s265_s23, [#allocation3], %s5646_s28, %s5646_s28, %s5647_s29  }
  0x1f   : > { %s5559_s17 = scalar_lea.vmem %s278_s26, 512  ;;  %p5567_p9 = scmp.lt.s32.totalorder %s278_s26, %s278_s26 }
  0x20   : > { %p5560_p11 = scmp.ne.s32.totalorder %s278_s26, %s5559_s17  ;;  %p5568_p6 = scmp.lt.s32.totalorder %s5559_s17, %s5559_s17 }
  0x22   : > { %p5562_p0 = pnand %p5560_p11, %p5524_p13  ;;  %p5569_p3 = por %p5568_p6, %p5567_p9 }
  0x24   : > { %p5563_p1 = pneg %p5562_p0 }
  0x26   : > { %p5570_p2 = pnand %p5569_p3, %p5563_p1 }
  0x28   : > { %5573 = shalt.err (!%p5570_p2)
}
  0x29   : > { %5333 = dma.hbm_to_vmem [thread:$0]  (!%p5766_p12), %s7705_s3, 512, %s278_s26, [#allocation6], %s5646_s28, %s5646_s28, %s5647_s29  }
  0x2a   : > { %317 = sbr.rel (%p5758_p10) target bundleno = 1283 (0x503), region = 56 }
  0x2f   : > { %p7792_p4 = scmp.eq.s32.totalorder %s5730_s13, 0 }
  0x31   : > { %5617 = dma.done.wait (%p7792_p4), [#allocation3], 512   ;;  %p7793_p13 = pmov %p7792_p4 }
  0x32   : > { %p7794_p7 = pmov %p7792_p4 }
  0x33   : > { %5619 = vsyncadd (%p7793_p13), [#allocation3], 4294966784 }
  0x34   : > { %5621 = dma.done.wait (%p7794_p7), [#allocation6], 512   ;;  %p7795_p6 = pmov %p7792_p4 }
  0x35   : > { %s4802_s23 = sshll.u32 %s5730_s13, 4  ;;  %v5648_v0 = vmov 0   ;;  %v5649_v3 = vmov 1   ;;  %v461_v18 = vlaneseq  ;;  %v380_v22 = vld [vmem:[%s7703_s1] sm:$0x3]  ;;  %s354_s26 = sand.u32 1, %s5634_s10  }
  0x36   : > { %5623 = vsyncadd (%p7795_p6), [#allocation6], 4294966784  ;;  %5391 = vset.pattern.permute.xlu1 %v5648_v0  ;;  %5389 = vset.pattern.permute.xlu0 %v5648_v0  ;;  %p358_p9 = scmp.lt.s32.totalorder %s4802_s23, 31  ;;  %v7726_v58 = vmov 683565275   ;;  %s4972_s16 = sshll.u32 %s5730_s13, 11 }
  0x37   : > { %v462_v19 = vshrl.u32 %v461_v18, 7  ;;  %v7721_v62 = vmov 2475754826   ;;  %s5656_s24 = smov [#allocation7]  }
  0x38   : > { %s7969_s23 = smov (!%p358_p9, %s4802_s23), 31 }
  0x39   : > { %s4803_s21 = sshll.u32 %s7969_s23, 3  ;;  %v463_v20 = vsub.s32 0, %v462_v19  ;;  %v547_v21 = vsub.s32 1, %v462_v19  ;;  %s7654_s23 = scalar_lea.hbm %s7711_s9, %s4972_s16 }
  0x3a   : > { %s5802_s27 = scalar_lea.vmem %s7702_s0, %s4803_s21  ;;  %s7662_s21 = scalar_lea.sflag [#allocation4], %s354_s26 }
  0x3b   : > { %v365_v1 = vld [vmem:[%s5802_s27 + $0x8] sm:$0xff]  ;;  %v364_v2 = vld [vmem:[%s5802_s27] sm:$0xff]  ;;  %v366_v4 = vld [vmem:[%s5802_s27 + $0x10] sm:$0xff]  ;;  %v5825_v25 = vrot.slane %v380_v22, %v463_v20  ;;  %v5827_v26 = vrot.slane %v380_v22, %v547_v21 }
  0x3c   : > { %388 = vperm.xlu1 %5391, %v365_v1   ;;  %383 = vperm.xlu0 %5389, %v364_v2   ;;  %v367_v5 = vld [vmem:[%s5802_s27 + $0x18] sm:$0xff]  ;;  %v368_v6 = vld [vmem:[%s5802_s27 + $0x20] sm:$0xff]  ;;  %v369_v7 = vld [vmem:[%s5802_s27 + $0x28] sm:$0xff] }
  0x3d   : > { %v370_v8 = vld [vmem:[%s5802_s27 + $0x30] sm:$0xff]  ;;  %v371_v9 = vld [vmem:[%s5802_s27 + $0x38] sm:$0xff]  ;;  %v372_v10 = vld [vmem:[%s5802_s27 + $0x40] sm:$0xff] }
  0x3e   : > { %v373_v11 = vld [vmem:[%s5802_s27 + $0x48] sm:$0xff]  ;;  %v374_v12 = vld [vmem:[%s5802_s27 + $0x50] sm:$0xff]  ;;  %v375_v13 = vld [vmem:[%s5802_s27 + $0x58] sm:$0xff] }
  0x3f   : > { %v376_v14 = vld [vmem:[%s5802_s27 + $0x60] sm:$0xff]  ;;  %v377_v15 = vld [vmem:[%s5802_s27 + $0x68] sm:$0xff]  ;;  %v378_v16 = vld [vmem:[%s5802_s27 + $0x70] sm:$0xff] }
  0x40   : > { %5392 = vset.pattern.permute.xlu1 %v5649_v3  ;;  %5390 = vset.pattern.permute.xlu0 %v5649_v3  ;;  %v379_v17 = vld [vmem:[%s5802_s27 + $0x78] sm:$0xff]  ;;  %s4801_s27 = sshll.u32 %s354_s26, 7 }
  0x41   : > { %486 = vperm.xlu1 %5392, %v365_v1   ;;  %482 = vperm.xlu0 %5390, %v364_v2   ;;  %v7723_v2 = vmov 2102212464   ;;  %s7633_s14 = scalar_lea.vmem [#allocation7], %s4801_s27  ;;  %s5578_s27 = sshll.u32 %s5656_s24, 4  ;;  %s5579_s27 = int_to_ptr.vmem [resolvable:$false] %s5578_s27 }
  0x42   : > { %s4709_s17 = sshll.u32 %s7633_s14, 4  ;;  %s5580_s28 = scalar_lea.vmem %s5579_s27, 4096  ;;  %s7656_s17 = int_to_ptr.vmem [resolvable:$true] %s4709_s17 }
  0x43   : > { %s5574_s13 = scalar_lea.vmem %s7656_s17, 2048  ;;  %p5581_p11 = scmp.lt.s32.totalorder %s7656_s17, %s5579_s27 }
  0x44   : > { %p5575_p10 = scmp.ne.s32.totalorder %s7656_s17, %s5574_s13  ;;  %p5582_p0 = scmp.lt.s32.totalorder %s5580_s28, %s5574_s13 }
  0x45   : > { %5393 = vset.pattern.permute.xlu1 %v5648_v0  ;;  %490 = vperm.xlu0 %5390, %v366_v4   ;;  %v7719_v0 = vmov 2131351028  }
  0x46   : > { %393 = vperm.xlu1 %5393, %v366_v4   ;;  %v7734_v4 = vmov 920167782   ;;  %p5576_p12 = pnand %p5575_p10, %p5747_p5  ;;  %p5583_p1 = por %p5582_p0, %p5581_p11 }
  0x48   : > { %p5577_p8 = pneg %p5576_p12 }
  0x49   : > { %494 = vperm.xlu0 %5390, %v367_v5  }
  0x4a   : > { %398 = vperm.xlu1 %5393, %v367_v5   ;;  %p5584_p3 = pnand %p5583_p1, %p5577_p8 }
  0x4d   : > { %498 = vperm.xlu0 %5390, %v368_v6  }
  0x4e   : > { %403 = vperm.xlu1 %5393, %v368_v6  }
  0x51   : > { %502 = vperm.xlu0 %5390, %v369_v7  }
  0x52   : > { %408 = vperm.xlu1 %5393, %v369_v7  }
  0x55   : > { %506 = vperm.xlu0 %5390, %v370_v8  }
  0x56   : > { %413 = vperm.xlu1 %5393, %v370_v8  }
  0x59   : > { %510 = vperm.xlu0 %5390, %v371_v9  }
  0x5a   : > { %418 = vperm.xlu1 %5393, %v371_v9  }
  0x5d   : > { %514 = vperm.xlu0 %5390, %v372_v10  }
  0x5e   : > { %423 = vperm.xlu1 %5393, %v372_v10  }
  0x61   : > { %518 = vperm.xlu0 %5390, %v373_v11  }
  0x62   : > { %428 = vperm.xlu1 %5393, %v373_v11   ;;  %v7736_v11 = vmov 1326507024  }
  0x65   : > { %522 = vperm.xlu0 %5390, %v374_v12  }
  0x66   : > { %433 = vperm.xlu1 %5393, %v374_v12  }
  0x69   : > { %526 = vperm.xlu0 %5390, %v375_v13  }
  0x6a   : > { %438 = vperm.xlu1 %5393, %v375_v13  }
  0x6d   : > { %530 = vperm.xlu0 %5390, %v376_v14  }
  0x6e   : > { %443 = vperm.xlu1 %5393, %v376_v14  }
  0x71   : > { %534 = vperm.xlu0 %5390, %v377_v15  }
  0x72   : > { %448 = vperm.xlu1 %5393, %v377_v15  }
  0x75   : > { %538 = vperm.xlu0 %5390, %v378_v16  }
  0x76   : > { %453 = vperm.xlu1 %5393, %v378_v16  }
  0x79   : > { %542 = vperm.xlu0 %5390, %v379_v17  }
  0x7a   : > { %458 = vperm.xlu1 %5393, %v379_v17  }
  0xb7   : > { %v389_v23 = vpop.permute.xlu1 %388  ;;  %v5823_v24 = vpop.permute.xlu0 %383 }
  0xb8   : > { %v466_v29 = vmul.f32 %v5825_v25, %v389_v23 }
  0xbc   : > { %v487_v27 = vpop.permute.xlu1 %486  ;;  %v5829_v28 = vpop.permute.xlu0 %482 }
  0xbd   : > { %v550_v30 = vmul.f32 %v5827_v26, %v487_v27 }
  0xbf   : > { %v5833_v31 = vadd.f32 %v550_v30, %v466_v29 }
  0xc0   : > { %v491_v32 = vpop.permute.xlu0 %490 }
  0xc1   : > { %7796 = vst [vmem:[#allocation11_spill] sm:$0xff] %v5833_v31  ;;  %v687_v33 = vand.u32 2139095040, %v5833_v31  ;;  %v394_v34 = vpop.permute.xlu1 %393  ;;  %v551_v35 = vmul.f32 %v5827_v26, %v491_v32  ;;  %v7718_v38 = vand.u32 2147483647, %v5833_v31 }
  0xc2   : > { %v467_v36 = vmul.f32 %v5825_v25, %v394_v34 }
  0xc3   : > { %v688_v37 = vshrl.u32 %v687_v33, 23  ;;  %v691_v46 = vand.u32 8388607, %v7718_v38 }
  0xc4   : > { %v5839_v39 = vadd.f32 %v551_v35, %v467_v36  ;;  %v495_v41 = vpop.permute.xlu0 %494 }
  0xc5   : > { %v4808_v40 = vadd.s32 4294967169, %v688_v37  ;;  %v399_v42 = vpop.permute.xlu1 %398  ;;  %v552_v48 = vmul.f32 %v5827_v26, %v495_v41  ;;  %v692_v55 = vor.u32 8388608, %v691_v46 }
  0xc6   : > { %7797 = vst [vmem:[#allocation12_spill] sm:$0xff] %v5839_v39  ;;  %v7716_v43 = vand.u32 2147483647, %v5839_v39  ;;  %v790_v44 = vand.u32 2139095040, %v5839_v39  ;;  %v468_v49 = vmul.f32 %v5825_v25, %v399_v42 }
  0xc7   : > { %v694_v45 = vadd.s32 1, %v4808_v40  ;;  %v732_v34 = vshll.u32 %v692_v55, 8 }
  0xc8   : > { %v791_v47 = vshrl.u32 %v790_v44, 23  ;;  %v794_v50 = vand.u32 8388607, %v7716_v43  ;;  %v5849_v56 = vadd.f32 %v552_v48, %v468_v49 }
  0xc9   : > { %vm695_vm0 = vcmp.gt.s32.totalorder %v694_v45, 0 }
  0xca   : > { %v696_v51 = vsel %vm695_vm0, %v694_v45, 0  ;;  %v4812_v52 = vadd.s32 4294967169, %v791_v47  ;;  %7798 = vst [vmem:[#allocation13_spill] sm:$0xff] %v5849_v56  ;;  %v795_v60 = vor.u32 8388608, %v794_v50  ;;  %v893_v49 = vand.u32 2139095040, %v5849_v56 }
  0xcb   : > { %v697_v53 = vshrl.u32 %v696_v51, 5  ;;  %v698_v54 = vand.u32 31, %v696_v51 }
  0xcc   : > { %v797_v61 = vadd.s32 1, %v4812_v52  ;;  %v835_v48 = vshll.u32 %v795_v60, 8 }
  0xcd   : > { %v699_v57 = vsub.s32 32, %v698_v54  ;;  %v701_v59 = vshll.u32 %v7726_v58, %v698_v54  ;;  %v704_v63 = vshll.u32 %v7721_v62, %v698_v54  ;;  %v707_v1 = vshll.u32 %v7719_v0, %v698_v54 }
  0xce   : > { %v710_v3 = vshll.u32 %v7723_v2, %v698_v54  ;;  %v713_v5 = vshll.u32 %v7734_v4, %v698_v54  ;;  %vm716_vm1 = vcmp.lt.s32.totalorder %v697_v53, 1  ;;  %vm717_vm2 = vcmp.lt.s32.totalorder %v697_v53, 2 }
  0xcf   : > { %v702_v6 = vshrl.u32 %v7721_v62, %v699_v57  ;;  %v705_v7 = vshrl.u32 %v7719_v0, %v699_v57  ;;  %v708_v8 = vshrl.u32 %v7723_v2, %v699_v57  ;;  %v700_v9 = vshrl.u32 %v7726_v58, %v699_v57 }
  0xd0   : > { %v711_v10 = vshrl.u32 %v7734_v4, %v699_v57  ;;  %v714_v12 = vshrl.u32 %v7736_v11, %v699_v57  ;;  %vm718_vm3 = vcmp.lt.s32.totalorder %v697_v53, 3  ;;  %vm719_vm4 = vcmp.lt.s32.totalorder %v697_v53, 4 }
  0xd1   : > { %v703_v13 = vor.u32 %v702_v6, %v701_v59  ;;  %v706_v14 = vor.u32 %v705_v7, %v704_v63  ;;  %v709_v15 = vor.u32 %v708_v8, %v707_v1  ;;  %vm798_vm5 = vcmp.gt.s32.totalorder %v797_v61, 0 }
  0xd2   : > { %v712_v16 = vor.u32 %v711_v10, %v710_v3  ;;  %v715_v17 = vor.u32 %v714_v12, %v713_v5  ;;  %v799_v29 = vsel %vm798_vm5, %v797_v61, 0 }
  0xd3   : > { %v720_v18 = vsel %vm716_vm1, %v700_v9, %v703_v13  ;;  %v721_v19 = vsel %vm719_vm4, %v709_v15, 2102212464  ;;  %v724_v20 = vsel %vm716_vm1, %v703_v13, %v706_v14  ;;  %v728_v21 = vsel %vm716_vm1, %v706_v14, %v709_v15 }
  0xd4   : > { %v722_v22 = vsel %vm718_vm3, %v706_v14, %v721_v19  ;;  %v725_v23 = vsel %vm719_vm4, %v712_v16, 920167782  ;;  %v729_v27 = vsel %vm719_vm4, %v715_v17, 1326507024  ;;  %v800_v37 = vshrl.u32 %v799_v29, 5 }
  0xd5   : > { %v723_v30 = vsel %vm717_vm2, %v720_v18, %v722_v22  ;;  %v726_v32 = vsel %vm718_vm3, %v709_v15, %v725_v23  ;;  %v730_v33 = vsel %vm718_vm3, %v712_v16, %v729_v27  ;;  %v801_v40 = vand.u32 31, %v799_v29 }
  0xd6   : > { %v727_v35 = vsel %vm717_vm2, %v724_v20, %v726_v32  ;;  %v731_v36 = vsel %vm717_vm2, %v728_v21, %v730_v33  ;;  %v739_v46 = vmul.u32 %v732_v34, %v723_v30  ;;  %vm819_vm7 = vcmp.lt.s32.totalorder %v800_v37, 1 }
  0xd7   : > { %v5868_v41 = vmul.u32.u64.low %v732_v34, %v731_v36  ;;  %v5869_v42 = vmul.u32.u64.high %v732_v34, %v731_v36, %v5868_v41  ;;  %v5871_v44 = vmul.u32.u64.low %v732_v34, %v727_v35  ;;  %v5872_v45 = vmul.u32.u64.high %v732_v34, %v727_v35, %v5871_v44 }
  0xd8   : > { %v802_v47 = vsub.s32 32, %v801_v40  ;;  %v804_v50 = vshll.u32 %v7726_v58, %v801_v40  ;;  %v807_v51 = vshll.u32 %v7721_v62, %v801_v40  ;;  %v810_v52 = vshll.u32 %v7719_v0, %v801_v40 }
  0xd9   : > { %v813_v53 = vshll.u32 %v7723_v2, %v801_v40  ;;  %v816_v59 = vshll.u32 %v7734_v4, %v801_v40  ;;  %vm741_vm6 = vc.u32 %v5869_v42, %v5871_v44  ;;  %v742_v60 = vadd.s32 1, %v5872_v45 }
  0xda   : > { %v805_v54 = vshrl.u32 %v7721_v62, %v802_v47  ;;  %v808_v55 = vshrl.u32 %v7719_v0, %v802_v47  ;;  %v811_v57 = vshrl.u32 %v7723_v2, %v802_v47  ;;  %v814_v61 = vshrl.u32 %v7734_v4, %v802_v47 }
  0xdb   : > { %v817_v5 = vshrl.u32 %v7736_v11, %v802_v47  ;;  %v743_v6 = vsel %vm741_vm6, %v742_v60, %v5872_v45  ;;  %vm820_vm8 = vcmp.lt.s32.totalorder %v800_v37, 2  ;;  %vm822_vm9 = vcmp.lt.s32.totalorder %v800_v37, 4 }
  0xdc   : > { %v806_v63 = vor.u32 %v805_v54, %v804_v50  ;;  %v809_v1 = vor.u32 %v808_v55, %v807_v51  ;;  %v812_v3 = vor.u32 %v811_v57, %v810_v52  ;;  %v815_v7 = vor.u32 %v814_v61, %v813_v53  ;;  %v499_v53 = vpop.permute.xlu0 %498  ;;  %v404_v57 = vpop.permute.xlu1 %403 }
  0xdd   : > { %v744_v8 = vadd.s32 %v743_v6, %v739_v46  ;;  %v803_v9 = vshrl.u32 %v7726_v58, %v802_v47  ;;  %v818_v10 = vor.u32 %v817_v5, %v816_v59  ;;  %vm821_vm10 = vcmp.lt.s32.totalorder %v800_v37, 3 }
  0xde   : > { %v824_v12 = vsel %vm822_vm9, %v812_v3, 2102212464  ;;  %v827_v13 = vsel %vm819_vm7, %v806_v63, %v809_v1  ;;  %v828_v14 = vsel %vm822_vm9, %v815_v7, 920167782  ;;  %v831_v15 = vsel %vm819_vm7, %v809_v1, %v812_v3 }
  0xdf   : > { %v745_v16 = vadd.s32 536870912, %v744_v8  ;;  %v823_v17 = vsel %vm819_vm7, %v803_v9, %v806_v63  ;;  %v829_v18 = vsel %vm821_vm10, %v812_v3, %v828_v14  ;;  %v832_v19 = vsel %vm822_vm9, %v818_v10, 1326507024 }
  0xe0   : > { %v825_v20 = vsel %vm821_vm10, %v809_v1, %v824_v12  ;;  %v830_v21 = vsel %vm820_vm8, %v827_v13, %v829_v18  ;;  %v833_v22 = vsel %vm821_vm10, %v815_v7, %v832_v19  ;;  %v894_v23 = vshrl.u32 %v893_v49, 23  ;;  %v503_v18 = vpop.permute.xlu0 %502  ;;  %v409_v19 = vpop.permute.xlu1 %408 }
  0xe1   : > { %v5895_v27 = vshrl.u32 %v745_v16, 30  ;;  %v834_v29 = vsel %vm820_vm8, %v831_v15, %v833_v22  ;;  %v5898_v30 = vmul.u32.u64.low %v835_v48, %v830_v21  ;;  %v5899_v32 = vmul.u32.u64.high %v835_v48, %v830_v21, %v5898_v30 }
  0xe2   : > { %v5902_v33 = vmul.u32.u64.low %v835_v48, %v834_v29  ;;  %v5903_v34 = vmul.u32.u64.high %v835_v48, %v834_v29, %v5902_v33  ;;  %v4816_v35 = vadd.s32 4294967169, %v894_v23  ;;  %v826_v40 = vsel %vm820_vm8, %v823_v17, %v825_v20 }
  0xe3   : > { %7799 = vst [vmem:[#allocation14_spill] sm:$0xff] %v5895_v27  ;;  %v747_v36 = vshll.u32 %v5895_v27, 30  ;;  %v7715_v41 = vand.u32 2147483647, %v5849_v56  ;;  %v845_v47 = vadd.s32 1, %v5899_v32  ;;  %v842_v49 = vmul.u32 %v835_v48, %v826_v40 }
  0xe4   : > { %v900_v45 = vadd.s32 1, %v4816_v35  ;;  %vm844_vm11 = vc.u32 %v5903_v34, %v5898_v30  ;;  %v465_v59 = vmul.f32 %v5825_v25, %v5823_v24  ;;  %v549_v48 = vmul.f32 %v5827_v26, %v5829_v28 }
  0xe5   : > { %v5908_v46 = vsub.s32 %v744_v8, %v747_v36  ;;  %v846_v51 = vsel %vm844_vm11, %v845_v47, %v5899_v32  ;;  %v897_v37 = vand.u32 8388607, %v7715_v41  ;;  %v553_v63 = vmul.f32 %v5827_v26, %v499_v53 }
  0xe6   : > { %vm901_vm12 = vcmp.gt.s32.totalorder %v900_v45, 0  ;;  %v847_v54 = vadd.s32 %v846_v51, %v842_v49  ;;  %v469_v6 = vmul.f32 %v5825_v25, %v404_v57  ;;  %v5938_v29 = vadd.f32 %v549_v48, %v465_v59 }
  0xe7   : > { %v750_v50 = vsub.s32 0, %v5908_v46  ;;  %v902_v52 = vsel %vm901_vm12, %v900_v45, 0  ;;  %v898_v3 = vor.u32 8388608, %v897_v37  ;;  %v554_v35 = vmul.f32 %v5827_v26, %v503_v18 }
  0xe8   : > { %v904_v55 = vand.u32 31, %v902_v52  ;;  %v848_v60 = vadd.s32 536870912, %v847_v54  ;;  %v903_v5 = vshrl.u32 %v902_v52, 5  ;;  %v5936_v23 = vadd.f32 %v553_v63, %v469_v6 }
  0xe9   : > { %v4809_v1 = vmin.u32 %v750_v50, %v5908_v46  ;;  %v470_v36 = vmul.f32 %v5825_v25, %v409_v19  ;;  %v938_v47 = vshll.u32 %v898_v3, 8 }
  0xea   : > { %v905_v61 = vsub.s32 32, %v904_v55  ;;  %v907_v7 = vshll.u32 %v7726_v58, %v904_v55  ;;  %v910_v9 = vshll.u32 %v7721_v62, %v904_v55  ;;  %v916_v10 = vshll.u32 %v7723_v2, %v904_v55  ;;  %7801 = vst [vmem:[#allocation16_spill] sm:$0xff] %v5936_v23 }
  0xeb   : > { %v5932_v14 = vshrl.u32 %v848_v60, 30  ;;  %v913_v17 = vshll.u32 %v7719_v0, %v904_v55  ;;  %v752_v20 = vclz %v4809_v1  ;;  %v919_v22 = vshll.u32 %v7734_v4, %v904_v55 }
  0xec   : > { %v908_v8 = vshrl.u32 %v7721_v62, %v905_v61  ;;  %v911_v24 = vshrl.u32 %v7719_v0, %v905_v61  ;;  %v914_v28 = vshrl.u32 %v7723_v2, %v905_v61  ;;  %v917_v12 = vshrl.u32 %v7734_v4, %v905_v61 }
  0xed   : > { %v920_v13 = vshrl.u32 %v7736_v11, %v905_v61  ;;  %7800 = vst [vmem:[#allocation15_spill] sm:$0xff] %v5932_v14  ;;  %vm922_vm13 = vcmp.lt.s32.totalorder %v903_v5, 1  ;;  %v850_v40 = vshll.u32 %v5932_v14, 30  ;;  %vm925_vm14 = vcmp.lt.s32.totalorder %v903_v5, 4 }
  0xee   : > { %v909_v15 = vor.u32 %v908_v8, %v907_v7  ;;  %v912_v16 = vor.u32 %v911_v24, %v910_v9  ;;  %v918_v21 = vor.u32 %v917_v12, %v916_v10  ;;  %v915_v32 = vor.u32 %v914_v28, %v913_v17 }
  0xef   : > { %v921_v33 = vor.u32 %v920_v13, %v919_v22  ;;  %v4810_v49 = vadd.s32 4294967294, %v752_v20  ;;  %vm924_vm15 = vcmp.lt.s32.totalorder %v903_v5, 3  ;;  %v996_v51 = vand.u32 2139095040, %v5936_v23 }
  0xf0   : > { %v930_v45 = vsel %vm922_vm13, %v909_v15, %v912_v16  ;;  %v931_v50 = vsel %vm925_vm14, %v918_v21, 920167782  ;;  %vm923_vm0 = vcmp.lt.s32.totalorder %v903_v5, 2  ;;  %v927_v37 = vsel %vm925_vm14, %v915_v32, 2102212464 }
  0xf1   : > { %v932_v52 = vsel %vm924_vm15, %v915_v32, %v931_v50  ;;  %v934_v53 = vsel %vm922_vm13, %v912_v16, %v915_v32  ;;  %v906_v55 = vshrl.u32 %v7726_v58, %v905_v61  ;;  %v935_v59 = vsel %vm925_vm14, %v921_v33, 1326507024 }
  0xf2   : > { %v933_v57 = vsel %vm923_vm0, %v930_v45, %v932_v52  ;;  %v5948_v48 = vadd.f32 %v554_v35, %v470_v36  ;;  %v5950_v60 = vsub.s32 %v847_v54, %v850_v40  ;;  %v936_v63 = vsel %vm924_vm15, %v918_v21, %v935_v59 }
  0xf3   : > { %v5952_v1 = vmul.u32.u64.low %v938_v47, %v933_v57  ;;  %v5953_v3 = vmul.u32.u64.high %v938_v47, %v933_v57, %v5952_v1  ;;  %v926_v6 = vsel %vm922_vm13, %v906_v55, %v909_v15  ;;  %v928_v7 = vsel %vm924_vm15, %v912_v16, %v927_v37 }
  0xf4   : > { %7802 = vst [vmem:[#allocation17_spill] sm:$0xff] %v5948_v48  ;;  %v937_v8 = vsel %vm923_vm0, %v934_v53, %v936_v63  ;;  %vm4811_vm1 = vcmp.lt.s32.totalorder %v4810_v49, 0  ;;  %v997_v24 = vshrl.u32 %v996_v51, 23  ;;  %v584_v28 = vand.u32 2139095040, %v5938_v29 }
  0xf5   : > { %v5958_v9 = vmul.u32.u64.low %v938_v47, %v937_v8  ;;  %v5959_v61 = vmul.u32.u64.high %v938_v47, %v937_v8, %v5958_v9  ;;  %v1099_v54 = vand.u32 2139095040, %v5948_v48  ;;  %v853_v10 = vsub.s32 0, %v5950_v60 }
  0xf6   : > { %v929_v12 = vsel %vm923_vm0, %v926_v6, %v928_v7  ;;  %v948_v13 = vadd.s32 1, %v5953_v3  ;;  %v4820_v17 = vadd.s32 4294967169, %v997_v24  ;;  %v5966_v15 = vsel %vm4811_vm1, 0, %v4810_v49 }
  0xf7   : > { %v7714_v16 = vand.u32 2147483647, %v5936_v23  ;;  %v1100_v18 = vshrl.u32 %v1099_v54, 23  ;;  %v945_v19 = vmul.u32 %v938_v47, %v929_v12  ;;  %vm947_vm2 = vc.u32 %v5959_v61, %v5952_v1 }
  0xf8   : > { %v1003_v20 = vadd.s32 1, %v4820_v17  ;;  %v760_v21 = vsub.s32 4294967266, %v5966_v15  ;;  %v585_v22 = vshrl.u32 %v584_v28, 23  ;;  %v4813_v32 = vmin.u32 %v853_v10, %v5950_v60 }
  0xf9   : > { %v949_v5 = vsel %vm947_vm2, %v948_v13, %v5953_v3  ;;  %v1000_v35 = vand.u32 8388607, %v7714_v16  ;;  %v4824_v36 = vadd.s32 4294967169, %v1100_v18  ;;  %v7713_v37 = vand.u32 2147483647, %v5948_v48 }
  0xfa   : > { %v950_v33 = vadd.s32 %v949_v5, %v945_v19  ;;  %vm1004_vm3 = vcmp.gt.s32.totalorder %v1003_v20, 0  ;;  %v5976_v49 = vadd.s32 127, %v760_v21  ;;  %v4804_v50 = vadd.s32 4294967169, %v585_v22 }
  0xfb   : > { %v1005_v40 = vsel %vm1004_vm3, %v1003_v20, 0  ;;  %v855_v51 = vclz %v4813_v32  ;;  %v1001_v53 = vor.u32 8388608, %v1000_v35  ;;  %v1106_v57 = vadd.s32 1, %v4824_v36 }
  0xfc   : > { %v951_v45 = vadd.s32 536870912, %v950_v33  ;;  %v1007_v47 = vand.u32 31, %v1005_v40  ;;  %v1006_v59 = vshrl.u32 %v1005_v40, 5  ;;  %v1103_v5 = vand.u32 8388607, %v7713_v37 }
  0xfd   : > { %v5992_v13 = vadd.s32 4294967294, %v855_v51  ;;  %vm1107_vm4 = vcmp.gt.s32.totalorder %v1106_v57, 0 }
  0xfe   : > { %v5979_v52 = vshrl.u32 %v951_v45, 30  ;;  %v1008_v55 = vsub.s32 32, %v1007_v47  ;;  %v1010_v63 = vshll.u32 %v7726_v58, %v1007_v47  ;;  %v1013_v3 = vshll.u32 %v7721_v62, %v1007_v47 }
  0xff   : > { %v1016_v6 = vshll.u32 %v7719_v0, %v1007_v47  ;;  %v1019_v24 = vshll.u32 %v7723_v2, %v1007_v47  ;;  %v1022_v10 = vshll.u32 %v7734_v4, %v1007_v47  ;;  %vm1025_vm5 = vcmp.lt.s32.totalorder %v1006_v59, 1 }
 0x100   : > { %7803 = vst [vmem:[#allocation18_spill] sm:$0xff] %v5979_v52  ;;  %v953_v7 = vshll.u32 %v5979_v52, 30  ;;  %v1011_v8 = vshrl.u32 %v7721_v62, %v1008_v55  ;;  %v1014_v9 = vshrl.u32 %v7719_v0, %v1008_v55  ;;  %v1017_v28 = vshrl.u32 %v7723_v2, %v1008_v55 }
 0x101   : > { %v1020_v54 = vshrl.u32 %v7734_v4, %v1008_v55  ;;  %v1023_v12 = vshrl.u32 %v7736_v11, %v1008_v55  ;;  %vm1028_vm6 = vcmp.lt.s32.totalorder %v1006_v59, 4  ;;  %v1009_v35 = vshrl.u32 %v7726_v58, %v1008_v55 }
 0x102   : > { %v5994_v17 = vsub.s32 %v950_v33, %v953_v7  ;;  %v1012_v18 = vor.u32 %v1011_v8, %v1010_v63  ;;  %v1015_v19 = vor.u32 %v1014_v9, %v1013_v3  ;;  %v1018_v20 = vor.u32 %v1017_v28, %v1016_v6  ;;  %v507_v28 = vpop.permute.xlu0 %506 }
 0x103   : > { %v1021_v21 = vor.u32 %v1020_v54, %v1019_v24  ;;  %v1024_v22 = vor.u32 %v1023_v12, %v1022_v10  ;;  %v1041_v45 = vshll.u32 %v1001_v53, 8  ;;  %vm1027_vm7 = vcmp.lt.s32.totalorder %v1006_v59, 3  ;;  %v414_v54 = vpop.permute.xlu1 %413 }
 0x104   : > { %v956_v32 = vsub.s32 0, %v5994_v17  ;;  %v1030_v36 = vsel %vm1028_vm6, %v1018_v20, 2102212464  ;;  %v1033_v40 = vsel %vm1025_vm5, %v1012_v18, %v1015_v19  ;;  %v1037_v47 = vsel %vm1025_vm5, %v1015_v19, %v1018_v20 }
 0x105   : > { %v1034_v33 = vsel %vm1028_vm6, %v1021_v21, 920167782  ;;  %v1108_v51 = vsel %vm1107_vm4, %v1106_v57, 0  ;;  %vm1026_vm8 = vcmp.lt.s32.totalorder %v1006_v59, 2  ;;  %v1029_v63 = vsel %vm1025_vm5, %v1009_v35, %v1012_v18 }
 0x106   : > { %v1035_v3 = vsel %vm1027_vm7, %v1018_v20, %v1034_v33  ;;  %v1038_v6 = vsel %vm1028_vm6, %v1024_v22, 1326507024  ;;  %v4817_v7 = vmin.u32 %v956_v32, %v5994_v17  ;;  %v1031_v8 = vsel %vm1027_vm7, %v1015_v19, %v1030_v36 }
 0x107   : > { %v1036_v9 = vsel %vm1026_vm8, %v1033_v40, %v1035_v3  ;;  %v1039_v24 = vsel %vm1027_vm7, %v1021_v21, %v1038_v6  ;;  %v1110_v12 = vand.u32 31, %v1108_v51  ;;  %v740_v57 = vadd.s32 %v5871_v44, %v5869_v42 }
 0x108   : > { %v1040_v55 = vsel %vm1026_vm8, %v1037_v47, %v1039_v24  ;;  %v6003_v10 = vmul.u32.u64.low %v1041_v45, %v1036_v9  ;;  %v6004_v53 = vmul.u32.u64.high %v1041_v45, %v1036_v9, %v6003_v10  ;;  %v6009_v18 = vadd.s32 1, %v4804_v50 }
 0x109   : > { %v6011_v20 = vmul.u32.u64.low %v1041_v45, %v1040_v55  ;;  %v6012_v22 = vmul.u32.u64.high %v1041_v45, %v1040_v55, %v6011_v20  ;;  %v1032_v19 = vsel %vm1026_vm8, %v1029_v63, %v1031_v8  ;;  %v1111_v21 = vsub.s32 32, %v1110_v12 }
 0x10a   : > { %v555_v32 = vmul.f32 %v5827_v26, %v507_v28  ;;  %v471_v35 = vmul.f32 %v5825_v25, %v414_v54  ;;  %v756_v36 = vsub.s32 32, %v5966_v15  ;;  %v762_v40 = vshll.u32 %v5976_v49, 23 }
 0x10b   : > { %vm4815_vm9 = vcmp.lt.s32.totalorder %v5992_v13, 0  ;;  %v1104_v33 = vor.u32 8388608, %v1103_v5  ;;  %v958_v42 = vclz %v4817_v7  ;;  %v1051_v44 = vadd.s32 1, %v6004_v53 }
 0x10c   : > { %v1109_v50 = vshrl.u32 %v1108_v51, 5  ;;  %v1114_v47 = vshrl.u32 %v7721_v62, %v1111_v21  ;;  %v1048_v59 = vmul.u32 %v1041_v45, %v1032_v19  ;;  %v1113_v63 = vshll.u32 %v7726_v58, %v1110_v12 }
 0x10d   : > { %v1116_v3 = vshll.u32 %v7721_v62, %v1110_v12  ;;  %v1119_v6 = vshll.u32 %v7719_v0, %v1110_v12  ;;  %vm592_vm10 = vcmp.gt.s32.totalorder %v6009_v18, 0  ;;  %vm1050_vm11 = vc.u32 %v6012_v22, %v6003_v10 }
 0x10e   : > { %v1117_v49 = vshrl.u32 %v7719_v0, %v1111_v21  ;;  %v1120_v5 = vshrl.u32 %v7723_v2, %v1111_v21  ;;  %v1122_v51 = vshll.u32 %v7723_v2, %v1110_v12  ;;  %v1052_v7 = vsel %vm1050_vm11, %v1051_v44, %v6004_v53 }
 0x10f   : > { %v1115_v45 = vor.u32 %v1114_v47, %v1113_v63  ;;  %v1123_v8 = vshrl.u32 %v7734_v4, %v1111_v21  ;;  %v1125_v9 = vshll.u32 %v7734_v4, %v1110_v12  ;;  %v1053_v24 = vadd.s32 %v1052_v7, %v1048_v59 }
 0x110   : > { %v1118_v28 = vor.u32 %v1117_v49, %v1116_v3  ;;  %v1121_v54 = vor.u32 %v1120_v5, %v1119_v6  ;;  %v1126_v55 = vshrl.u32 %v7736_v11, %v1111_v21  ;;  %v6038_v20 = vsel %vm4815_vm9, 0, %v5992_v13 }
 0x111   : > { %v1124_v19 = vor.u32 %v1123_v8, %v1122_v51  ;;  %v1144_v37 = vshll.u32 %v1104_v33, 8  ;;  %v6040_v16 = vadd.f32 %v555_v32, %v471_v35  ;;  %v1054_v53 = vadd.s32 536870912, %v1053_v24 }
 0x112   : > { %v1127_v44 = vor.u32 %v1126_v55, %v1125_v9  ;;  %vm1128_vm12 = vcmp.lt.s32.totalorder %v1109_v50, 1  ;;  %vm1131_vm13 = vcmp.lt.s32.totalorder %v1109_v50, 4  ;;  %v4818_v47 = vadd.s32 4294967294, %v958_v42 }
 0x113   : > { %7804 = vst [vmem:[#allocation19_spill] sm:$0xff] %v6040_v16  ;;  %v1112_v12 = vshrl.u32 %v7726_v58, %v1111_v21  ;;  %v1133_v59 = vsel %vm1131_vm13, %v1121_v54, 2102212464  ;;  %v1136_v63 = vsel %vm1128_vm12, %v1115_v45, %v1118_v28  ;;  %v6043_v3 = vshrl.u32 %v1054_v53, 30 }
 0x114   : > { %vm1130_vm14 = vcmp.lt.s32.totalorder %v1109_v50, 3  ;;  %v1137_v6 = vsel %vm1131_vm13, %v1124_v19, 920167782  ;;  %v1140_v49 = vsel %vm1128_vm12, %v1118_v28, %v1121_v54  ;;  %vm1129_vm15 = vcmp.lt.s32.totalorder %v1109_v50, 2 }
 0x115   : > { %7805 = vst [vmem:[#allocation20_spill] sm:$0xff] %v6043_v3  ;;  %v1132_v13 = vsel %vm1128_vm12, %v1112_v12, %v1115_v45  ;;  %v1138_v5 = vsel %vm1130_vm14, %v1121_v54, %v1137_v6  ;;  %v1141_v33 = vsel %vm1131_vm13, %v1127_v44, 1326507024  ;;  %v1056_v32 = vshll.u32 %v6043_v3, 30  ;;  %v511_v12 = vpop.permute.xlu0 %510 }
 0x116   : > { %v1134_v35 = vsel %vm1130_vm14, %v1118_v28, %v1133_v59  ;;  %v1139_v51 = vsel %vm1129_vm15, %v1136_v63, %v1138_v5  ;;  %v1142_v7 = vsel %vm1130_vm14, %v1124_v19, %v1141_v33  ;;  %v863_v42 = vsub.s32 4294967266, %v6038_v20 }
 0x117   : > { %v1143_v8 = vsel %vm1129_vm15, %v1140_v49, %v1142_v7  ;;  %v6047_v21 = vmul.u32.u64.low %v1144_v37, %v1139_v51  ;;  %v6048_v9 = vmul.u32.u64.high %v1144_v37, %v1139_v51, %v6047_v21  ;;  %v758_v55 = vshrl.u32 %v740_v57, %v756_v36 }
 0x118   : > { %v763_v53 = vor.u32 4788187, %v762_v40  ;;  %v6051_v41 = vmul.u32.u64.low %v1144_v37, %v1143_v8  ;;  %v6052_v43 = vmul.u32.u64.high %v1144_v37, %v1143_v8, %v6051_v41  ;;  %v593_v50 = vsel %vm592_vm10, %v6009_v18, 0  ;;  %v419_v18 = vpop.permute.xlu1 %418 }
 0x119   : > { %v1135_v45 = vsel %vm1129_vm15, %v1132_v13, %v1134_v35  ;;  %v1202_v28 = vand.u32 2139095040, %v6040_v16  ;;  %v757_v54 = vshll.u32 %v5908_v46, %v5966_v15  ;;  %v843_v19 = vadd.s32 %v5898_v30, %v5903_v34 }
 0x11a   : > { %vm4819_vm0 = vcmp.lt.s32.totalorder %v4818_v47, 0  ;;  %v6062_v44 = vsub.s32 %v1053_v24, %v1056_v32  ;;  %v859_v57 = vsub.s32 32, %v6038_v20  ;;  %v864_v36 = vadd.s32 127, %v863_v42 }
 0x11b   : > { %v1154_v41 = vadd.s32 1, %v6048_v9  ;;  %v1203_v40 = vshrl.u32 %v1202_v28, 23  ;;  %v759_v59 = vor.u32 %v758_v55, %v757_v54  ;;  %v764_v63 = vand.u32 2147483647, %v763_v53  ;;  %v515_v54 = vpop.permute.xlu0 %514 }
 0x11c   : > { %v1151_v6 = vmul.u32 %v1144_v37, %v1135_v45  ;;  %vm1153_vm1 = vc.u32 %v6052_v43, %v6047_v21  ;;  %v6068_v46 = vsel %vm4819_vm0, 0, %v4818_v47  ;;  %v7717_v34 = vand.u32 2147483647, %v6040_v16 }
 0x11d   : > { %v1155_v30 = vsel %vm1153_vm1, %v1154_v41, %v6048_v9  ;;  %v4828_v15 = vadd.s32 4294967169, %v1203_v40  ;;  %v1059_v24 = vsub.s32 0, %v6062_v44  ;;  %v556_v13 = vmul.f32 %v5827_v26, %v511_v12 }
 0x11e   : > { %v1156_v49 = vadd.s32 %v1155_v30, %v1151_v6  ;;  %v472_v5 = vmul.f32 %v5825_v25, %v419_v18  ;;  %v861_v33 = vshrl.u32 %v843_v19, %v859_v57  ;;  %v865_v32 = vshll.u32 %v864_v36, 23  ;;  %v424_v19 = vpop.permute.xlu1 %423 }
 0x11f   : > { %v1209_v37 = vadd.s32 1, %v4828_v15  ;;  %v766_v35 = vcvt.s32.f32 %v759_v59  ;;  %v6075_v51 = vshrl.u32 %v593_v50, 5  ;;  %v966_v47 = vsub.s32 4294967266, %v6068_v46 }
 0x120   : > { %v1157_v7 = vadd.s32 536870912, %v1156_v49  ;;  %v6078_v42 = vand.u32 31, %v593_v50  ;;  %v860_v8 = vshll.u32 %v5950_v60, %v6038_v20  ;;  %v1206_v9 = vand.u32 8388607, %v7717_v34 }
 0x121   : > { %vm1210_vm2 = vcmp.gt.s32.totalorder %v1209_v37, 0  ;;  %v6084_v55 = vmul.f32 %v766_v35, %v764_v63  ;;  %v4821_v53 = vmin.u32 %v1059_v24, %v6062_v44  ;;  %v6087_v28 = vadd.f32 %v556_v13, %v472_v5 }
 0x122   : > { %v1211_v45 = vsel %vm1210_vm2, %v1209_v37, 0  ;;  %v6089_v57 = vor.u32 %v861_v33, %v860_v8  ;;  %v6091_v50 = vor.u32 4788187, %v865_v32  ;;  %v946_v60 = vadd.s32 %v5952_v1, %v5959_v61 }
 0x123   : > { %7806 = vst [vmem:[#allocation21_spill] sm:$0xff] %v6087_v28  ;;  %v1213_v20 = vand.u32 31, %v1211_v45  ;;  %v962_v36 = vsub.s32 32, %v6068_v46  ;;  %v963_v41 = vshll.u32 %v5994_v17, %v6068_v46  ;;  %v967_v40 = vadd.s32 127, %v966_v47 }
 0x124   : > { %v6098_v12 = vshrl.u32 %v1157_v7, 30  ;;  %v1207_v18 = vor.u32 8388608, %v1206_v9  ;;  %v557_v63 = vmul.f32 %v5827_v26, %v515_v54  ;;  %v473_v6 = vmul.f32 %v5825_v25, %v424_v19 }
 0x125   : > { %v1214_v59 = vsub.s32 32, %v1213_v20  ;;  %v1061_v30 = vclz %v4821_v53  ;;  %v1212_v15 = vshrl.u32 %v1211_v45, 5  ;;  %v1216_v24 = vshll.u32 %v7726_v58, %v1213_v20 }
 0x126   : > { %7807 = vst [vmem:[#allocation22_spill] sm:$0xff] %v6098_v12  ;;  %v1305_v1 = vand.u32 2139095040, %v6087_v28  ;;  %v1219_v13 = vshll.u32 %v7721_v62, %v1213_v20  ;;  %v1159_v5 = vshll.u32 %v6098_v12, 30  ;;  %v1222_v33 = vshll.u32 %v7719_v0, %v1213_v20 }
 0x127   : > { %v1217_v61 = vshrl.u32 %v7721_v62, %v1214_v59  ;;  %v1220_v17 = vshrl.u32 %v7719_v0, %v1214_v59  ;;  %v1223_v46 = vshrl.u32 %v7723_v2, %v1214_v59  ;;  %v1225_v32 = vshll.u32 %v7723_v2, %v1213_v20 }
 0x128   : > { %v1226_v37 = vshrl.u32 %v7734_v4, %v1214_v59  ;;  %v964_v35 = vshrl.u32 %v946_v60, %v962_v36  ;;  %v968_v47 = vshll.u32 %v967_v40, 23  ;;  %v1247_v45 = vshll.u32 %v1207_v18, 8 }
 0x129   : > { %v1218_v7 = vor.u32 %v1217_v61, %v1216_v24  ;;  %v1221_v8 = vor.u32 %v1220_v17, %v1219_v13  ;;  %v1224_v9 = vor.u32 %v1223_v46, %v1222_v33  ;;  %v6112_v54 = vadd.f32 %v557_v63, %v473_v6 }
 0x12a   : > { %v1227_v53 = vor.u32 %v1226_v37, %v1225_v32  ;;  %v1228_v19 = vshll.u32 %v7734_v4, %v1213_v20  ;;  %v1229_v34 = vshrl.u32 %v7736_v11, %v1214_v59  ;;  %v7725_v38 = vand.u32 2147483647, %v6087_v28 }
 0x12b   : > { %v1306_v0 = vshrl.u32 %v1305_v1, 23  ;;  %v4822_v62 = vadd.s32 4294967294, %v1061_v30  ;;  %v6117_v2 = vsub.s32 %v1156_v49, %v1159_v5  ;;  %vm1231_vm3 = vcmp.lt.s32.totalorder %v1212_v15, 1 }
 0x12c   : > { %vm1234_vm4 = vcmp.lt.s32.totalorder %v1212_v15, 4  ;;  %vm686_vm5 = vcmp.lt.s32.totalorder %v5833_v31, 0  ;;  %v1230_v60 = vor.u32 %v1229_v34, %v1228_v19  ;;  %vm1233_vm6 = vcmp.lt.s32.totalorder %v1212_v15, 3 }
 0x12d   : > { %v1239_v36 = vsel %vm1231_vm3, %v1218_v7, %v1221_v8  ;;  %v1240_v40 = vsel %vm1234_vm4, %v1227_v53, 920167782  ;;  %v1215_v18 = vshrl.u32 %v7726_v58, %v1214_v59  ;;  %vm1232_vm7 = vcmp.lt.s32.totalorder %v1212_v15, 2 }
 0x12e   : > { %v1236_v20 = vsel %vm1234_vm4, %v1224_v9, 2102212464  ;;  %v1241_v63 = vsel %vm1233_vm6, %v1224_v9, %v1240_v40  ;;  %v1243_v30 = vsel %vm1231_vm3, %v1221_v8, %v1224_v9  ;;  %v1244_v49 = vsel %vm1234_vm4, %v1230_v60, 1326507024 }
 0x12f   : > { %v1242_v6 = vsel %vm1232_vm7, %v1239_v36, %v1241_v63  ;;  %v4832_v24 = vadd.s32 4294967169, %v1306_v0  ;;  %v1162_v1 = vsub.s32 0, %v6117_v2  ;;  %v1235_v61 = vsel %vm1231_vm3, %v1215_v18, %v1218_v7 }
 0x130   : > { %v1245_v34 = vsel %vm1233_vm6, %v1227_v53, %v1244_v49  ;;  %v1408_v13 = vand.u32 2139095040, %v6112_v54  ;;  %v1237_v17 = vsel %vm1233_vm6, %v1221_v8, %v1236_v20  ;;  %v768_v33 = vxor.u32 2147483648, %v6084_v55 }
 0x131   : > { %v1246_v46 = vsel %vm1232_vm7, %v1243_v30, %v1245_v34  ;;  %v6128_v59 = vmul.u32.u64.low %v1247_v45, %v1242_v6  ;;  %v6129_v5 = vmul.u32.u64.high %v1247_v45, %v1242_v6, %v6128_v59  ;;  %v6134_v32 = vsub.s32 32, %v6078_v42 }
 0x132   : > { %v867_v0 = vand.u32 2147483647, %v6091_v50  ;;  %v6137_v37 = vor.u32 %v964_v35, %v963_v41  ;;  %v6139_v7 = vor.u32 4788187, %v968_v47  ;;  %v1312_v8 = vadd.s32 1, %v4832_v24 }
 0x133   : > { %v6141_v9 = vmul.u32.u64.low %v1247_v45, %v1246_v46  ;;  %v6142_v53 = vmul.u32.u64.high %v1247_v45, %v1246_v46, %v6141_v9  ;;  %v869_v19 = vcvt.s32.f32 %v6089_v57  ;;  %v4825_v60 = vmin.u32 %v1162_v1, %v6117_v2 }
 0x134   : > { %v1238_v36 = vsel %vm1232_vm7, %v1235_v61, %v1237_v17  ;;  %v1309_v40 = vand.u32 8388607, %v7725_v38  ;;  %vm4823_vm8 = vcmp.lt.s32.totalorder %v4822_v62, 0  ;;  %v1257_v50 = vadd.s32 1, %v6129_v5 }
 0x135   : > { %vm1313_vm9 = vcmp.gt.s32.totalorder %v1312_v8, 0  ;;  %v1409_v41 = vshrl.u32 %v1408_v13, 23  ;;  %v6153_v35 = vsel %vm686_vm5, %v768_v33, %v6084_v55  ;;  %v6155_v47 = vmul.f32 %v869_v19, %v867_v0 }
 0x136   : > { %7808 = vst [vmem:[#allocation23_spill] sm:$0xff] %v6153_v35  ;;  %v1314_v18 = vsel %vm1313_vm9, %v1312_v8, 0  ;;  %v1254_v20 = vmul.u32 %v1247_v45, %v1238_v36  ;;  %vm1256_vm10 = vc.u32 %v6142_v53, %v6128_v59  ;;  %v6161_v6 = vsel %vm4823_vm8, 0, %v4822_v62 }
 0x137   : > { %v1316_v63 = vand.u32 31, %v1314_v18  ;;  %v1164_v30 = vclz %v4825_v60  ;;  %v1258_v49 = vsel %vm1256_vm10, %v1257_v50, %v6129_v5  ;;  %v1310_v1 = vor.u32 8388608, %v1309_v40 }
 0x138   : > { %v1259_v24 = vadd.s32 %v1258_v49, %v1254_v20  ;;  %v4836_v34 = vadd.s32 4294967169, %v1409_v41  ;;  %v1315_v13 = vshrl.u32 %v1314_v18, 5  ;;  %v7809_v46 = vmov 2475754826  }
 0x139   : > { %v1317_v61 = vsub.s32 32, %v1316_v63  ;;  %v1319_v17 = vshll.u32 %v7726_v58, %v1316_v63  ;;  %v1322_v45 = vshll.u32 %v7809_v46, %v1316_v63  ;;  %v7810_v33 = vmov 2131351028  }
 0x13a   : > { %v1325_v0 = vshll.u32 %v7810_v33, %v1316_v63  ;;  %v1260_v9 = vadd.s32 536870912, %v1259_v24  ;;  %v7811_v19 = vmov 2102212464   ;;  %v1331_v40 = vshll.u32 %v7734_v4, %v1316_v63 }
 0x13b   : > { %v1320_v62 = vshrl.u32 %v7809_v46, %v1317_v61  ;;  %v1323_v8 = vshrl.u32 %v7810_v33, %v1317_v61  ;;  %v1328_v5 = vshll.u32 %v7811_v19, %v1316_v63  ;;  %v1326_v60 = vshrl.u32 %v7811_v19, %v1317_v61 }
 0x13c   : > { %v1329_v36 = vshrl.u32 %v7734_v4, %v1317_v61  ;;  %v1332_v50 = vshrl.u32 %v7736_v11, %v1317_v61  ;;  %v1069_v41 = vsub.s32 4294967266, %v6161_v6  ;;  %v6176_v18 = vshrl.u32 %v1260_v9, 30 }
 0x13d   : > { %v1321_v20 = vor.u32 %v1320_v62, %v1319_v17  ;;  %v1324_v49 = vor.u32 %v1323_v8, %v1322_v45  ;;  %v1327_v38 = vor.u32 %v1326_v60, %v1325_v0  ;;  %v1415_v55 = vadd.s32 1, %v4836_v34 }
 0x13e   : > { %7812 = vst [vmem:[#allocation24_spill] sm:$0xff] %v6176_v18  ;;  %v1330_v57 = vor.u32 %v1329_v36, %v1328_v5  ;;  %v1333_v15 = vor.u32 %v1332_v50, %v1331_v40  ;;  %v4826_v58 = vadd.s32 4294967294, %v1164_v30  ;;  %v1262_v12 = vshll.u32 %v6176_v18, 30  ;;  %v519_v36 = vpop.permute.xlu0 %518 }
 0x13f   : > { %vm1334_vm11 = vcmp.lt.s32.totalorder %v1315_v13, 1  ;;  %vm1337_vm12 = vcmp.lt.s32.totalorder %v1315_v13, 4  ;;  %v7813_v3 = vmov 683565275   ;;  %v1350_v11 = vshll.u32 %v1310_v1, 8 }
 0x140   : > { %v1318_v52 = vshrl.u32 %v7813_v3, %v1317_v61  ;;  %v1339_v63 = vsel %vm1337_vm12, %v1327_v38, 2102212464  ;;  %v1342_v4 = vsel %vm1334_vm11, %v1321_v20, %v1324_v49  ;;  %vm1335_vm13 = vcmp.lt.s32.totalorder %v1315_v13, 2 }
 0x141   : > { %vm1336_vm14 = vcmp.lt.s32.totalorder %v1315_v13, 3  ;;  %v1343_v9 = vsel %vm1337_vm12, %v1330_v57, 920167782  ;;  %v1346_v14 = vsel %vm1334_vm11, %v1324_v49, %v1327_v38  ;;  %v6180_v17 = vsub.s32 %v1259_v24, %v1262_v12  ;;  %v429_v24 = vpop.permute.xlu1 %428 }
 0x142   : > { %v1344_v45 = vsel %vm1336_vm14, %v1327_v38, %v1343_v9  ;;  %v1347_v0 = vsel %vm1337_vm12, %v1333_v15, 1326507024  ;;  %vm1416_vm15 = vcmp.gt.s32.totalorder %v1415_v55, 0  ;;  %v1338_v34 = vsel %vm1334_vm11, %v1318_v52, %v1321_v20 }
 0x143   : > { %v1340_v30 = vsel %vm1336_vm14, %v1324_v49, %v1339_v63  ;;  %v1345_v62 = vsel %vm1335_vm13, %v1342_v4, %v1344_v45  ;;  %v1348_v8 = vsel %vm1336_vm14, %v1330_v57, %v1347_v0  ;;  %v1417_v1 = vsel %vm1416_vm15, %v1415_v55, 0 }
 0x144   : > { %v1349_v5 = vsel %vm1335_vm13, %v1346_v14, %v1348_v8  ;;  %v6184_v61 = vmul.u32.u64.low %v1350_v11, %v1345_v62  ;;  %v6185_v60 = vmul.u32.u64.high %v1350_v11, %v1345_v62, %v6184_v61  ;;  %vm4827_vm0 = vcmp.lt.s32.totalorder %v4826_v58, 0 }
 0x145   : > { %v6188_v40 = vmul.u32.u64.low %v1350_v11, %v1349_v5  ;;  %v6189_v12 = vmul.u32.u64.high %v1350_v11, %v1349_v5, %v6188_v40  ;;  %v7814_v38 = vand.u32 2147483647, %v6112_v54  ;;  %v1265_v4 = vsub.s32 0, %v6180_v17 }
 0x146   : > { %v1341_v57 = vsel %vm1335_vm13, %v1338_v34, %v1340_v30  ;;  %v1419_v14 = vand.u32 31, %v1417_v1  ;;  %v7815_v50 = vand.u32 2147483647, %v6139_v7  ;;  %v7816_v55 = vcvt.s32.f32 %v6137_v37 }
 0x147   : > { %v1412_v15 = vand.u32 8388607, %v7814_v38  ;;  %v6204_v49 = vadd.s32 %v6003_v10, %v6012_v22  ;;  %v558_v9 = vmul.f32 %v5827_v26, %v519_v36  ;;  %v6208_v45 = vadd.s32 127, %v1069_v41 }
 0x148   : > { %v6200_v20 = vmul.f32 %v7816_v55, %v7815_v50  ;;  %v6210_v13 = vsel %vm4827_vm0, 0, %v4826_v58  ;;  %v1360_v0 = vadd.s32 1, %v6185_v60  ;;  %v1420_v34 = vsub.s32 32, %v1419_v14 }
 0x149   : > { %v1357_v7 = vmul.u32 %v1350_v11, %v1341_v57  ;;  %vm1359_vm1 = vc.u32 %v6189_v12, %v6184_v61  ;;  %v1413_v37 = vor.u32 8388608, %v1412_v15  ;;  %v474_v30 = vmul.f32 %v5825_v25, %v429_v24 }
 0x14a   : > { %v4829_v10 = vmin.u32 %v1265_v4, %v6180_v17  ;;  %v1361_v22 = vsel %vm1359_vm1, %v1360_v0, %v6185_v60  ;;  %v1423_v62 = vshrl.u32 %v7809_v46, %v1420_v34  ;;  %v1426_v41 = vshrl.u32 %v7810_v33, %v1420_v34 }
 0x14b   : > { %v1362_v58 = vadd.s32 %v1361_v22, %v1357_v7  ;;  %v1422_v8 = vshll.u32 %v7813_v3, %v1419_v14  ;;  %v1425_v5 = vshll.u32 %v7809_v46, %v1419_v14  ;;  %v1429_v11 = vshrl.u32 %v7811_v19, %v1420_v34 }
 0x14c   : > { %v1418_v36 = vshrl.u32 %v1417_v1, 5  ;;  %v1428_v40 = vshll.u32 %v7810_v33, %v1419_v14  ;;  %v1431_v38 = vshll.u32 %v7811_v19, %v1419_v14  ;;  %v7817_v15 = vmov 920167782  }
 0x14d   : > { %v1432_v4 = vshrl.u32 %v7817_v15, %v1420_v34  ;;  %v1071_v60 = vshll.u32 %v6208_v45, 23  ;;  %v1363_v57 = vadd.s32 536870912, %v1362_v58  ;;  %v1424_v24 = vor.u32 %v1423_v62, %v1422_v8 }
 0x14e   : > { %v1427_v50 = vor.u32 %v1426_v41, %v1425_v5  ;;  %v1430_v55 = vor.u32 %v1429_v11, %v1428_v40  ;;  %v1434_v7 = vshll.u32 %v7817_v15, %v1419_v14  ;;  %v7818_v22 = vmov 1326507024   ;;  %v523_v41 = vpop.permute.xlu0 %522 }
 0x14f   : > { %v1433_v0 = vor.u32 %v1432_v4, %v1431_v38  ;;  %v1435_v52 = vshrl.u32 %v7818_v22, %v1420_v34  ;;  %v1168_v63 = vsub.s32 32, %v6210_v13  ;;  %v1172_v1 = vsub.s32 4294967266, %v6210_v13 }
 0x150   : > { %v6231_v18 = vshrl.u32 %v1363_v57, 30  ;;  %v1453_v35 = vshll.u32 %v1413_v37, 8  ;;  %v1267_v27 = vclz %v4829_v10  ;;  %vm1437_vm2 = vcmp.lt.s32.totalorder %v1418_v36, 1 }
 0x151   : > { %v1436_v31 = vor.u32 %v1435_v52, %v1434_v7  ;;  %v6233_v45 = vadd.f32 %v558_v9, %v474_v30  ;;  %vm1439_vm3 = vcmp.lt.s32.totalorder %v1418_v36, 3  ;;  %vm1440_vm4 = vcmp.lt.s32.totalorder %v1418_v36, 4  ;;  %v434_v7 = vpop.permute.xlu1 %433 }
 0x152   : > { %7819 = vst [vmem:[#allocation25_spill] sm:$0xff] %v6231_v18  ;;  %v1365_v62 = vshll.u32 %v6231_v18, 30  ;;  %v1445_v14 = vsel %vm1437_vm2, %v1424_v24, %v1427_v50  ;;  %v1442_v8 = vsel %vm1440_vm4, %v1430_v55, 2102212464  ;;  %v1446_v5 = vsel %vm1440_vm4, %v1433_v0, 920167782 }
 0x153   : > { %v1449_v11 = vsel %vm1437_vm2, %v1427_v50, %v1430_v55  ;;  %v1450_v40 = vsel %vm1440_vm4, %v1436_v31, 1326507024  ;;  %v1421_v37 = vshrl.u32 %v7813_v3, %v1420_v34  ;;  %vm1438_vm6 = vcmp.lt.s32.totalorder %v1418_v36, 2 }
 0x154   : > { %v6238_v38 = vsub.s32 %v1362_v58, %v1365_v62  ;;  %v1447_v52 = vsel %vm1439_vm3, %v1430_v55, %v1446_v5  ;;  %v4830_v9 = vadd.s32 4294967294, %v1267_v27  ;;  %v1451_v10 = vsel %vm1439_vm3, %v1433_v0, %v1450_v40 }
 0x155   : > { %v1448_v30 = vsel %vm1438_vm6, %v1445_v14, %v1447_v52  ;;  %v559_v4 = vmul.f32 %v5827_v26, %v523_v41  ;;  %vm789_vm7 = vcmp.lt.s32.totalorder %v5839_v39, 0  ;;  %v1441_v31 = vsel %vm1437_vm2, %v1421_v37, %v1424_v24 }
 0x156   : > { %v1368_v57 = vsub.s32 0, %v6238_v38  ;;  %v1443_v58 = vsel %vm1439_vm3, %v1427_v50, %v1442_v8  ;;  %v1452_v34 = vsel %vm1438_vm6, %v1449_v11, %v1451_v10  ;;  %v7820_v0 = vsub.s32 32, %v6161_v6 }
 0x157   : > { %v6250_v62 = vmul.u32.u64.low %v1453_v35, %v1452_v34  ;;  %v6251_v55 = vmul.u32.u64.high %v1453_v35, %v1452_v34, %v6250_v62  ;;  %v6253_v27 = vmul.u32.u64.low %v1453_v35, %v1448_v30  ;;  %v6254_v14 = vmul.u32.u64.high %v1453_v35, %v1448_v30, %v6253_v27 }
 0x158   : > { %v1067_v41 = vshrl.u32 %v6204_v49, %v7820_v0  ;;  %v1173_v5 = vadd.s32 127, %v1172_v1  ;;  %v4833_v40 = vmin.u32 %v1368_v57, %v6238_v38  ;;  %v1511_v24 = vand.u32 2139095040, %v6233_v45 }
 0x159   : > { %v1066_v50 = vshll.u32 %v6062_v44, %v6161_v6  ;;  %v1152_v8 = vadd.s32 %v6047_v21, %v6052_v43  ;;  %v1444_v11 = vsel %vm1438_vm6, %v1441_v31, %v1443_v58  ;;  %v475_v37 = vmul.f32 %v5825_v25, %v434_v7 }
 0x15a   : > { %vm892_vm8 = vcmp.lt.s32.totalorder %v5849_v56, 0  ;;  %v1072_v52 = vor.u32 4788187, %v1071_v60  ;;  %vm4831_vm9 = vcmp.lt.s32.totalorder %v4830_v9, 0  ;;  %v1370_v49 = vclz %v4833_v40 }
 0x15b   : > { %v1512_v1 = vshrl.u32 %v1511_v24, 23  ;;  %v1170_v30 = vshrl.u32 %v1152_v8, %v1168_v63  ;;  %vm1462_vm10 = vc.u32 %v6251_v55, %v6253_v27  ;;  %v1463_v10 = vadd.s32 1, %v6254_v14 }
 0x15c   : > { %v6272_v44 = vadd.f32 %v559_v4, %v475_v37  ;;  %v1068_v6 = vor.u32 %v1067_v41, %v1066_v50  ;;  %v1174_v43 = vshll.u32 %v1173_v5, 23  ;;  %v1460_v21 = vmul.u32 %v1453_v35, %v1444_v11  ;;  %v527_v50 = vpop.permute.xlu0 %526 }
 0x15d   : > { %v4840_v36 = vadd.s32 4294967169, %v1512_v1  ;;  %v1169_v57 = vshll.u32 %v6117_v2, %v6210_v13  ;;  %v6276_v31 = vsel %vm4831_vm9, 0, %v4830_v9  ;;  %v1464_v60 = vsel %vm1462_vm10, %v1463_v10, %v6254_v14  ;;  %v3900_v1 = vld [vmem:[#allocation5 + $0x18] sm:$0xff] }
 0x15e   : > { %v7746_v63 = vand.u32 2147483647, %v6233_v45  ;;  %v4834_v58 = vadd.s32 4294967294, %v1370_v49  ;;  %v1465_v34 = vadd.s32 %v1464_v60, %v1460_v21  ;;  %v1614_v62 = vand.u32 2139095040, %v6272_v44  ;;  %5077 = vmatprep.subr.mxu0 %v3900_v1 }
 0x15f   : > { %v1518_v7 = vadd.s32 1, %v4840_v36  ;;  %v7821_v4 = vxor.u32 2147483648, %v6155_v47  ;;  %v974_v2 = vxor.u32 2147483648, %v6200_v20  ;;  %v1073_v13 = vand.u32 2147483647, %v1072_v52  ;;  %5078 = vmatpush3.msra.mxu0 %v3900_v1 }
 0x160   : > { %v6289_v9 = vor.u32 %v1170_v30, %v1169_v57  ;;  %v6291_v14 = vor.u32 4788187, %v1174_v43  ;;  %v1271_v0 = vsub.s32 32, %v6276_v31  ;;  %v1275_v41 = vsub.s32 4294967266, %v6276_v31 }
 0x161   : > { %v6286_v35 = vsel %vm789_vm7, %v7821_v4, %v6155_v47  ;;  %v1466_v5 = vadd.s32 536870912, %v1465_v34  ;;  %v1075_v40 = vcvt.s32.f32 %v1068_v6  ;;  %v1255_v24 = vadd.s32 %v6128_v59, %v6142_v53  ;;  %v3896_v53 = vld [vmem:[#allocation2 + $0x18] sm:$0xff] }
 0x162   : > { %7822 = vst [vmem:[#allocation26_spill] sm:$0xff] %v6286_v35  ;;  %v1515_v47 = vand.u32 8388607, %v7746_v63  ;;  %vm1519_vm11 = vcmp.gt.s32.totalorder %v1518_v7, 0  ;;  %vm4835_vm12 = vcmp.lt.s32.totalorder %v4834_v58, 0  ;;  %v1615_v37 = vshrl.u32 %v1614_v62, 23  ;;  %5109 = vmatprep.subr.mxu1 %v3896_v53 }
 0x163   : > { %v6299_v8 = vshrl.u32 %v1466_v5, 30  ;;  %v1520_v11 = vsel %vm1519_vm11, %v1518_v7, 0  ;;  %v6304_v52 = vsel %vm892_vm8, %v974_v2, %v6200_v20  ;;  %v6306_v49 = vmul.f32 %v1075_v40, %v1073_v13  ;;  %5110 = vmatpush3.msra.mxu1 %v3896_v53 }
 0x164   : > { %7824 = vst [vmem:[#allocation28_spill] sm:$0xff] %v6304_v52  ;;  %v1522_v59 = vand.u32 31, %v1520_v11  ;;  %v6310_v30 = vshrl.u32 %v1255_v24, %v1271_v0  ;;  %v6312_v10 = vadd.s32 127, %v1275_v41  ;;  %v6315_v6 = vmul.f32 %v5827_v26, %v527_v50  ;;  %v439_v0 = vpop.permute.xlu1 %438 }
 0x165   : > { %7823 = vst [vmem:[#allocation27_spill] sm:$0xff] %v6299_v8  ;;  %v6317_v43 = vsel %vm4835_vm12, 0, %v4834_v58  ;;  %v1516_v21 = vor.u32 8388608, %v1515_v47  ;;  %v1468_v57 = vshll.u32 %v6299_v8, 30  ;;  %v4844_v62 = vadd.s32 4294967169, %v1615_v37 }
 0x166   : > { %v1523_v36 = vsub.s32 32, %v1522_v59  ;;  %v1525_v60 = vshll.u32 %v7813_v3, %v1522_v59  ;;  %v1528_v7 = vshll.u32 %v7809_v46, %v1522_v59  ;;  %v1531_v13 = vshll.u32 %v7810_v33, %v1522_v59 }
 0x167   : > { %v6327_v41 = vshrl.u32 %v1520_v11, 5  ;;  %v1534_v5 = vshll.u32 %v7811_v19, %v1522_v59  ;;  %v1537_v24 = vshll.u32 %v7817_v15, %v1522_v59  ;;  %v1277_v20 = vshll.u32 %v6312_v10, 23 }
 0x168   : > { %v1526_v4 = vshrl.u32 %v7809_v46, %v1523_v36  ;;  %v1529_v2 = vshrl.u32 %v7810_v33, %v1523_v36  ;;  %v1532_v58 = vshrl.u32 %v7811_v19, %v1523_v36  ;;  %v1535_v40 = vshrl.u32 %v7817_v15, %v1523_v36 }
 0x169   : > { %v1538_v63 = vshrl.u32 %v7818_v22, %v1523_v36  ;;  %v6334_v8 = vsub.s32 %v1465_v34, %v1468_v57  ;;  %v476_v11 = vmul.f32 %v5825_v25, %v439_v0  ;;  %v6337_v56 = vshll.u32 %v1516_v21, 8  ;;  %v3898_v21 = vld [vmem:[#allocation5 + $0x8] sm:$0xff] }
 0x16a   : > { %v1527_v47 = vor.u32 %v1526_v4, %v1525_v60  ;;  %v1530_v50 = vor.u32 %v1529_v2, %v1528_v7  ;;  %v1533_v37 = vor.u32 %v1532_v58, %v1531_v13  ;;  %v1536_v18 = vor.u32 %v1535_v40, %v1534_v5  ;;  %v3899_v4 = vld [vmem:[#allocation5 + $0x10] sm:$0xff]  ;;  %v3894_v57 = vld [vmem:[#allocation2 + $0x8] sm:$0xff] }
 0x16b   : > { %v1539_v52 = vor.u32 %v1538_v63, %v1537_v24  ;;  %v7825_v59 = vand.u32 2147483647, %v6272_v44  ;;  %v1621_v7 = vadd.s32 1, %v4844_v62  ;;  %v3895_v2 = vld [vmem:[#allocation2 + $0x10] sm:$0xff]  ;;  %v1374_v13 = vsub.s32 32, %v6317_v43  ;;  %5079 = vmatprep.subr.mxu0 %v3899_v4  ;;  %v3897_v24 = vld [vmem:[#allocation5] sm:$0xff] }
 0x16c   : > { %vm1540_vm13 = vcmp.lt.s32.totalorder %v6327_v41, 1  ;;  %vm1542_vm14 = vcmp.lt.s32.totalorder %v6327_v41, 3  ;;  %vm1543_vm15 = vcmp.lt.s32.totalorder %v6327_v41, 4  ;;  %5111 = vmatprep.subr.mxu1 %v3895_v2  ;;  %v1524_v63 = vshrl.u32 %v7813_v3, %v1523_v36  ;;  %5080 = vmatpush3.msra.mxu0 %v3899_v4 }
 0x16d   : > { %v1618_v60 = vand.u32 8388607, %v7825_v59  ;;  %v1545_v34 = vsel %vm1543_vm15, %v1533_v37, 2102212464  ;;  %v1548_v1 = vsel %vm1540_vm13, %v1527_v47, %v1530_v50  ;;  %v1549_v53 = vsel %vm1543_vm15, %v1536_v18, 920167782  ;;  %5112 = vmatpush3.msra.mxu1 %v3895_v2  ;;  %5081 = vmatprep.subr.mxu0 %v3898_v21 }
 0x16e   : > { %v1471_v62 = vsub.s32 0, %v6334_v8  ;;  %vm1541_vm0 = vcmp.lt.s32.totalorder %v6327_v41, 2  ;;  %v1550_v36 = vsel %vm1542_vm14, %v1533_v37, %v1549_v53  ;;  %v1552_v58 = vsel %vm1540_vm13, %v1530_v50, %v1533_v37  ;;  %5113 = vmatprep.subr.mxu1 %v3894_v57  ;;  %5082 = vmatpush3.msra.mxu0 %v3898_v21  ;;  %v3893_v59 = vld [vmem:[#allocation2] sm:$0xff] }
 0x16f   : > { %v1544_v0 = vsel %vm1540_vm13, %v1524_v63, %v1527_v47  ;;  %v1551_v5 = vsel %vm1541_vm0, %v1548_v1, %v1550_v36  ;;  %v1553_v40 = vsel %vm1543_vm15, %v1539_v52, 1326507024  ;;  %vm1622_vm1 = vcmp.gt.s32.totalorder %v1621_v7, 0  ;;  %5114 = vmatpush3.msra.mxu1 %v3894_v57  ;;  %5083 = vmatprep.subr.mxu0 %v3897_v24 }
 0x170   : > { %v1546_v4 = vsel %vm1542_vm14, %v1530_v50, %v1545_v34  ;;  %v1554_v37 = vsel %vm1542_vm14, %v1536_v18, %v1553_v40  ;;  %v6369_v2 = vmul.u32.u64.low %v6337_v56, %v1551_v5  ;;  %v6370_v47 = vmul.u32.u64.high %v6337_v56, %v1551_v5, %v6369_v2  ;;  %5115 = vmatprep.subr.mxu1 %v3893_v59  ;;  %5084 = vmatpush3.msra.mxu0 %v3897_v24 }
 0x171   : > { %v1378_v52 = vsub.s32 4294967266, %v6317_v43  ;;  %v1555_v63 = vsel %vm1541_vm0, %v1552_v58, %v1554_v37  ;;  %v1619_v1 = vor.u32 8388608, %v1618_v60  ;;  %v1623_v53 = vsel %vm1622_vm1, %v1621_v7, 0  ;;  %5116 = vmatpush3.msra.mxu1 %v3893_v59 }
 0x172   : > { %v1272_v50 = vshll.u32 %v6180_v17, %v6276_v31  ;;  %v1358_v18 = vadd.s32 %v6184_v61, %v6189_v12  ;;  %v4837_v34 = vmin.u32 %v1471_v62, %v6334_v8  ;;  %v6382_v21 = vadd.f32 %v6315_v6, %v476_v11 }
 0x173   : > { %v1547_v57 = vsel %vm1541_vm0, %v1544_v0, %v1546_v4  ;;  %v6387_v36 = vmul.u32.u64.low %v6337_v56, %v1555_v63  ;;  %v6388_v60 = vmul.u32.u64.high %v6337_v56, %v1555_v63, %v6387_v36  ;;  %v1625_v7 = vand.u32 31, %v1623_v53 }
 0x174   : > { %v7826_v58 = vand.u32 2147483647, %v6291_v14  ;;  %v7827_v17 = vcvt.s32.f32 %v6289_v9  ;;  %v6397_v61 = vor.u32 %v6310_v30, %v1272_v50  ;;  %v6401_v12 = vor.u32 4788187, %v1277_v20 }
 0x175   : > { %v1566_v6 = vadd.s32 1, %v6370_v47  ;;  %v6404_v41 = vshrl.u32 %v1358_v18, %v1374_v13  ;;  %v6406_v11 = vadd.s32 127, %v1378_v52  ;;  %v1626_v62 = vsub.s32 32, %v1625_v7 }
 0x176   : > { %v6394_v31 = vmul.f32 %v7827_v17, %v7826_v58  ;;  %v6408_v0 = vshll.u32 %v1619_v1, 8  ;;  %v1473_v14 = vclz %v4837_v34  ;;  %v1563_v9 = vmul.u32 %v6337_v56, %v1547_v57 }
 0x177   : > { %v1624_v5 = vshrl.u32 %v1623_v53, 5  ;;  %v1717_v30 = vand.u32 2139095040, %v6382_v21  ;;  %vm1565_vm2 = vc.u32 %v6388_v60, %v6369_v2  ;;  %v1628_v10 = vshll.u32 %v7813_v3, %v1625_v7 }
 0x178   : > { %v1629_v20 = vshrl.u32 %v7809_v46, %v1626_v62  ;;  %v1631_v13 = vshll.u32 %v7809_v46, %v1625_v7  ;;  %v1567_v40 = vsel %vm1565_vm2, %v1566_v6, %v6370_v47  ;;  %v1632_v24 = vshrl.u32 %v7810_v33, %v1626_v62 }
 0x179   : > { %v1634_v59 = vshll.u32 %v7810_v33, %v1625_v7  ;;  %v1637_v56 = vshll.u32 %v7811_v19, %v1625_v7  ;;  %v1568_v4 = vadd.s32 %v1567_v40, %v1563_v9  ;;  %v1635_v52 = vshrl.u32 %v7811_v19, %v1626_v62 }
 0x17a   : > { %v1630_v37 = vor.u32 %v1629_v20, %v1628_v10  ;;  %v1638_v63 = vshrl.u32 %v7817_v15, %v1626_v62  ;;  %v1633_v1 = vor.u32 %v1632_v24, %v1631_v13  ;;  %v1640_v53 = vshll.u32 %v7817_v15, %v1625_v7 }
 0x17b   : > { %v1641_v50 = vshrl.u32 %v7818_v22, %v1626_v62  ;;  %v1718_v18 = vshrl.u32 %v1717_v30, 23  ;;  %v1569_v34 = vadd.s32 536870912, %v1568_v4  ;;  %v1636_v47 = vor.u32 %v1635_v52, %v1634_v59 }
 0x17c   : > { %v1639_v57 = vor.u32 %v1638_v63, %v1637_v56  ;;  %vm1643_vm3 = vcmp.lt.s32.totalorder %v1624_v5, 1  ;;  %v1627_v36 = vshrl.u32 %v7813_v3, %v1626_v62  ;;  %vm1645_vm4 = vcmp.lt.s32.totalorder %v1624_v5, 3 }
 0x17d   : > { %v1642_v58 = vor.u32 %v1641_v50, %v1640_v53  ;;  %vm1646_vm6 = vcmp.lt.s32.totalorder %v1624_v5, 4  ;;  %v6426_v17 = vshrl.u32 %v1569_v34, 30  ;;  %v1651_v9 = vsel %vm1643_vm3, %v1630_v37, %v1633_v1 }
 0x17e   : > { %v1648_v6 = vsel %vm1646_vm6, %v1636_v47, 2102212464  ;;  %v1652_v10 = vsel %vm1646_vm6, %v1639_v57, 920167782  ;;  %v4838_v20 = vadd.s32 4294967294, %v1473_v14  ;;  %vm1644_vm9 = vcmp.lt.s32.totalorder %v1624_v5, 2 }
 0x17f   : > { %7828 = vst [vmem:[#allocation29_spill] sm:$0xff] %v6426_v17  ;;  %v1653_v7 = vsel %vm1645_vm4, %v1636_v47, %v1652_v10  ;;  %v1655_v13 = vsel %vm1643_vm3, %v1633_v1, %v1636_v47  ;;  %v1571_v30 = vshll.u32 %v6426_v17, 30  ;;  %v1647_v40 = vsel %vm1643_vm3, %v1627_v36, %v1630_v37  ;;  %v531_v47 = vpop.permute.xlu0 %530  ;;  %v444_v10 = vpop.permute.xlu1 %443 }
 0x180   : > { %v1654_v24 = vsel %vm1644_vm9, %v1651_v9, %v1653_v7  ;;  %v1656_v59 = vsel %vm1646_vm6, %v1642_v58, 1326507024  ;;  %v1649_v56 = vsel %vm1645_vm4, %v1633_v1, %v1648_v6  ;;  %v1380_v53 = vshll.u32 %v6406_v11, 23 }
 0x181   : > { %v1657_v62 = vsel %vm1645_vm4, %v1639_v57, %v1656_v59  ;;  %v6431_v52 = vmul.u32.u64.low %v6408_v0, %v1654_v24  ;;  %v6432_v63 = vmul.u32.u64.high %v6408_v0, %v1654_v24, %v6431_v52  ;;  %v6436_v50 = vsub.s32 %v1568_v4, %v1571_v30 }
 0x182   : > { %v1658_v14 = vsel %vm1644_vm9, %v1655_v13, %v1657_v62  ;;  %v4848_v34 = vadd.s32 4294967169, %v1718_v18  ;;  %v1279_v37 = vand.u32 2147483647, %v6401_v12  ;;  %v1281_v36 = vcvt.s32.f32 %v6397_v61 }
 0x183   : > { %v6442_v1 = vmul.u32.u64.low %v6408_v0, %v1658_v14  ;;  %v6443_v57 = vmul.u32.u64.high %v6408_v0, %v1658_v14, %v6442_v1  ;;  %v1375_v58 = vshll.u32 %v6238_v38, %v6317_v43  ;;  %v1574_v11 = vsub.s32 0, %v6436_v50 }
 0x184   : > { %v1650_v4 = vsel %vm1644_vm9, %v1647_v40, %v1649_v56  ;;  %v1724_v6 = vadd.s32 1, %v4848_v34  ;;  %vm4839_vm10 = vcmp.lt.s32.totalorder %v4838_v20, 0  ;;  %v1669_v18 = vadd.s32 1, %v6432_v63 }
 0x185   : > { %v561_v9 = vmul.f32 %v5827_v26, %v531_v47  ;;  %v477_v12 = vmul.f32 %v5825_v25, %v444_v10  ;;  %v1377_v61 = vor.u32 %v6404_v41, %v1375_v58  ;;  %v1381_v7 = vor.u32 4788187, %v1380_v53 }
 0x186   : > { %v7753_v13 = vand.u32 2147483647, %v6382_v21  ;;  %vm1725_vm11 = vcmp.gt.s32.totalorder %v1724_v6, 0  ;;  %v4841_v38 = vmin.u32 %v1574_v11, %v6436_v50  ;;  %v1666_v43 = vmul.u32 %v6408_v0, %v1650_v4 }
 0x187   : > { %vm1668_vm12 = vc.u32 %v6443_v57, %v6431_v52  ;;  %v1726_v5 = vsel %vm1725_vm11, %v1724_v6, 0  ;;  %v6459_v40 = vsel %vm4839_vm10, 0, %v4838_v20  ;;  %v6463_v56 = vmul.f32 %v1281_v36, %v1279_v37 }
 0x188   : > { %v1670_v24 = vsel %vm1668_vm12, %v1669_v18, %v6432_v63  ;;  %v1728_v59 = vand.u32 31, %v1726_v5  ;;  %v6467_v62 = vadd.s32 %v6253_v27, %v6251_v55  ;;  %v1382_v53 = vand.u32 2147483647, %v1381_v7  ;;  %v535_v7 = vpop.permute.xlu0 %534 }
 0x189   : > { %v1671_v0 = vadd.s32 %v1670_v24, %v1666_v43  ;;  %v1384_v14 = vcvt.s32.f32 %v1377_v61  ;;  %v1721_v34 = vand.u32 8388607, %v7753_v13  ;;  %v1481_v20 = vsub.s32 4294967266, %v6459_v40 }
 0x18a   : > { %v1729_v47 = vsub.s32 32, %v1728_v59  ;;  %v1576_v10 = vclz %v4841_v38  ;;  %v6472_v1 = vadd.f32 %v561_v9, %v477_v12  ;;  %v1731_v37 = vshll.u32 %v7813_v3, %v1728_v59 }
 0x18b   : > { %v1672_v63 = vadd.s32 536870912, %v1671_v0  ;;  %v1734_v55 = vshll.u32 %v7809_v46, %v1728_v59  ;;  %v1740_v4 = vshll.u32 %v7811_v19, %v1728_v59  ;;  %v6483_v18 = vmul.f32 %v1384_v14, %v1382_v53 }
 0x18c   : > { %v1732_v36 = vshrl.u32 %v7809_v46, %v1729_v47  ;;  %v1735_v27 = vshrl.u32 %v7810_v33, %v1729_v47  ;;  %v1738_v11 = vshrl.u32 %v7811_v19, %v1729_v47  ;;  %v1741_v6 = vshrl.u32 %v7817_v15, %v1729_v47 }
 0x18d   : > { %v6478_v58 = vshrl.u32 %v1672_v63, 30  ;;  %v1722_v9 = vor.u32 8388608, %v1721_v34  ;;  %v1727_v12 = vshrl.u32 %v1726_v5, 5  ;;  %v1737_v61 = vshll.u32 %v7810_v33, %v1728_v59  ;;  %v449_v63 = vpop.permute.xlu1 %448 }
 0x18e   : > { %v1733_v38 = vor.u32 %v1732_v36, %v1731_v37  ;;  %v1736_v43 = vor.u32 %v1735_v27, %v1734_v55  ;;  %v1742_v24 = vor.u32 %v1741_v6, %v1740_v4  ;;  %v1820_v13 = vand.u32 2139095040, %v6472_v1 }
 0x18f   : > { %7829 = vst [vmem:[#allocation30_spill] sm:$0xff] %v6478_v58  ;;  %v1674_v41 = vshll.u32 %v6478_v58, 30  ;;  %v1739_v30 = vor.u32 %v1738_v11, %v1737_v61  ;;  %v1743_v17 = vshll.u32 %v7817_v15, %v1728_v59  ;;  %v1744_v35 = vshrl.u32 %v7818_v22, %v1729_v47 }
 0x190   : > { %v1477_v53 = vsub.s32 32, %v6459_v40  ;;  %v1482_v14 = vadd.s32 127, %v1481_v20  ;;  %v4842_v5 = vadd.s32 4294967294, %v1576_v10  ;;  %v562_v34 = vmul.f32 %v5827_v26, %v535_v7 }
 0x191   : > { %v1745_v39 = vor.u32 %v1744_v35, %v1743_v17  ;;  %vm1746_vm13 = vcmp.lt.s32.totalorder %v1727_v12, 1  ;;  %vm1749_vm14 = vcmp.lt.s32.totalorder %v1727_v12, 4  ;;  %v478_v37 = vmul.f32 %v5825_v25, %v449_v63 }
 0x192   : > { %vm995_vm15 = vcmp.lt.s32.totalorder %v5936_v23, 0  ;;  %vm1748_vm0 = vcmp.lt.s32.totalorder %v1727_v12, 3  ;;  %v1754_v36 = vsel %vm1746_vm13, %v1733_v38, %v1736_v43  ;;  %v1755_v59 = vsel %vm1749_vm14, %v1742_v24, 920167782 }
 0x193   : > { %v1821_v55 = vshrl.u32 %v1820_v13, 23  ;;  %vm7787_vm1 = vcmp.lt.s32.totalorder %v5948_v48, 0  ;;  %v6497_v27 = vsub.s32 %v1671_v0, %v1674_v41  ;;  %vm1747_vm2 = vcmp.lt.s32.totalorder %v1727_v12, 2 }
 0x194   : > { %v1756_v20 = vsel %vm1748_vm0, %v1739_v30, %v1755_v59  ;;  %v1762_v35 = vshll.u32 %v1722_v9, 8  ;;  %vm7785_vm3 = vcmp.lt.s32.totalorder %v6040_v16, 0  ;;  %vm4843_vm4 = vcmp.lt.s32.totalorder %v4842_v5, 0 }
 0x195   : > { %v1751_v17 = vsel %vm1749_vm14, %v1739_v30, 2102212464  ;;  %v1757_v10 = vsel %vm1747_vm2, %v1754_v36, %v1756_v20  ;;  %v1758_v11 = vsel %vm1746_vm13, %v1736_v43, %v1739_v30  ;;  %v1730_v4 = vshrl.u32 %v7813_v3, %v1729_v47 }
 0x196   : > { %v1759_v13 = vsel %vm1749_vm14, %v1745_v39, 1326507024  ;;  %v6506_v6 = vmul.u32.u64.low %v1762_v35, %v1757_v10  ;;  %v6507_v41 = vmul.u32.u64.high %v1762_v35, %v1757_v10, %v6506_v6  ;;  %v7758_v9 = vand.u32 2147483647, %v6472_v1 }
 0x197   : > { %v1760_v0 = vsel %vm1748_vm0, %v1742_v24, %v1759_v13  ;;  %v4852_v61 = vadd.s32 4294967169, %v1821_v55  ;;  %v6512_v7 = vadd.f32 %v562_v34, %v478_v37  ;;  %v1677_v63 = vsub.s32 0, %v6497_v27 }
 0x198   : > { %v1750_v36 = vsel %vm1746_vm13, %v1730_v4, %v1733_v38  ;;  %v1752_v30 = vsel %vm1748_vm0, %v1736_v43, %v1751_v17  ;;  %v1761_v47 = vsel %vm1747_vm2, %v1758_v11, %v1760_v0  ;;  %v6519_v39 = vsel %vm4843_vm4, 0, %v4842_v5 }
 0x199   : > { %7830 = vst [vmem:[#allocation31_spill] sm:$0xff] %v6512_v7  ;;  %v6521_v59 = vmul.u32.u64.low %v1762_v35, %v1761_v47  ;;  %v6522_v20 = vmul.u32.u64.high %v1762_v35, %v1761_v47, %v6521_v59  ;;  %v1827_v24 = vadd.s32 1, %v4852_v61  ;;  %v1283_v10 = vxor.u32 2147483648, %v6463_v56 }
 0x19a   : > { %vm7784_vm6 = vcmp.lt.s32.totalorder %v6087_v28, 0  ;;  %v1386_v34 = vxor.u32 2147483648, %v6483_v18  ;;  %v1479_v37 = vshrl.u32 %v6467_v62, %v1477_v53  ;;  %v1483_v38 = vshll.u32 %v1482_v14, 23 }
 0x19b   : > { %v1753_v43 = vsel %vm1747_vm2, %v1750_v36, %v1752_v30  ;;  %v1772_v55 = vadd.s32 1, %v6507_v41  ;;  %vm1828_vm9 = vcmp.gt.s32.totalorder %v1827_v24, 0  ;;  %v7831_v5 = vxor.u32 2147483648, %v6306_v49 }
 0x19c   : > { %v1584_v11 = vsub.s32 4294967266, %v6519_v39  ;;  %v4845_v4 = vmin.u32 %v1677_v63, %v6497_v27  ;;  %v1829_v13 = vsel %vm1828_vm9, %v1827_v24, 0  ;;  %v7833_v62 = vxor.u32 2147483648, %v6394_v31 }
 0x19d   : > { %v6535_v17 = vsel %vm995_vm15, %v7831_v5, %v6306_v49  ;;  %v1478_v53 = vshll.u32 %v6334_v8, %v6459_v40  ;;  %v1824_v14 = vand.u32 8388607, %v7758_v9  ;;  %v1923_v49 = vand.u32 2139095040, %v6512_v7 }
 0x19e   : > { %7832 = vst [vmem:[#allocation32_spill] sm:$0xff] %v6535_v17  ;;  %v6544_v12 = vsel %vm7787_vm1, %v7833_v62, %v6394_v31  ;;  %v6554_v0 = vsel %vm7785_vm3, %v1283_v10, %v6463_v56  ;;  %v1769_v61 = vmul.u32 %v1762_v35, %v1753_v43  ;;  %vm1771_vm10 = vc.u32 %v6522_v20, %v6506_v6 }
 0x19f   : > { %7834 = vst [vmem:[#allocation33_spill] sm:$0xff] %v6544_v12  ;;  %7835 = vst [vmem:[#allocation34_spill] sm:$0xff] %v6554_v0  ;;  %v1831_v63 = vand.u32 31, %v1829_v13  ;;  %v6561_v31 = vsel %vm7784_vm6, %v1386_v34, %v6483_v18  ;;  %v6563_v8 = vor.u32 %v1479_v37, %v1478_v53  ;;  %v6565_v40 = vor.u32 4788187, %v1483_v38 }
 0x1a0   : > { %7836 = vst [vmem:[#allocation35_spill] sm:$0xff] %v6561_v31  ;;  %v1773_v36 = vsel %vm1771_vm10, %v1772_v55, %v6507_v41  ;;  %v6568_v30 = vadd.s32 127, %v1584_v11  ;;  %v1679_v56 = vclz %v4845_v4  ;;  %v1825_v59 = vor.u32 8388608, %v1824_v14 }
 0x1a1   : > { %v1774_v47 = vadd.s32 %v1773_v36, %v1769_v61  ;;  %v1832_v35 = vsub.s32 32, %v1831_v63  ;;  %v1830_v24 = vshrl.u32 %v1829_v13, 5  ;;  %v1834_v10 = vshll.u32 %v7813_v3, %v1831_v63 }
 0x1a2   : > { %v1924_v43 = vshrl.u32 %v1923_v49, 23  ;;  %v1837_v34 = vshll.u32 %v7809_v46, %v1831_v63  ;;  %v1840_v38 = vshll.u32 %v7810_v33, %v1831_v63  ;;  %v1843_v55 = vshll.u32 %v7811_v19, %v1831_v63 }
 0x1a3   : > { %v1775_v5 = vadd.s32 536870912, %v1774_v47  ;;  %v1835_v18 = vshrl.u32 %v7809_v46, %v1832_v35  ;;  %v1838_v37 = vshrl.u32 %v7810_v33, %v1832_v35  ;;  %v1841_v41 = vshrl.u32 %v7811_v19, %v1832_v35 }
 0x1a4   : > { %v1844_v11 = vshrl.u32 %v7817_v15, %v1832_v35  ;;  %v4846_v4 = vadd.s32 4294967294, %v1679_v56  ;;  %v1846_v61 = vshll.u32 %v7817_v15, %v1831_v63  ;;  %v1847_v36 = vshrl.u32 %v7818_v22, %v1832_v35 }
 0x1a5   : > { %v6578_v13 = vshrl.u32 %v1775_v5, 30  ;;  %v1836_v62 = vor.u32 %v1835_v18, %v1834_v10  ;;  %v1839_v53 = vor.u32 %v1838_v37, %v1837_v34  ;;  %v1842_v14 = vor.u32 %v1841_v41, %v1840_v38 }
 0x1a6   : > { %v1845_v49 = vor.u32 %v1844_v11, %v1843_v55  ;;  %v1833_v58 = vshrl.u32 %v7813_v3, %v1832_v35  ;;  %v1865_v31 = vshll.u32 %v1825_v59, 8  ;;  %v4856_v28 = vadd.s32 4294967169, %v1924_v43 }
 0x1a7   : > { %7837 = vst [vmem:[#allocation36_spill] sm:$0xff] %v6578_v13  ;;  %v1777_v9 = vshll.u32 %v6578_v13, 30  ;;  %v1848_v0 = vor.u32 %v1847_v36, %v1846_v61  ;;  %vm1849_vm11 = vcmp.lt.s32.totalorder %v1830_v24, 1  ;;  %vm1851_vm12 = vcmp.lt.s32.totalorder %v1830_v24, 3 }
 0x1a8   : > { %vm1852_vm13 = vcmp.lt.s32.totalorder %v1830_v24, 4  ;;  %v1857_v5 = vsel %vm1849_vm11, %v1836_v62, %v1839_v53  ;;  %vm4847_vm14 = vcmp.lt.s32.totalorder %v4846_v4, 0  ;;  %vm1850_vm0 = vcmp.lt.s32.totalorder %v1830_v24, 2 }
 0x1a9   : > { %v6584_v56 = vsub.s32 %v1774_v47, %v1777_v9  ;;  %v1854_v10 = vsel %vm1852_vm13, %v1842_v14, 2102212464  ;;  %v1858_v18 = vsel %vm1852_vm13, %v1845_v49, 920167782  ;;  %v1861_v34 = vsel %vm1849_vm11, %v1839_v53, %v1842_v14 }
 0x1aa   : > { %v1859_v63 = vsel %vm1851_vm12, %v1842_v14, %v1858_v18  ;;  %v1853_v38 = vsel %vm1849_vm11, %v1833_v58, %v1836_v62  ;;  %v1862_v59 = vsel %vm1852_vm13, %v1848_v0, 1326507024  ;;  %v1855_v43 = vsel %vm1851_vm12, %v1839_v53, %v1854_v10 }
 0x1ab   : > { %v1780_v37 = vsub.s32 0, %v6584_v56  ;;  %v1860_v35 = vsel %vm1850_vm0, %v1857_v5, %v1859_v63  ;;  %v1863_v41 = vsel %vm1851_vm12, %v1845_v49, %v1862_v59  ;;  %v1485_v9 = vand.u32 2147483647, %v6565_v40 }
 0x1ac   : > { %v6588_v55 = vmul.u32.u64.low %v1865_v31, %v1860_v35  ;;  %v6589_v11 = vmul.u32.u64.high %v1865_v31, %v1860_v35, %v6588_v55  ;;  %v1864_v61 = vsel %vm1850_vm0, %v1861_v34, %v1863_v41  ;;  %v1930_v36 = vadd.s32 1, %v4856_v28  ;;  %v454_v35 = vpop.permute.xlu1 %453 }
 0x1ad   : > { %v4849_v47 = vmin.u32 %v1780_v37, %v6584_v56  ;;  %v1487_v14 = vcvt.s32.f32 %v6563_v8  ;;  %v6597_v58 = vsel %vm4847_vm14, 0, %v4846_v4  ;;  %v1580_v53 = vsub.s32 32, %v6519_v39  ;;  %v539_v37 = vpop.permute.xlu0 %538 }
 0x1ae   : > { %v6599_v62 = vmul.u32.u64.low %v1865_v31, %v1864_v61  ;;  %v6600_v0 = vmul.u32.u64.high %v1865_v31, %v1864_v61, %v6599_v62  ;;  %v1586_v49 = vshll.u32 %v6568_v30, 23  ;;  %v1856_v10 = vsel %vm1850_vm0, %v1853_v38, %v1855_v43 }
 0x1af   : > { %vm1931_vm2 = vcmp.gt.s32.totalorder %v1930_v36, 0  ;;  %v1782_v40 = vclz %v4849_v47  ;;  %v1875_v5 = vadd.s32 1, %v6589_v11  ;;  %v7763_v28 = vand.u32 2147483647, %v6512_v7 }
 0x1b0   : > { %v1932_v18 = vsel %vm1931_vm2, %v1930_v36, 0  ;;  %v6607_v8 = vmul.f32 %v1487_v14, %v1485_v9  ;;  %v1564_v4 = vadd.s32 %v6369_v2, %v6388_v60  ;;  %v1687_v63 = vsub.s32 4294967266, %v6597_v58 }
 0x1b1   : > { %v1934_v34 = vand.u32 31, %v1932_v18  ;;  %v6616_v24 = vadd.s32 %v6431_v52, %v6443_v57  ;;  %v1872_v38 = vmul.u32 %v1865_v31, %v1856_v10  ;;  %vm1874_vm4 = vc.u32 %v6600_v0, %v6588_v55 }
 0x1b2   : > { %v1582_v59 = vshrl.u32 %v1564_v4, %v1580_v53  ;;  %v6620_v43 = vor.u32 4788187, %v1586_v49  ;;  %v1876_v2 = vsel %vm1874_vm4, %v1875_v5, %v6589_v11  ;;  %v4850_v41 = vadd.s32 4294967294, %v1782_v40  ;;  %v543_v4 = vpop.permute.xlu0 %542 }
 0x1b3   : > { %v1935_v60 = vsub.s32 32, %v1934_v34  ;;  %v1877_v9 = vadd.s32 %v1876_v2, %v1872_v38  ;;  %v1927_v47 = vand.u32 8388607, %v7763_v28  ;;  %v563_v61 = vmul.f32 %v5827_v26, %v539_v37 }
 0x1b4   : > { %v1683_v52 = vsub.s32 32, %v6597_v58  ;;  %v6627_v57 = vadd.s32 127, %v1687_v63  ;;  %v1937_v31 = vshll.u32 %v7813_v3, %v1934_v34  ;;  %v479_v36 = vmul.f32 %v5825_v25, %v454_v35  ;;  %v459_v35 = vpop.permute.xlu1 %458 }
 0x1b5   : > { %v1878_v14 = vadd.s32 536870912, %v1877_v9  ;;  %v1938_v62 = vshrl.u32 %v7809_v46, %v1935_v60  ;;  %v1941_v11 = vshrl.u32 %v7810_v33, %v1935_v60  ;;  %v1944_v53 = vshrl.u32 %v7811_v19, %v1935_v60 }
 0x1b6   : > { %v1940_v49 = vshll.u32 %v7809_v46, %v1934_v34  ;;  %v1943_v10 = vshll.u32 %v7810_v33, %v1934_v34  ;;  %v1946_v40 = vshll.u32 %v7811_v19, %v1934_v34  ;;  %v1947_v5 = vshrl.u32 %v7817_v15, %v1935_v60 }
 0x1b7   : > { %vm4851_vm9 = vcmp.lt.s32.totalorder %v4850_v41, 0  ;;  %v6638_v63 = vshrl.u32 %v1878_v14, 30  ;;  %v1928_v37 = vor.u32 8388608, %v1927_v47  ;;  %v1933_v38 = vshrl.u32 %v1932_v18, 5 }
 0x1b8   : > { %v1939_v2 = vor.u32 %v1938_v62, %v1937_v31  ;;  %v1942_v28 = vor.u32 %v1941_v11, %v1940_v49  ;;  %v1945_v30 = vor.u32 %v1944_v53, %v1943_v10  ;;  %v1948_v13 = vor.u32 %v1947_v5, %v1946_v40 }
 0x1b9   : > { %v1880_v16 = vshll.u32 %v6638_v63, 30  ;;  %v1949_v12 = vshll.u32 %v7817_v15, %v1934_v34  ;;  %v1950_v48 = vshrl.u32 %v7818_v22, %v1935_v60  ;;  %v564_v17 = vmul.f32 %v5827_v26, %v543_v4 }
 0x1ba   : > { %v6644_v23 = vsel %vm4851_vm9, 0, %v4850_v41  ;;  %v1936_v14 = vshrl.u32 %v7813_v3, %v1935_v60  ;;  %v6647_v7 = vadd.f32 %v563_v61, %v479_v36  ;;  %v480_v18 = vmul.f32 %v5825_v25, %v459_v35 }
 0x1bb   : > { %v1951_v47 = vor.u32 %v1950_v48, %v1949_v12  ;;  %vm1952_vm10 = vcmp.lt.s32.totalorder %v1933_v38, 1  ;;  %vm1954_vm11 = vcmp.lt.s32.totalorder %v1933_v38, 3  ;;  %vm1955_vm12 = vcmp.lt.s32.totalorder %v1933_v38, 4 }
 0x1bc   : > { %v6650_v31 = vsub.s32 %v1877_v9, %v1880_v16  ;;  %v1957_v62 = vsel %vm1955_vm12, %v1945_v30, 2102212464  ;;  %v1960_v34 = vsel %vm1952_vm10, %v1939_v2, %v1942_v28  ;;  %v1961_v11 = vsel %vm1955_vm12, %v1948_v13, 920167782 }
 0x1bd   : > { %vm7783_vm13 = vcmp.lt.s32.totalorder %v6112_v54, 0  ;;  %vm1953_vm14 = vcmp.lt.s32.totalorder %v1933_v38, 2  ;;  %v1962_v26 = vsel %vm1954_vm11, %v1945_v30, %v1961_v11  ;;  %v1964_v41 = vsel %vm1952_vm10, %v1942_v28, %v1945_v30 }
 0x1be   : > { %v1968_v60 = vshll.u32 %v1928_v37, 8  ;;  %v1790_v61 = vsub.s32 4294967266, %v6644_v23  ;;  %v1956_v36 = vsel %vm1952_vm10, %v1936_v14, %v1939_v2  ;;  %v1963_v25 = vsel %vm1953_vm14, %v1960_v34, %v1962_v26 }
 0x1bf   : > { %v1965_v48 = vsel %vm1955_vm12, %v1951_v47, 1326507024  ;;  %v1958_v12 = vsel %vm1954_vm11, %v1942_v28, %v1957_v62  ;;  %v1883_v49 = vsub.s32 0, %v6650_v31  ;;  %v2026_v30 = vand.u32 2139095040, %v6647_v7 }
 0x1c0   : > { %v1966_v16 = vsel %vm1954_vm11, %v1948_v13, %v1965_v48  ;;  %v6658_v9 = vmul.u32.u64.low %v1968_v60, %v1963_v25  ;;  %v6659_v53 = vmul.u32.u64.high %v1968_v60, %v1963_v25, %v6658_v9  ;;  %v6665_v40 = vadd.f32 %v564_v17, %v480_v18 }
 0x1c1   : > { %v1967_v10 = vsel %vm1953_vm14, %v1964_v41, %v1966_v16  ;;  %v7838_v5 = vshll.u32 %v6436_v50, %v6519_v39  ;;  %v1685_v28 = vshrl.u32 %v6616_v24, %v1683_v52  ;;  %v1489_v35 = vxor.u32 2147483648, %v6607_v8 }
 0x1c2   : > { %v6671_v37 = vmul.u32.u64.low %v1968_v60, %v1967_v10  ;;  %v6672_v13 = vmul.u32.u64.high %v1968_v60, %v1967_v10, %v6671_v37  ;;  %v1689_v2 = vshll.u32 %v6627_v57, 23  ;;  %v1959_v14 = vsel %vm1953_vm14, %v1956_v36, %v1958_v12 }
 0x1c3   : > { %v1583_v4 = vor.u32 %v1582_v59, %v7838_v5  ;;  %v2027_v47 = vshrl.u32 %v2026_v30, 23  ;;  %v1588_v62 = vand.u32 2147483647, %v6620_v43  ;;  %v1684_v17 = vshll.u32 %v6497_v27, %v6597_v58 }
 0x1c4   : > { %v1791_v18 = vadd.s32 127, %v1790_v61  ;;  %v1978_v50 = vadd.s32 1, %v6659_v53  ;;  %v4853_v39 = vmin.u32 %v1883_v49, %v6650_v31  ;;  %v7775_v24 = vand.u32 2147483647, %v6647_v7 }
 0x1c5   : > { %v4860_v59 = vadd.s32 4294967169, %v2027_v47  ;;  %v2129_v52 = vand.u32 2139095040, %v6665_v40  ;;  %v1590_v34 = vcvt.s32.f32 %v1583_v4  ;;  %v6684_v57 = vor.u32 %v1685_v28, %v1684_v17 }
 0x1c6   : > { %v1975_v38 = vmul.u32 %v1968_v60, %v1959_v14  ;;  %vm1977_vm0 = vc.u32 %v6672_v13, %v6658_v9  ;;  %v6691_v27 = vsel %vm7783_vm13, %v1489_v35, %v6607_v8  ;;  %v6693_v58 = vor.u32 4788187, %v1689_v2 }
 0x1c7   : > { %v1979_v43 = vsel %vm1977_vm0, %v1978_v50, %v6659_v53  ;;  %v2033_v11 = vadd.s32 1, %v4860_v59  ;;  %v6696_v26 = vmul.f32 %v1590_v34, %v1588_v62  ;;  %v1786_v41 = vsub.s32 32, %v6644_v23 }
 0x1c8   : > { %v1792_v61 = vshll.u32 %v1791_v18, 23  ;;  %v1980_v36 = vadd.s32 %v1979_v43, %v1975_v38  ;;  %v1885_v60 = vclz %v4853_v39  ;;  %v2030_v25 = vand.u32 8388607, %v7775_v24 }
 0x1c9   : > { %vm2034_vm2 = vcmp.gt.s32.totalorder %v2033_v11, 0  ;;  %v2130_v48 = vshrl.u32 %v2129_v52, 23  ;;  %v1693_v8 = vcvt.s32.f32 %v6684_v57  ;;  %v1770_v12 = vadd.s32 %v6506_v6, %v6522_v20 }
 0x1ca   : > { %v1981_v16 = vadd.s32 536870912, %v1980_v36  ;;  %v2035_v53 = vsel %vm2034_vm2, %v2033_v11, 0  ;;  %v1691_v49 = vand.u32 2147483647, %v6693_v58  ;;  %v1787_v10 = vshll.u32 %v6584_v56, %v6644_v23 }
 0x1cb   : > { %v2037_v30 = vand.u32 31, %v2035_v53  ;;  %v7776_v5 = vand.u32 2147483647, %v5938_v29  ;;  %v1788_v4 = vshrl.u32 %v1770_v12, %v1786_v41  ;;  %v6708_v28 = vor.u32 4788187, %v1792_v61 }
 0x1cc   : > { %v6710_v37 = vshrl.u32 %v1981_v16, 30  ;;  %v7774_v35 = vand.u32 2147483647, %v6665_v40  ;;  %v4854_v2 = vadd.s32 4294967294, %v1885_v60  ;;  %v2031_v14 = vor.u32 8388608, %v2030_v25 }
 0x1cd   : > { %v2038_v6 = vsub.s32 32, %v2037_v30  ;;  %v4864_v20 = vadd.s32 4294967169, %v2130_v48  ;;  %v2036_v62 = vshrl.u32 %v2035_v53, 5  ;;  %v2040_v17 = vshll.u32 %v7813_v3, %v2037_v30 }
 0x1ce   : > { %v1983_v47 = vshll.u32 %v6710_v37, 30  ;;  %v2043_v23 = vshll.u32 %v7809_v46, %v2037_v30  ;;  %v2046_v50 = vshll.u32 %v7810_v33, %v2037_v30  ;;  %v2049_v52 = vshll.u32 %v7811_v19, %v2037_v30 }
 0x1cf   : > { %v2041_v56 = vshrl.u32 %v7809_v46, %v2038_v6  ;;  %v2044_v18 = vshrl.u32 %v7810_v33, %v2038_v6  ;;  %v2047_v39 = vshrl.u32 %v7811_v19, %v2038_v6  ;;  %v2050_v34 = vshrl.u32 %v7817_v15, %v2038_v6 }
 0x1d0   : > { %v6720_v59 = vsub.s32 %v1980_v36, %v1983_v47  ;;  %v2052_v38 = vshll.u32 %v7817_v15, %v2037_v30  ;;  %v2053_v61 = vshrl.u32 %v7818_v22, %v2038_v6  ;;  %v1789_v60 = vor.u32 %v1788_v4, %v1787_v10 }
 0x1d1   : > { %v2042_v43 = vor.u32 %v2041_v56, %v2040_v17  ;;  %v2045_v11 = vor.u32 %v2044_v18, %v2043_v23  ;;  %v2048_v41 = vor.u32 %v2047_v39, %v2046_v50  ;;  %v1794_v25 = vand.u32 2147483647, %v6708_v28 }
 0x1d2   : > { %v1986_v48 = vsub.s32 0, %v6720_v59  ;;  %v2051_v12 = vor.u32 %v2050_v34, %v2049_v52  ;;  %v2054_v16 = vor.u32 %v2053_v61, %v2052_v38  ;;  %v2071_v36 = vshll.u32 %v2031_v14, 8 }
 0x1d3   : > { %v2133_v53 = vand.u32 8388607, %v7774_v35  ;;  %v2136_v47 = vadd.s32 1, %v4864_v20  ;;  %vm4855_vm4 = vcmp.lt.s32.totalorder %v4854_v2, 0  ;;  %v2039_v30 = vshrl.u32 %v7813_v3, %v2038_v6 }
 0x1d4   : > { %vm2055_vm9 = vcmp.lt.s32.totalorder %v2036_v62, 1  ;;  %vm2058_vm10 = vcmp.lt.s32.totalorder %v2036_v62, 4  ;;  %vm2057_vm11 = vcmp.lt.s32.totalorder %v2036_v62, 3  ;;  %v4857_v4 = vmin.u32 %v1986_v48, %v6720_v59 }
 0x1d5   : > { %v2060_v17 = vsel %vm2058_vm10, %v2048_v41, 2102212464  ;;  %v2063_v23 = vsel %vm2055_vm9, %v2042_v43, %v2045_v11  ;;  %v2064_v10 = vsel %vm2058_vm10, %v2051_v12, 920167782  ;;  %vm2056_vm12 = vcmp.lt.s32.totalorder %v2036_v62, 2 }
 0x1d6   : > { %v2065_v28 = vsel %vm2057_vm11, %v2048_v41, %v2064_v10  ;;  %v2067_v56 = vsel %vm2055_vm9, %v2045_v11, %v2048_v41  ;;  %v2059_v18 = vsel %vm2055_vm9, %v2039_v30, %v2042_v43  ;;  %v2068_v50 = vsel %vm2058_vm10, %v2054_v16, 1326507024 }
 0x1d7   : > { %v2066_v14 = vsel %vm2056_vm12, %v2063_v23, %v2065_v28  ;;  %vm2137_vm14 = vcmp.gt.s32.totalorder %v2136_v47, 0  ;;  %v2061_v20 = vsel %vm2057_vm11, %v2045_v11, %v2060_v17  ;;  %v2069_v39 = vsel %vm2057_vm11, %v2051_v12, %v2068_v50 }
 0x1d8   : > { %v6733_v52 = vmul.u32.u64.low %v2071_v36, %v2066_v14  ;;  %v6734_v6 = vmul.u32.u64.high %v2071_v36, %v2066_v14, %v6733_v52  ;;  %v6738_v34 = vsel %vm4855_vm4, 0, %v4854_v2  ;;  %v2070_v38 = vsel %vm2056_vm12, %v2067_v56, %v2069_v39 }
 0x1d9   : > { %v2134_v61 = vor.u32 8388608, %v2133_v53  ;;  %v2138_v48 = vsel %vm2137_vm14, %v2136_v47, 0  ;;  %v1796_v10 = vcvt.s32.f32 %v1789_v60  ;;  %v1988_v41 = vclz %v4857_v4 }
 0x1da   : > { %v6741_v43 = vmul.u32.u64.low %v2071_v36, %v2070_v38  ;;  %v6742_v30 = vmul.u32.u64.high %v2071_v36, %v2070_v38, %v6741_v43  ;;  %v6749_v11 = vmul.f32 %v1693_v8, %v1691_v49  ;;  %v2062_v2 = vsel %vm2056_vm12, %v2059_v18, %v2061_v20 }
 0x1db   : > { %v2140_v12 = vand.u32 31, %v2138_v48  ;;  %v6752_v17 = vmul.f32 %v1796_v10, %v1794_v25  ;;  %v6756_v60 = vadd.s32 %v6588_v55, %v6600_v0  ;;  %v1889_v53 = vsub.s32 32, %v6738_v34 }
 0x1dc   : > { %v2081_v47 = vadd.s32 1, %v6734_v6  ;;  %v1893_v23 = vsub.s32 4294967266, %v6738_v34  ;;  %v6761_v4 = vshll.u32 %v2134_v61, 8  ;;  %v6765_v57 = vand.u32 8388607, %v7776_v5 }
 0x1dd   : > { %v2141_v58 = vsub.s32 32, %v2140_v12  ;;  %v4858_v8 = vadd.s32 4294967294, %v1988_v41  ;;  %v2078_v49 = vmul.u32 %v2071_v36, %v2062_v2  ;;  %vm2080_vm0 = vc.u32 %v6742_v30, %v6733_v52 }
 0x1de   : > { %v2143_v55 = vshll.u32 %v7813_v3, %v2140_v12  ;;  %v2082_v0 = vsel %vm2080_vm0, %v2081_v47, %v6734_v6  ;;  %v2146_v25 = vshll.u32 %v7809_v46, %v2140_v12  ;;  %v2139_v18 = vshrl.u32 %v2138_v48, 5 }
 0x1df   : > { %v2144_v62 = vshrl.u32 %v7809_v46, %v2141_v58  ;;  %v2147_v28 = vshrl.u32 %v7810_v33, %v2141_v58  ;;  %v2083_v56 = vadd.s32 %v2082_v0, %v2078_v49  ;;  %v2149_v14 = vshll.u32 %v7810_v33, %v2140_v12 }
 0x1e0   : > { %v2150_v50 = vshrl.u32 %v7811_v19, %v2141_v58  ;;  %v2152_v39 = vshll.u32 %v7811_v19, %v2140_v12  ;;  %v2153_v38 = vshrl.u32 %v7817_v15, %v2141_v58  ;;  %v6778_v61 = vadd.s32 127, %v1893_v23 }
 0x1e1   : > { %v2145_v36 = vor.u32 %v2144_v62, %v2143_v55  ;;  %v2148_v20 = vor.u32 %v2147_v28, %v2146_v25  ;;  %v2084_v6 = vadd.s32 536870912, %v2083_v56  ;;  %v589_v41 = vor.u32 8388608, %v6765_v57 }
 0x1e2   : > { %v2151_v10 = vor.u32 %v2150_v50, %v2149_v14  ;;  %v2154_v43 = vor.u32 %v2153_v38, %v2152_v39  ;;  %v2155_v2 = vshll.u32 %v7817_v15, %v2140_v12  ;;  %v2156_v48 = vshrl.u32 %v7818_v22, %v2141_v58 }
 0x1e3   : > { %v598_v47 = vshll.u32 %v7813_v3, %v6078_v42  ;;  %vm4859_vm2 = vcmp.lt.s32.totalorder %v4858_v8, 0  ;;  %v6785_v49 = vshrl.u32 %v2084_v6, 30  ;;  %vm2158_vm4 = vcmp.lt.s32.totalorder %v2139_v18, 1 }
 0x1e4   : > { %v599_v23 = vshrl.u32 %v7809_v46, %v6134_v32  ;;  %v2142_v55 = vshrl.u32 %v7813_v3, %v2141_v58  ;;  %v2157_v0 = vor.u32 %v2156_v48, %v2155_v2  ;;  %vm2161_vm9 = vcmp.lt.s32.totalorder %v2139_v18, 4 }
 0x1e5   : > { %v2166_v62 = vsel %vm2158_vm4, %v2145_v36, %v2148_v20  ;;  %v2086_v25 = vshll.u32 %v6785_v49, 30  ;;  %vm2160_vm10 = vcmp.lt.s32.totalorder %v2139_v18, 3  ;;  %v2163_v12 = vsel %vm2161_vm9, %v2151_v10, 2102212464 }
 0x1e6   : > { %v2167_v28 = vsel %vm2161_vm9, %v2154_v43, 920167782  ;;  %vm2159_vm11 = vcmp.lt.s32.totalorder %v2139_v18, 2  ;;  %v2170_v50 = vsel %vm2158_vm4, %v2148_v20, %v2151_v10  ;;  %v2171_v39 = vsel %vm2161_vm9, %v2157_v0, 1326507024 }
 0x1e7   : > { %v2168_v14 = vsel %vm2160_vm10, %v2151_v10, %v2167_v28  ;;  %v6791_v38 = vsub.s32 %v2083_v56, %v2086_v25  ;;  %v2162_v6 = vsel %vm2158_vm4, %v2142_v55, %v2145_v36  ;;  %v2164_v35 = vsel %vm2160_vm10, %v2148_v20, %v2163_v12 }
 0x1e8   : > { %v2169_v24 = vsel %vm2159_vm11, %v2166_v62, %v2168_v14  ;;  %v6794_v5 = vsel %vm4859_vm2, 0, %v4858_v8  ;;  %v2172_v58 = vsel %vm2160_vm10, %v2154_v43, %v2171_v39  ;;  %v601_v10 = vshll.u32 %v7809_v46, %v6078_v42 }
 0x1e9   : > { %v6797_v2 = vmul.u32.u64.low %v6761_v4, %v2169_v24  ;;  %v6798_v48 = vmul.u32.u64.high %v6761_v4, %v2169_v24, %v6797_v2  ;;  %v2089_v16 = vsub.s32 0, %v6791_v38  ;;  %v2173_v18 = vsel %vm2159_vm11, %v2170_v50, %v2172_v58 }
 0x1ea   : > { %v602_v56 = vshrl.u32 %v7810_v33, %v6134_v32  ;;  %v2165_v36 = vsel %vm2159_vm11, %v2162_v6, %v2164_v35  ;;  %v6807_v20 = vmul.u32.u64.low %v6761_v4, %v2173_v18  ;;  %v6808_v8 = vmul.u32.u64.high %v6761_v4, %v2173_v18, %v6807_v20 }
 0x1eb   : > { %v605_v43 = vshrl.u32 %v7811_v19, %v6134_v32  ;;  %v4861_v24 = vmin.u32 %v2089_v16, %v6791_v38  ;;  %v604_v55 = vshll.u32 %v7810_v33, %v6078_v42  ;;  %v607_v0 = vshll.u32 %v7811_v19, %v6078_v42 }
 0x1ec   : > { %v608_v46 = vshrl.u32 %v7817_v15, %v6134_v32  ;;  %v2184_v35 = vadd.s32 1, %v6798_v48  ;;  %v600_v62 = vor.u32 %v599_v23, %v598_v47  ;;  %v603_v25 = vor.u32 %v602_v56, %v601_v10 }
 0x1ed   : > { %v611_v12 = vshrl.u32 %v7818_v22, %v6134_v32  ;;  %v2091_v28 = vclz %v4861_v24  ;;  %v606_v14 = vor.u32 %v605_v43, %v604_v55  ;;  %v610_v16 = vshll.u32 %v7817_v15, %v6078_v42 }
 0x1ee   : > { %v609_v50 = vor.u32 %v608_v46, %v607_v0  ;;  %v1895_v33 = vshll.u32 %v6778_v61, 23  ;;  %v1996_v19 = vsub.s32 4294967266, %v6794_v5  ;;  %v2181_v39 = vmul.u32 %v6761_v4, %v2165_v36 }
 0x1ef   : > { %vm2183_vm12 = vc.u32 %v6808_v8, %v6797_v2  ;;  %v4862_v47 = vadd.s32 4294967294, %v2091_v28  ;;  %v612_v6 = vor.u32 %v611_v12, %v610_v16  ;;  %vm616_vm14 = vcmp.lt.s32.totalorder %v6075_v51, 4 }
 0x1f0   : > { %v2185_v23 = vsel %vm2183_vm12, %v2184_v35, %v6798_v48  ;;  %vm613_vm0 = vcmp.lt.s32.totalorder %v6075_v51, 1  ;;  %vm615_vm2 = vcmp.lt.s32.totalorder %v6075_v51, 3  ;;  %v622_v42 = vsel %vm616_vm14, %v609_v50, 920167782 }
 0x1f1   : > { %v2186_v22 = vadd.s32 %v2185_v23, %v2181_v39  ;;  %vm4863_vm4 = vcmp.lt.s32.totalorder %v4862_v47, 0  ;;  %v597_v15 = vshrl.u32 %v7813_v3, %v6134_v32  ;;  %v621_v4 = vsel %vm613_vm0, %v600_v62, %v603_v25 }
 0x1f2   : > { %v623_v61 = vsel %vm615_vm2, %v606_v14, %v622_v42  ;;  %v1997_v58 = vadd.s32 127, %v1996_v19  ;;  %v2094_v48 = vsel %vm4863_vm4, 0, %v4862_v47  ;;  %v625_v10 = vsel %vm613_vm0, %v603_v25, %v606_v14 }
 0x1f3   : > { %v2187_v18 = vadd.s32 536870912, %v2186_v22  ;;  %v2099_v56 = vsub.s32 4294967266, %v2094_v48  ;;  %vm614_vm9 = vcmp.lt.s32.totalorder %v6075_v51, 2  ;;  %v618_v36 = vsel %vm616_vm14, %v606_v14, 2102212464 }
 0x1f4   : > { %v626_v3 = vsel %vm616_vm14, %v612_v6, 1326507024  ;;  %v624_v20 = vsel %vm614_vm9, %v621_v4, %v623_v61  ;;  %v629_v24 = vshll.u32 %v589_v41, 8  ;;  %v1992_v55 = vsub.s32 32, %v6794_v5  ;;  %v7844_v61 = vld [vmem:[#allocation23_spill] sm:$0xff] }
 0x1f5   : > { %v6848_v32 = vshrl.u32 %v2187_v18, 30  ;;  %v627_v43 = vsel %vm615_vm2, %v609_v50, %v626_v3  ;;  %v2100_v0 = vadd.s32 127, %v2099_v56  ;;  %v617_v46 = vsel %vm613_vm0, %v597_v15, %v600_v62 }
 0x1f6   : > { %v628_v35 = vsel %vm614_vm9, %v625_v10, %v627_v43  ;;  %v619_v28 = vsel %vm615_vm2, %v603_v25, %v618_v36  ;;  %v1976_v57 = vadd.s32 %v6658_v9, %v6672_v13  ;;  %v1998_v41 = vshll.u32 %v1997_v58, 23 }
 0x1f7   : > { %v2189_v12 = vshll.u32 %v6848_v32, 30  ;;  %v6864_v14 = vmul.u32.u64.low %v629_v24, %v628_v35  ;;  %v6865_v16 = vmul.u32.u64.high %v629_v24, %v628_v35, %v6864_v14  ;;  %v1890_v62 = vshll.u32 %v6650_v31, %v6738_v34  ;;  %v6892_v34 = vld [vmem:[%s7707_s5 + $0x78] sm:$0xff] }
 0x1f8   : > { %v6869_v50 = vmul.u32.u64.low %v629_v24, %v624_v20  ;;  %v6870_v19 = vmul.u32.u64.high %v629_v24, %v624_v20, %v6869_v50  ;;  %v1891_v39 = vshrl.u32 %v6756_v60, %v1889_v53  ;;  %v2095_v47 = vsub.s32 32, %v2094_v48  ;;  %v7839_v53 = vld [vmem:[#allocation11_spill] sm:$0xff]  ;;  %5141 = vmatprep.subr.mxu0 %v6892_v34 }
 0x1f9   : > { %v6878_v25 = vsub.s32 %v2186_v22, %v2189_v12  ;;  %v1896_v23 = vor.u32 4788187, %v1895_v33  ;;  %v1994_v6 = vshrl.u32 %v1976_v57, %v1992_v55  ;;  %v2101_v42 = vshll.u32 %v2100_v0, 23 }
 0x1fa   : > { %v620_v9 = vsel %vm614_vm9, %v617_v46, %v619_v28  ;;  %v1993_v13 = vshll.u32 %v6720_v59, %v6794_v5  ;;  %v2079_v15 = vadd.s32 %v6733_v52, %v6742_v30  ;;  %vm638_vm10 = vc.u32 %v6865_v16, %v6869_v50  ;;  %v7843_v59 = vld [vmem:[#allocation14_spill] sm:$0xff]  ;;  %v7845_v46 = vld [vmem:[#allocation15_spill] sm:$0xff] }
 0x1fb   : > { %v2192_v31 = vsub.s32 0, %v6878_v25  ;;  %v1999_v60 = vor.u32 4788187, %v1998_v41  ;;  %v639_v51 = vadd.s32 1, %v6870_v19  ;;  %v7840_v33 = vand.u32 2147483647, %v7839_v53 }
 0x1fc   : > { %v770_v52 = vsub.s32 4, %v7843_v59  ;;  %vm7781_vm12 = vcmp.lt.s32.totalorder %v6233_v45, 0  ;;  %v2097_v30 = vshrl.u32 %v2079_v15, %v2095_v47  ;;  %v636_v4 = vmul.u32 %v629_v24, %v620_v9 }
 0x1fd   : > { %vm6897_vm11 = vcmp.le.f32.partialorder %v7840_v33, 0.7853982  ;;  %v4865_v22 = vmin.u32 %v2192_v31, %v6878_v25  ;;  %v1892_v18 = vor.u32 %v1891_v39, %v1890_v62  ;;  %v1995_v10 = vor.u32 %v1994_v6, %v1993_v13 }
 0x1fe   : > { %v772_v58 = vsel %vm6897_vm11, %v7839_v53, %v7844_v61  ;;  %v2102_v56 = vor.u32 4788187, %v2101_v42  ;;  %v640_v36 = vsel %vm638_vm10, %v639_v51, %v6870_v19  ;;  %vm7780_vm14 = vcmp.lt.s32.totalorder %v6272_v44, 0 }
 0x1ff   : > { %v1897_v3 = vand.u32 2147483647, %v1896_v23  ;;  %v2096_v20 = vshll.u32 %v6791_v38, %v2094_v48  ;;  %v2194_v43 = vclz %v4865_v22  ;;  %v641_v55 = vadd.s32 %v640_v36, %v636_v4  ;;  %v7846_v38 = vld [vmem:[#allocation12_spill] sm:$0xff]  ;;  %v7850_v23 = vld [vmem:[#allocation26_spill] sm:$0xff] }
 0x200   : > { %vm7779_vm0 = vcmp.lt.s32.totalorder %v6382_v21, 0  ;;  %v2000_v24 = vand.u32 2147483647, %v1999_v60  ;;  %v771_v0 = vsel %vm686_vm5, %v770_v52, %v7843_v59  ;;  %5394 = vsinq.f32 %v772_v58  ;;  %v7852_v52 = vld [vmem:[#allocation31_spill] sm:$0xff] }
 0x201   : > { %v873_v35 = vsub.s32 4, %v7845_v46  ;;  %v2098_v12 = vor.u32 %v2097_v30, %v2096_v20  ;;  %v4866_v28 = vadd.s32 4294967294, %v2194_v43  ;;  %v642_v14 = vadd.s32 536870912, %v641_v55  ;;  %v7882_v43 = vld [vmem:[#allocation34_spill] sm:$0xff] }
 0x202   : > { %5396 = vcosq.f32 %v772_v58  ;;  %v1899_v57 = vcvt.s32.f32 %v1892_v18  ;;  %v2002_v41 = vcvt.s32.f32 %v1995_v10  ;;  %v2103_v19 = vand.u32 2147483647, %v2102_v56 }
 0x203   : > { %v7847_v48 = vand.u32 2147483647, %v7846_v38  ;;  %vm7778_vm4 = vcmp.lt.s32.totalorder %v6472_v1, 0  ;;  %vm4867_vm9 = vcmp.lt.s32.totalorder %v4866_v28, 0  ;;  %v643_v39 = vshrl.u32 %v642_v14, 30 }
 0x204   : > { %v773_v47 = vsel %vm6897_vm11, 0, %v771_v0  ;;  %v1695_v42 = vxor.u32 2147483648, %v6749_v11  ;;  %v1900_v9 = vmul.f32 %v1899_v57, %v1897_v3  ;;  %v2003_v13 = vmul.f32 %v2002_v41, %v2000_v24 }
 0x205   : > { %vm6919_vm2 = vcmp.le.f32.partialorder %v7847_v48, 0.7853982  ;;  %v874_v15 = vsel %vm789_vm7, %v873_v35, %v7845_v46  ;;  %v1798_v31 = vxor.u32 2147483648, %v6752_v17  ;;  %v2105_v60 = vcvt.s32.f32 %v2098_v12 }
 0x206   : > { %v875_v6 = vsel %vm6919_vm2, %v7846_v38, %v7850_v23  ;;  %v2197_v51 = vsel %vm4867_vm9, 0, %v4866_v28  ;;  %v644_v33 = vshll.u32 %v643_v39, 30  ;;  %v7851_v5 = vxor.u32 2147483648, %v6696_v26 }
 0x207   : > { %vm7777_vm5 = vcmp.lt.s32.totalorder %v7852_v52, 0  ;;  %v2426_v30 = vadd.s32 3, %v773_v47  ;;  %5398 = vcosq.f32 %v875_v6  ;;  %v2106_v22 = vmul.f32 %v2105_v60, %v2103_v19  ;;  %v7860_v60 = vld [vmem:[#allocation28_spill] sm:$0xff] }
 0x208   : > { %v6940_v59 = vsel %vm7781_vm12, %v7851_v5, %v6696_v26  ;;  %v6943_v4 = vsub.s32 %v641_v55, %v644_v33  ;;  %v876_v61 = vsel %vm6919_vm2, 0, %v874_v15  ;;  %5400 = vsinq.f32 %v875_v6 }
 0x209   : > { %v6950_v58 = vsel %vm7780_vm14, %v1695_v42, %v6749_v11  ;;  %v1901_v18 = vxor.u32 2147483648, %v1900_v9  ;;  %v2004_v10 = vxor.u32 2147483648, %v2003_v13  ;;  %v2202_v26 = vsub.s32 4294967266, %v2197_v51 }
 0x20a   : > { %v6955_v56 = vsel %vm7779_vm0, %v1798_v31, %v6752_v17  ;;  %vm7782_vm7 = vcmp.lt.s32.totalorder %v6647_v7, 0  ;;  %v647_v36 = vsub.s32 0, %v6943_v4  ;;  %v6959_v3 = vand.u32 3, %v773_v47 }
 0x20b   : > { %v7853_v20 = vand.u32 2147483647, %v5938_v29  ;;  %v667_v11 = vsub.s32 4, %v643_v39  ;;  %v6967_v55 = vand.u32 3, %v2426_v30  ;;  %v2530_v24 = vadd.s32 3, %v876_v61 }
 0x20c   : > { %v2107_v0 = vxor.u32 2147483648, %v2106_v22  ;;  %v2198_v46 = vsub.s32 32, %v2197_v51  ;;  %vm7786_vm11 = vcmp.lt.s32.totalorder %v5938_v29, 0  ;;  %v4805_v17 = vmin.u32 %v647_v36, %v6943_v4 }
 0x20d   : > { %vm6963_vm10 = vcmp.le.f32.partialorder %v7853_v20, 0.7853982  ;;  %v6973_v35 = vsel %vm7778_vm4, %v1901_v18, %v1900_v9  ;;  %v6977_v12 = vsel %vm7777_vm5, %v2004_v10, %v2003_v13  ;;  %v2182_v28 = vadd.s32 %v6797_v2, %v6808_v8  ;;  %v5395_v57 = vpop.eup %5394 }
 0x20e   : > { %v2203_v14 = vadd.s32 127, %v2202_v26  ;;  %v637_v41 = vadd.s32 %v6869_v50, %v6865_v16  ;;  %v649_v19 = vclz %v4805_v17  ;;  %vm779_vm2 = vcmp.eq.s32.totalorder %v6959_v3, 0 }
 0x20f   : > { %vm782_vm9 = vcmp.eq.s32.totalorder %v6959_v3, 2  ;;  %v5397_v48 = vpop.eup %5396  ;;  %v668_v62 = vsel %vm7786_vm11, %v667_v11, %v643_v39  ;;  %vm2429_vm5 = vcmp.eq.s32.totalorder %v6967_v55, 0  ;;  %v6988_v47 = vand.u32 3, %v2530_v24  ;;  %v7856_v39 = vld [vmem:[#allocation13_spill] sm:$0xff] }
 0x210   : > { %v6990_v23 = vand.u32 3, %v876_v61  ;;  %v6994_v2 = vsel %vm7782_vm7, %v2107_v0, %v2106_v22  ;;  %v2200_v8 = vshrl.u32 %v2182_v28, %v2198_v46  ;;  %v4806_v16 = vadd.s32 4294967294, %v649_v19  ;;  %v7861_v61 = vld [vmem:[#allocation18_spill] sm:$0xff] }
 0x211   : > { %vm2432_vm4 = vcmp.eq.s32.totalorder %v6967_v55, 2  ;;  %v2199_v50 = vshll.u32 %v6878_v25, %v2197_v51  ;;  %v2204_v6 = vshll.u32 %v2203_v14, 23  ;;  %v780_v42 = vxor.u32 2147483648, %v5395_v57 }
 0x212   : > { %vm2428_vm0 = vcmp.lt.s32.totalorder %v6967_v55, 2  ;;  %vm778_vm14 = vcmp.lt.s32.totalorder %v6959_v3, 2  ;;  %v7857_v9 = vand.u32 2147483647, %v7856_v39  ;;  %vm4807_vm7 = vcmp.lt.s32.totalorder %v4806_v16, 0  ;;  %v7867_v55 = vld [vmem:[#allocation32_spill] sm:$0xff] }
 0x213   : > { %v670_v15 = vsel %vm6963_vm10, 0, %v668_v62  ;;  %v783_v31 = vxor.u32 2147483648, %v5397_v48  ;;  %v652_v51 = vsel %vm4807_vm7, 0, %v4806_v16  ;;  %vm2533_vm13 = vcmp.eq.s32.totalorder %v6988_v47, 0 }
 0x214   : > { %vm7002_vm12 = vcmp.le.f32.partialorder %v7857_v9, 0.7853982  ;;  %vm2536_vm6 = vcmp.eq.s32.totalorder %v6988_v47, 2  ;;  %vm885_vm3 = vcmp.eq.s32.totalorder %v6990_v23, 2  ;;  %v5399_v33 = vpop.eup %5398  ;;  %v2201_v5 = vor.u32 %v2200_v8, %v2199_v50 }
 0x215   : > { %v978_v25 = vsel %vm7002_vm12, %v7856_v39, %v7860_v60  ;;  %v653_v30 = vsub.s32 32, %v652_v51  ;;  %v657_v22 = vsub.s32 4294967266, %v652_v51  ;;  %v976_v18 = vsub.s32 4, %v7861_v61  ;;  %v5401_v10 = vpop.eup %5400 }
 0x216   : > { %v2205_v26 = vor.u32 4788187, %v2204_v6  ;;  %v2322_v36 = vadd.s32 3, %v670_v15  ;;  %v2431_v20 = vsel %vm2429_vm5, %v5397_v48, %v780_v42  ;;  %vm882_vm7 = vcmp.eq.s32.totalorder %v6990_v23, 0 }
 0x217   : > { %5402 = vcosq.f32 %v978_v25  ;;  %v654_v11 = vshll.u32 %v6943_v4, %v652_v51  ;;  %v655_v24 = vshrl.u32 %v637_v41, %v653_v30  ;;  %v658_v0 = vadd.s32 127, %v657_v22 }
 0x218   : > { %v2434_v46 = vsel %vm2432_vm4, %v783_v31, %v5395_v57  ;;  %vm2532_vm11 = vcmp.lt.s32.totalorder %v6988_v47, 2  ;;  %vm776_vm1 = vweird.f32 %v7839_v53  ;;  %v781_v17 = vsel %vm779_vm2, %v5397_v48, %v780_v42  ;;  %v7862_v48 = vld [vmem:[#allocation20_spill] sm:$0xff] }
 0x219   : > { %v784_v28 = vsel %vm782_vm9, %v783_v31, %v5395_v57  ;;  %v886_v14 = vxor.u32 2147483648, %v5399_v33  ;;  %5404 = vsinq.f32 %v978_v25  ;;  %v656_v19 = vor.u32 %v655_v24, %v654_v11  ;;  %v7863_v31 = vld [vmem:[#allocation16_spill] sm:$0xff]  ;;  %v7873_v24 = vld [vmem:[#allocation33_spill] sm:$0xff] }
 0x21a   : > { %v659_v62 = vshll.u32 %v658_v0, 23  ;;  %v883_v4 = vxor.u32 2147483648, %v5401_v10  ;;  %vm881_vm5 = vcmp.lt.s32.totalorder %v6990_v23, 2  ;;  %v977_v41 = vsel %vm892_vm8, %v976_v18, %v7861_v61  ;;  %v7868_v18 = vld [vmem:[#allocation17_spill] sm:$0xff] }
 0x21b   : > { %v2206_v8 = vand.u32 2147483647, %v2205_v26  ;;  %v2208_v16 = vcvt.s32.f32 %v2201_v5  ;;  %v7032_v50 = vand.u32 3, %v670_v15  ;;  %vm879_vm4 = vweird.f32 %v7846_v38 }
 0x21c   : > { %v1079_v6 = vsub.s32 4, %v7862_v48  ;;  %v660_v57 = vor.u32 4788187, %v659_v62  ;;  %v2435_v42 = vsel %vm2428_vm0, %v2431_v20, %v2434_v46  ;;  %v785_v9 = vsel %vm778_vm14, %v781_v17, %v784_v28 }
 0x21d   : > { %v7864_v60 = vand.u32 2147483647, %v7863_v31  ;;  %v2538_v15 = vsel %vm2536_vm6, %v886_v14, %v5401_v10  ;;  %v887_v51 = vsel %vm885_vm3, %v886_v14, %v5401_v10  ;;  %v979_v5 = vsel %vm7002_vm12, 0, %v977_v41  ;;  %v7872_v10 = vld [vmem:[#allocation22_spill] sm:$0xff] }
 0x21e   : > { %v661_v30 = vand.u32 2147483647, %v660_v57  ;;  %v663_v22 = vcvt.s32.f32 %v656_v19  ;;  %v2535_v61 = vsel %vm2533_vm13, %v5399_v33, %v883_v4  ;;  %v7869_v26 = vand.u32 2147483647, %v7868_v18 }
 0x21f   : > { %vm7042_vm2 = vcmp.le.f32.partialorder %v7864_v60, 0.7853982  ;;  %v1080_v13 = vsel %vm995_vm15, %v1079_v6, %v7862_v48  ;;  %v1182_v11 = vsub.s32 4, %v7872_v10  ;;  %v884_v17 = vsel %vm882_vm7, %v5399_v33, %v883_v4  ;;  %v7875_v4 = vld [vmem:[#allocation24_spill] sm:$0xff] }
 0x220   : > { %v1081_v3 = vsel %vm7042_vm2, %v7863_v31, %v7867_v55  ;;  %vm7060_vm8 = vcmp.le.f32.partialorder %v7869_v26, 0.7853982  ;;  %v664_v46 = vmul.f32 %v663_v22, %v661_v30  ;;  %v2634_v28 = vadd.s32 3, %v979_v5 }
 0x221   : > { %5406 = vcosq.f32 %v1081_v3  ;;  %v1184_v0 = vsel %vm7060_vm8, %v7868_v18, %v7873_v24  ;;  %v7074_v14 = vmul.f32 %v2208_v16, %v2206_v8  ;;  %v7076_v19 = vand.u32 3, %v2322_v36 }
 0x222   : > { %5408 = vsinq.f32 %v1081_v3  ;;  %v2539_v62 = vsel %vm2532_vm11, %v2535_v61, %v2538_v15  ;;  %v665_v41 = vxor.u32 2147483648, %v664_v46  ;;  %v7082_v48 = vsel %vm776_vm1, nan, %v2435_v42  ;;  %v7877_v15 = vld [vmem:[#allocation19_spill] sm:$0xff] }
 0x223   : > { %5410 = vcosq.f32 %v1184_v0  ;;  %v1082_v6 = vsel %vm7042_vm2, 0, %v1080_v13  ;;  %vm7874_vm15 = vcmp.lt.s32.totalorder %v7868_v18, 0  ;;  %v7091_v36 = vsel %vm776_vm1, nan, %v785_v9 }
 0x224   : > { %v1183_v33 = vsel %vm7874_vm15, %v1182_v11, %v7872_v10  ;;  %v888_v47 = vsel %vm881_vm5, %v884_v17, %v887_v51  ;;  %5412 = vsinq.f32 %v1184_v0  ;;  %v1285_v8 = vsub.s32 4, %v7875_v4  ;;  %v5403_v16 = vpop.eup %5402 }
 0x225   : > { %vm7876_vm3 = vcmp.lt.s32.totalorder %v5938_v29, 0  ;;  %v7100_v42 = vsel %vm879_vm4, nan, %v2539_v62  ;;  %v2635_v60 = vand.u32 3, %v2634_v28  ;;  %v983_v25 = vand.u32 3, %v979_v5 }
 0x226   : > { %v666_v57 = vsel %vm7876_vm3, %v665_v41, %v664_v46  ;;  %v2738_v9 = vadd.s32 3, %v1082_v6  ;;  %v1185_v23 = vsel %vm7060_vm8, 0, %v1183_v33  ;;  %v7878_v51 = vand.u32 2147483647, %v7877_v15  ;;  %v5405_v3 = vpop.eup %5404 }
 0x227   : > { %v669_v53 = vsel %vm6963_vm10, %v5938_v29, %v666_v57  ;;  %v7113_v30 = vand.u32 3, %v1082_v6  ;;  %vm7881_vm6 = vcmp.lt.s32.totalorder %v7877_v15, 0  ;;  %v7124_v61 = vsel %vm879_vm4, nan, %v888_v47 }
 0x228   : > { %vm7109_vm1 = vcmp.le.f32.partialorder %v7878_v51, 0.7853982  ;;  %5414 = vcosq.f32 %v669_v53  ;;  %v1286_v5 = vsel %vm7881_vm6, %v1285_v8, %v7875_v4  ;;  %v986_v26 = vxor.u32 2147483648, %v5405_v3 }
 0x229   : > { %v1287_v22 = vsel %vm7109_vm1, %v7877_v15, %v7882_v43  ;;  %5416 = vsinq.f32 %v669_v53  ;;  %v989_v20 = vxor.u32 2147483648, %v5403_v16  ;;  %vm984_vm13 = vcmp.lt.s32.totalorder %v983_v25, 2  ;;  %v7883_v53 = vld [vmem:[#allocation21_spill] sm:$0xff] }
 0x22a   : > { %vm985_vm12 = vcmp.eq.s32.totalorder %v983_v25, 0  ;;  %vm988_vm14 = vcmp.eq.s32.totalorder %v983_v25, 2  ;;  %v2842_v13 = vadd.s32 3, %v1185_v23  ;;  %vm982_vm0 = vweird.f32 %v7856_v39 }
 0x22b   : > { %vm2636_vm10 = vcmp.lt.s32.totalorder %v2635_v60, 2  ;;  %v7127_v10 = vand.u32 3, %v2738_v9  ;;  %v1288_v11 = vsel %vm7109_vm1, 0, %v1286_v5  ;;  %5418 = vcosq.f32 %v1287_v22  ;;  %v7888_v5 = vld [vmem:[#allocation35_spill] sm:$0xff] }
 0x22c   : > { %vm2637_vm11 = vcmp.eq.s32.totalorder %v2635_v60, 0  ;;  %vm2640_vm9 = vcmp.eq.s32.totalorder %v2635_v60, 2  ;;  %vm1088_vm7 = vcmp.eq.s32.totalorder %v7113_v30, 0  ;;  %v7132_v38 = vand.u32 3, %v1185_v23  ;;  %v7887_v60 = vld [vmem:[#allocation25_spill] sm:$0xff] }
 0x22d   : > { %v2639_v24 = vsel %vm2637_vm11, %v5403_v16, %v986_v26  ;;  %v2642_v0 = vsel %vm2640_vm9, %v989_v20, %v5405_v3  ;;  %vm1087_vm5 = vcmp.lt.s32.totalorder %v7113_v30, 2  ;;  %vm1091_vm4 = vcmp.eq.s32.totalorder %v7113_v30, 2 }
 0x22e   : > { %5420 = vsinq.f32 %v1287_v22  ;;  %v5407_v46 = vpop.eup %5406  ;;  %v987_v17 = vsel %vm985_vm12, %v5403_v16, %v986_v26  ;;  %v990_v28 = vsel %vm988_vm14, %v989_v20, %v5405_v3  ;;  %v7138_v62 = vand.u32 3, %v2842_v13 }
 0x22f   : > { %v2946_v41 = vadd.s32 3, %v1288_v11  ;;  %v5409_v6 = vpop.eup %5408  ;;  %v1092_v33 = vxor.u32 2147483648, %v5407_v46  ;;  %vm2740_vm15 = vcmp.lt.s32.totalorder %v7127_v10, 2  ;;  %vm2741_vm3 = vcmp.eq.s32.totalorder %v7127_v10, 0 }
 0x230   : > { %vm2744_vm1 = vcmp.eq.s32.totalorder %v7127_v10, 2  ;;  %v5411_v47 = vpop.eup %5410  ;;  %vm676_vm12 = vcmp.eq.s32.totalorder %v7032_v50, 0  ;;  %v2643_v4 = vsel %vm2636_vm10, %v2639_v24, %v2642_v0  ;;  %v1089_v8 = vxor.u32 2147483648, %v5409_v6 }
 0x231   : > { %vm1191_vm14 = vcmp.eq.s32.totalorder %v7132_v38, 0  ;;  %vm1194_vm11 = vcmp.eq.s32.totalorder %v7132_v38, 2  ;;  %vm2324_vm9 = vcmp.lt.s32.totalorder %v7076_v19, 2  ;;  %vm675_vm2 = vcmp.lt.s32.totalorder %v7032_v50, 2  ;;  %v5413_v55 = vpop.eup %5412 }
 0x232   : > { %v991_v16 = vsel %vm984_vm13, %v987_v17, %v990_v28  ;;  %v7153_v57 = vand.u32 3, %v1288_v11  ;;  %v7884_v9 = vand.u32 2147483647, %v7883_v53  ;;  %v1388_v51 = vsub.s32 4, %v7887_v60 }
 0x233   : > { %vm673_vm10 = vweird.f32 %v5938_v29  ;;  %v2746_v3 = vsel %vm2744_vm1, %v1092_v33, %v5409_v6  ;;  %vm2845_vm8 = vcmp.eq.s32.totalorder %v7138_v62, 0  ;;  %v7166_v25 = vand.u32 3, %v2946_v41 }
 0x234   : > { %vm7157_vm6 = vcmp.le.f32.partialorder %v7884_v9, 0.7853982  ;;  %v2743_v22 = vsel %vm2741_vm3, %v5407_v46, %v1089_v8  ;;  %v1090_v26 = vsel %vm1088_vm7, %v5407_v46, %v1089_v8  ;;  %v1093_v20 = vsel %vm1091_vm4, %v1092_v33, %v5409_v6 }
 0x235   : > { %v1390_v43 = vsel %vm7157_vm6, %v7883_v53, %v7888_v5  ;;  %v1195_v13 = vxor.u32 2147483648, %v5411_v47  ;;  %v7182_v11 = vsel %vm982_vm0, nan, %v2643_v4  ;;  %v7186_v24 = vsel %vm982_vm0, nan, %v991_v16  ;;  %v5415_v46 = vpop.eup %5414 }
 0x236   : > { %v1192_v0 = vxor.u32 2147483648, %v5413_v55  ;;  %vm2848_vm3 = vcmp.eq.s32.totalorder %v7138_v62, 2  ;;  %vm1294_vm4 = vcmp.eq.s32.totalorder %v7153_v57, 0  ;;  %vm7889_vm1 = vcmp.lt.s32.totalorder %v7883_v53, 0  ;;  %v5417_v28 = vpop.eup %5416 }
 0x237   : > { %v1389_v17 = vsel %vm7889_vm1, %v1388_v51, %v7887_v60  ;;  %5422 = vcosq.f32 %v1390_v43  ;;  %v680_v41 = vxor.u32 2147483648, %v5415_v46  ;;  %v2747_v39 = vsel %vm2740_vm15, %v2743_v22, %v2746_v3 }
 0x238   : > { %v1094_v6 = vsel %vm1087_vm5, %v1090_v26, %v1093_v20  ;;  %vm1188_vm0 = vweird.f32 %v7868_v18  ;;  %vm2949_vm7 = vcmp.eq.s32.totalorder %v7166_v25, 0  ;;  %v7890_v33 = vand.u32 2147483647, %v6112_v54  ;;  %v5419_v30 = vpop.eup %5418 }
 0x239   : > { %v677_v8 = vxor.u32 2147483648, %v5417_v28  ;;  %v2850_v16 = vsel %vm2848_vm3, %v1195_v13, %v5413_v55  ;;  %vm1293_vm1 = vcmp.lt.s32.totalorder %v7153_v57, 2  ;;  %v1391_v10 = vsel %vm7157_vm6, 0, %v1389_v17 }
 0x23a   : > { %vm7203_vm13 = vcmp.le.f32.partialorder %v7890_v33, 0.7853982  ;;  %5424 = vsinq.f32 %v1390_v43  ;;  %vm7893_vm5 = vcmp.eq.s32.totalorder %v7076_v19, 2  ;;  %vm7894_vm15 = vcmp.eq.s32.totalorder %v7032_v50, 2 }
 0x23b   : > { %v2330_v9 = vsel %vm7893_vm5, %v680_v41, %v5417_v28  ;;  %v681_v60 = vsel %vm7894_vm15, %v680_v41, %v5417_v28  ;;  %v2847_v51 = vsel %vm2845_vm8, %v5411_v47, %v1192_v0  ;;  %v1196_v3 = vsel %vm1194_vm11, %v1195_v13, %v5413_v55  ;;  %v5421_v26 = vpop.eup %5420  ;;  %v7896_v13 = vld [vmem:[#allocation27_spill] sm:$0xff] }
 0x23c   : > { %vm7895_vm3 = vcmp.eq.s32.totalorder %v7076_v19, 0  ;;  %v678_v23 = vsel %vm676_vm12, %v5415_v46, %v677_v8  ;;  %v1193_v43 = vsel %vm1191_vm14, %v5411_v47, %v1192_v0  ;;  %vm1291_vm6 = vweird.f32 %v7877_v15 }
 0x23d   : > { %v2327_v5 = vsel %vm7895_vm3, %v5415_v46, %v677_v8  ;;  %v1298_v22 = vxor.u32 2147483648, %v5419_v30  ;;  %v682_v17 = vsel %vm675_vm2, %v678_v23, %v681_v60  ;;  %v3050_v55 = vadd.s32 3, %v1391_v10  ;;  %v4341_v8 = vld [vmem:[%s7707_s5 + $0x70] sm:$0xff] }
 0x23e   : > { %v2331_v20 = vsel %vm2324_vm9, %v2327_v5, %v2330_v9  ;;  %v1491_v28 = vsub.s32 4, %v7896_v13  ;;  %v683_v46 = vsel %vm673_vm10, nan, %v682_v17  ;;  %v1295_v47 = vxor.u32 2147483648, %v5421_v26  ;;  %v4340_v9 = vld [vmem:[%s7707_s5 + $0x68] sm:$0xff] }
 0x23f   : > { %v2332_v41 = vsel %vm673_vm10, nan, %v2331_v20  ;;  %vm2952_vm8 = vcmp.eq.s32.totalorder %v7166_v25, 2  ;;  %vm7897_vm12 = vcmask 261120   ;;  %vm7899_vm11 = vcmp.lt.s32.totalorder %v7138_v62, 2  ;;  %v4339_v20 = vld [vmem:[%s7707_s5 + $0x60] sm:$0xff] }
 0x240   : > { %5085 = vmatprep.mubr.msk.f32.mxu0 %vm7897_vm12, %v2332_v41  ;;  %vm7898_vm14 = vmmov %vm7897_vm12  ;;  %v2851_v50 = vsel %vm7899_vm11, %v2847_v51, %v2850_v16  ;;  %vm7900_vm2 = vcmp.lt.s32.totalorder %v7132_v38, 2  ;;  %v2954_v0 = vsel %vm2952_vm8, %v1298_v22, %v5421_v26  ;;  %v7241_v33 = vand.u32 3, %v1391_v10 }
 0x241   : > { %5117 = vmatprep.mubr.msk.f32.mxu1 %vm7898_vm14, %v683_v46  ;;  %v1197_v19 = vsel %vm7900_vm2, %v1193_v43, %v1196_v3  ;;  %vm7901_vm9 = vmmov %vm7897_vm12  ;;  %vm2948_vm5 = vcmp.lt.s32.totalorder %v7166_v25, 2  ;;  %v2951_v29 = vsel %vm2949_vm7, %v5419_v30, %v1295_v47  ;;  %v1296_v62 = vsel %vm1294_vm4, %v5419_v30, %v1295_v47 }
 0x242   : > { %5086 = vmatmul.mubr.msk.f32.vlgmr.msra.gmra.mxu0 %vm7901_vm9, %v7082_v48  ;;  %vm7902_vm10 = vmmov %vm7901_vm9  ;;  %vm7903_vm15 = vcmp.eq.s32.totalorder %v7153_v57, 2  ;;  %vm7906_vm12 = vweird.f32 %v7863_v31  ;;  %v3051_v25 = vand.u32 3, %v3050_v55  ;;  %vm7908_vm4 = vcmp.lt.s32.totalorder %v6112_v54, 0 }
 0x243   : > { %5118 = vmatmul.mubr.msk.f32.vlgmr.msra.gmra.mxu1 %vm7902_vm10, %v7091_v36  ;;  %v1299_v38 = vsel %vm7903_vm15, %v1298_v22, %v5421_v26  ;;  %vm7904_vm3 = vmmov %vm7901_vm9  ;;  %v2748_v48 = vsel %vm7906_vm12, nan, %v2747_v39  ;;  %v1492_v16 = vsel %vm7908_vm4, %v1491_v28, %v7896_v13  ;;  %v2852_v10 = vsel %vm1188_vm0, nan, %v2851_v50  ;;  %5142 = vmatpush3.msra.mxu0 %v6892_v34  ;;  %v7914_v34 = vld [vmem:[#allocation29_spill] sm:$0xff]  ;;  %v7925_v13 = vld [vmem:[#allocation30_spill] sm:$0xff] }
 0x244   : > { %5088 = vmatprep.mubr.msk.f32.mxu0 %vm7904_vm3, %v7100_v42  ;;  %vm7905_vm8 = vmmov %vm7904_vm3  ;;  %v1198_v42 = vsel %vm1188_vm0, nan, %v1197_v19  ;;  %v2955_v30 = vsel %vm2948_vm5, %v2951_v29, %v2954_v0  ;;  %v1300_v31 = vsel %vm1293_vm1, %v1296_v62, %v1299_v38  ;;  %vm1396_vm14 = vcmp.lt.s32.totalorder %v7241_v33, 2  ;;  %5143 = vmatprep.subr.mxu0 %v4341_v8  ;;  %v5423_v60 = vpop.eup %5422 }
 0x245   : > { %5120 = vmatprep.mubr.msk.f32.mxu1 %vm7905_vm8, %v7124_v61  ;;  %vm7907_vm7 = vmmov %vm7906_vm12  ;;  %v1493_v61 = vsel %vm7203_vm13, %v6112_v54, %v6691_v27  ;;  %v7909_v39 = vand.u32 2147483647, %v6233_v45  ;;  %v1494_v27 = vsel %vm7203_vm13, 0, %v1492_v16  ;;  %v1594_v18 = vsub.s32 4, %v7914_v34  ;;  %5144 = vmatpush3.msra.mxu0 %v4341_v8 }
 0x246   : > { %v1095_v36 = vsel %vm7907_vm7, nan, %v1094_v6  ;;  %5426 = vcosq.f32 %v1493_v61  ;;  %vm7912_vm0 = vmmov %vm7904_vm3  ;;  %vm3053_vm13 = vcmp.eq.s32.totalorder %v3051_v25, 0  ;;  %vm3056_vm10 = vcmp.eq.s32.totalorder %v3051_v25, 2  ;;  %5145 = vmatprep.subr.mxu0 %v4340_v9 }
 0x247   : > { %vm7282_vm11 = vcmp.le.f32.partialorder %v7909_v39, 0.7853982  ;;  %5089 = vmatmul.mubr.msk.f32.gmra.mxu0 %vm7912_vm0, %v7182_v11  ;;  %vm7913_vm2 = vmmov %vm7912_vm0  ;;  %5428 = vsinq.f32 %v1493_v61  ;;  %v2956_v11 = vsel %vm1291_vm6, nan, %v2955_v30  ;;  %vm1397_vm5 = vcmp.eq.s32.totalorder %v7241_v33, 0  ;;  %v5425_v51 = vpop.eup %5424 }
 0x248   : > { %5121 = vmatmul.mubr.msk.f32.gmra.mxu1 %vm7913_vm2, %v7186_v24  ;;  %v1596_v57 = vsel %vm7282_vm11, %v6233_v45, %v6940_v59  ;;  %vm7915_vm1 = vmmov %vm7912_vm0  ;;  %v1301_v24 = vsel %vm1291_vm6, nan, %v1300_v31  ;;  %v1401_v59 = vxor.u32 2147483648, %v5423_v60  ;;  %vm7917_vm15 = vcmp.lt.s32.totalorder %v6233_v45, 0  ;;  %5146 = vmatpush3.msra.mxu0 %v4340_v9 }
 0x249   : > { %5091 = vmatprep.mubr.msk.f32.mxu0 %vm7915_vm1, %v2748_v48  ;;  %vm7916_vm9 = vmmov %vm7912_vm0  ;;  %v1595_v4 = vsel %vm7917_vm15, %v1594_v18, %v7914_v34  ;;  %5430 = vcosq.f32 %v1596_v57  ;;  %vm1400_vm3 = vcmp.eq.s32.totalorder %v7241_v33, 2  ;;  %v3154_v3 = vadd.s32 3, %v1494_v27  ;;  %5147 = vmatprep.subr.mxu0 %v4339_v20 }
 0x24a   : > { %5123 = vmatprep.mubr.msk.f32.mxu1 %vm7916_vm9, %v1095_v36  ;;  %v1597_v5 = vsel %vm7282_vm11, 0, %v1595_v4  ;;  %v7918_v23 = vand.u32 2147483647, %v6272_v44  ;;  %vm7921_vm6 = vmmov %vm7912_vm0  ;;  %v1398_v15 = vxor.u32 2147483648, %v5425_v51  ;;  %v3058_v22 = vsel %vm3056_vm10, %v1401_v59, %v5425_v51  ;;  %5148 = vmatpush3.msra.mxu0 %v4339_v20 }
 0x24b   : > { %5092 = vmatmul.mubr.msk.f32.gmra.mxu0 %vm7921_vm6, %v2852_v10  ;;  %vm7922_vm12 = vmmov %vm7912_vm0  ;;  %v1402_v26 = vsel %vm1400_vm3, %v1401_v59, %v5425_v51  ;;  %5432 = vsinq.f32 %v1596_v57  ;;  %v7327_v17 = vand.u32 3, %v1494_v27  ;;  %v3258_v55 = vadd.s32 3, %v1597_v5 }
 0x24c   : > { %vm7315_vm8 = vcmp.le.f32.partialorder %v7918_v23, 0.7853982  ;;  %5124 = vmatmul.mubr.msk.f32.gmra.mxu1 %vm7922_vm12, %v1198_v42  ;;  %vm7923_vm7 = vmmov %vm7912_vm0  ;;  %v1697_v28 = vsub.s32 4, %v7925_v13  ;;  %vm3052_vm11 = vcmp.lt.s32.totalorder %v3051_v25, 2  ;;  %v3055_v46 = vsel %vm3053_vm13, %v5423_v60, %v1398_v15  ;;  %v7931_v25 = vld [vmem:[#allocation36_spill] sm:$0xff] }
 0x24d   : > { %5094 = vmatprep.mubr.msk.f32.mxu0 %vm7923_vm7, %v2956_v11  ;;  %vm7924_vm4 = vmmov %vm7912_vm0  ;;  %v1699_v41 = vsel %vm7315_vm8, %v6272_v44, %v6950_v58  ;;  %v1399_v47 = vsel %vm1397_vm5, %v5423_v60, %v1398_v15  ;;  %vm1394_vm0 = vweird.f32 %v7883_v53  ;;  %v3059_v50 = vsel %vm3052_vm11, %v3055_v46, %v3058_v22  ;;  %v4338_v58 = vld [vmem:[%s7707_s5 + $0x58] sm:$0xff] }
 0x24e   : > { %5126 = vmatprep.mubr.msk.f32.mxu1 %vm7924_vm4, %v1301_v24  ;;  %5434 = vcosq.f32 %v1699_v41  ;;  %v1403_v19 = vsel %vm1396_vm14, %v1399_v47, %v1402_v26  ;;  %v3155_v0 = vand.u32 3, %v3154_v3  ;;  %v2210_v29 = vxor.u32 2147483648, %v7074_v14  ;;  %vm7926_vm2 = vmmov %vm7915_vm1  ;;  %5149 = vmatprep.subr.mxu0 %v4338_v58 }
 0x24f   : > { %v3060_v62 = vsel %vm1394_vm0, nan, %v3059_v50  ;;  %v1404_v38 = vsel %vm1394_vm0, nan, %v1403_v19  ;;  %v7344_v8 = vand.u32 3, %v1597_v5  ;;  %vm1497_vm9 = vweird.f32 %v6112_v54  ;;  %5150 = vmatpush3.msra.mxu0 %v4338_v58 }
 0x250   : > { %5095 = vmatmul.mubr.msk.f32.gmra.mxu0 %vm7926_vm2, %v3060_v62  ;;  %5127 = vmatmul.mubr.msk.f32.gmra.mxu1 %vm7915_vm1, %v1404_v38  ;;  %vm1499_vm14 = vcmp.lt.s32.totalorder %v7327_v17, 2  ;;  %vm1500_vm13 = vcmp.eq.s32.totalorder %v7327_v17, 0  ;;  %v3259_v53 = vand.u32 3, %v3258_v55  ;;  %vm7927_vm10 = vcmp.lt.s32.totalorder %v6272_v44, 0 }
 0x251   : > { %v1698_v33 = vsel %vm7927_vm10, %v1697_v28, %v7925_v13  ;;  %vm1503_vm5 = vcmp.eq.s32.totalorder %v7327_v17, 2  ;;  %5436 = vsinq.f32 %v1699_v41  ;;  %v7928_v48 = vand.u32 2147483647, %v6382_v21 }
 0x252   : > { %v1800_v16 = vsub.s32 4, %v7931_v25  ;;  %vm3156_vm3 = vcmp.lt.s32.totalorder %v3155_v0, 2  ;;  %vm3157_vm6 = vcmp.eq.s32.totalorder %v3155_v0, 0  ;;  %vm3160_vm12 = vcmp.eq.s32.totalorder %v3155_v0, 2 }
 0x253   : > { %vm7357_vm15 = vcmp.le.f32.partialorder %v7928_v48, 0.7853982  ;;  %v5427_v42 = vpop.eup %5426  ;;  %vm1602_vm7 = vcmp.lt.s32.totalorder %v7344_v8, 2  ;;  %v1700_v30 = vsel %vm7315_vm8, 0, %v1698_v33  ;;  %vm7932_vm4 = vcmp.lt.s32.totalorder %v6382_v21, 0 }
 0x254   : > { %v1802_v10 = vsel %vm7357_vm15, %v6382_v21, %v6955_v56  ;;  %v1801_v61 = vsel %vm7932_vm4, %v1800_v16, %v7931_v25  ;;  %v5429_v31 = vpop.eup %5428  ;;  %v1504_v39 = vxor.u32 2147483648, %v5427_v42  ;;  %vm1600_vm11 = vweird.f32 %v6233_v45 }
 0x255   : > { %5438 = vcosq.f32 %v1802_v10  ;;  %vm3260_vm0 = vcmp.lt.s32.totalorder %v3259_v53, 2  ;;  %vm1603_vm2 = vcmp.eq.s32.totalorder %v7344_v8, 0  ;;  %vm1606_vm1 = vcmp.eq.s32.totalorder %v7344_v8, 2 }
 0x256   : > { %v1501_v56 = vxor.u32 2147483648, %v5429_v31  ;;  %vm3261_vm10 = vcmp.eq.s32.totalorder %v3259_v53, 0  ;;  %v1803_v6 = vsel %vm7357_vm15, 0, %v1801_v61  ;;  %5440 = vsinq.f32 %v1802_v10  ;;  %v5431_v27 = vpop.eup %5430 }
 0x257   : > { %v3162_v34 = vsel %vm3160_vm12, %v1504_v39, %v5429_v31  ;;  %v1505_v18 = vsel %vm1503_vm5, %v1504_v39, %v5429_v31  ;;  %v3362_v57 = vadd.s32 3, %v1700_v30  ;;  %v1704_v9 = vand.u32 3, %v1700_v30 }
 0x258   : > { %v3159_v60 = vsel %vm3157_vm6, %v5427_v42, %v1501_v56  ;;  %v1502_v11 = vsel %vm1500_vm13, %v5427_v42, %v1501_v56  ;;  %v1607_v24 = vxor.u32 2147483648, %v5431_v27  ;;  %vm3264_vm8 = vcmp.eq.s32.totalorder %v3259_v53, 2  ;;  %v5433_v59 = vpop.eup %5432 }
 0x259   : > { %v3163_v4 = vsel %vm3156_vm3, %v3159_v60, %v3162_v34  ;;  %v1506_v51 = vsel %vm1499_vm14, %v1502_v11, %v1505_v18  ;;  %v3466_v3 = vadd.s32 3, %v1803_v6  ;;  %v1903_v5 = vsub.s32 4, %v6638_v63 }
 0x25a   : > { %v3164_v23 = vsel %vm1497_vm9, nan, %v3163_v4  ;;  %v1507_v43 = vsel %vm1497_vm9, nan, %v1506_v51  ;;  %v1604_v15 = vxor.u32 2147483648, %v5433_v59  ;;  %v3266_v22 = vsel %vm3264_vm8, %v1607_v24, %v5433_v59 }
 0x25b   : > { %v5435_v26 = vpop.eup %5434  ;;  %vm7933_vm13 = vcmask 261120   ;;  %v1608_v20 = vsel %vm1606_vm1, %v1607_v24, %v5433_v59  ;;  %vm1703_vm14 = vweird.f32 %v6272_v44  ;;  %v3363_v17 = vand.u32 3, %v3362_v57 }
 0x25c   : > { %5097 = vmatprep.mubr.msk.f32.mxu0 %vm7933_vm13, %v3164_v23  ;;  %vm7934_vm5 = vmmov %vm7933_vm13  ;;  %vm1705_vm15 = vcmp.lt.s32.totalorder %v1704_v9, 2  ;;  %v7935_v55 = vand.u32 2147483647, %v6472_v1  ;;  %v3263_v54 = vsel %vm3261_vm10, %v5431_v27, %v1604_v15  ;;  %v1605_v28 = vsel %vm1603_vm2, %v5431_v27, %v1604_v15 }
 0x25d   : > { %5129 = vmatprep.mubr.msk.f32.mxu1 %vm7934_vm5, %v1507_v43  ;;  %v1710_v41 = vxor.u32 2147483648, %v5435_v26  ;;  %vm1706_vm9 = vcmp.eq.s32.totalorder %v1704_v9, 0  ;;  %v3267_v46 = vsel %vm3260_vm0, %v3263_v54, %v3266_v22  ;;  %v1609_v47 = vsel %vm1602_vm7, %v1605_v28, %v1608_v20  ;;  %vm7939_vm4 = vmmov %vm7934_vm5 }
 0x25e   : > { %vm7398_vm3 = vcmp.le.f32.partialorder %v7935_v55, 0.7853982  ;;  %v3467_v50 = vand.u32 3, %v3466_v3  ;;  %v1807_v19 = vand.u32 3, %v1803_v6  ;;  %v3268_v0 = vsel %vm1600_vm11, nan, %v3267_v46  ;;  %v5437_v38 = vpop.eup %5436  ;;  %vm7940_vm0 = vmmov %vm7939_vm4 }
 0x25f   : > { %v1610_v58 = vsel %vm1600_vm11, nan, %v1609_v47  ;;  %vm1709_vm6 = vcmp.eq.s32.totalorder %v1704_v9, 2  ;;  %vm7938_vm12 = vcmp.lt.s32.totalorder %v6472_v1, 0  ;;  %5098 = vmatmul.mubr.msk.f32.gmra.mxu0 %vm7939_vm4, %v3268_v0  ;;  %vm3364_vm2 = vcmp.lt.s32.totalorder %v3363_v17, 2  ;;  %vm7944_vm5 = vmmov %vm7940_vm0 }
 0x260   : > { %v1904_v62 = vsel %vm7938_vm12, %v1903_v5, %v6638_v63  ;;  %5130 = vmatmul.mubr.msk.f32.gmra.mxu1 %vm7940_vm0, %v1610_v58  ;;  %vm3365_vm7 = vcmp.eq.s32.totalorder %v3363_v17, 0  ;;  %vm3368_vm1 = vcmp.eq.s32.totalorder %v3363_v17, 2  ;;  %v1905_v8 = vsel %vm7398_vm3, %v6472_v1, %v6973_v35 }
 0x261   : > { %vm2128_vm11 = vcmp.lt.s32.totalorder %v6665_v40, 0  ;;  %v1707_v45 = vxor.u32 2147483648, %v5437_v38  ;;  %v3370_v53 = vsel %vm3368_vm1, %v1710_v41, %v5437_v38  ;;  %v1711_v33 = vsel %vm1709_vm6, %v1710_v41, %v5437_v38 }
 0x262   : > { %5442 = vcosq.f32 %v1905_v8  ;;  %v5439_v63 = vpop.eup %5438  ;;  %vm3472_vm10 = vcmp.eq.s32.totalorder %v3467_v50, 2  ;;  %vm1812_vm8 = vcmp.eq.s32.totalorder %v1807_v19, 2  ;;  %v1906_v48 = vsel %vm7398_vm3, 0, %v1904_v62  ;;  %vm7945_vm3 = vmmov %vm7940_vm0 }
 0x263   : > { %5444 = vsinq.f32 %v1905_v8  ;;  %v3367_v36 = vsel %vm3365_vm7, %v5435_v26, %v1707_v45  ;;  %v1708_v25 = vsel %vm1706_vm9, %v5435_v26, %v1707_v45  ;;  %v1813_v16 = vxor.u32 2147483648, %v5439_v63  ;;  %v5441_v42 = vpop.eup %5440 }
 0x264   : > { %v7941_v10 = vand.u32 2147483647, %v7852_v52  ;;  %v3371_v30 = vsel %vm3364_vm2, %v3367_v36, %v3370_v53  ;;  %v1712_v61 = vsel %vm1705_vm15, %v1708_v25, %v1711_v33  ;;  %v2006_v31 = vsub.s32 4, %v6710_v37  ;;  %vm7947_vm2 = vmmov %vm7940_vm0 }
 0x265   : > { %v3372_v56 = vsel %vm1703_vm14, nan, %v3371_v30  ;;  %v1713_v6 = vsel %vm1703_vm14, nan, %v1712_v61  ;;  %v1810_v27 = vxor.u32 2147483648, %v5441_v42  ;;  %v3474_v34 = vsel %vm3472_vm10, %v1813_v16, %v5441_v42 }
 0x266   : > { %vm7427_vm13 = vcmp.le.f32.partialorder %v7941_v10, 0.7853982  ;;  %5100 = vmatprep.mubr.msk.f32.mxu0 %vm7944_vm5, %v3372_v56  ;;  %5132 = vmatprep.mubr.msk.f32.mxu1 %vm7945_vm3, %v1713_v6  ;;  %vm3469_vm15 = vcmp.eq.s32.totalorder %v3467_v50, 0  ;;  %vm1809_vm9 = vcmp.eq.s32.totalorder %v1807_v19, 0  ;;  %v1814_v18 = vsel %vm1812_vm8, %v1813_v16, %v5441_v42 }
 0x267   : > { %v2008_v39 = vsel %vm7427_vm13, %v7852_v52, %v6977_v12  ;;  %v3570_v57 = vadd.s32 3, %v1906_v48  ;;  %vm3468_vm6 = vcmp.lt.s32.totalorder %v3467_v50, 2  ;;  %v3471_v12 = vsel %vm3469_vm15, %v5439_v63, %v1810_v27 }
 0x268   : > { %vm1808_vm12 = vcmp.lt.s32.totalorder %v1807_v19, 2  ;;  %v1811_v9 = vsel %vm1809_vm9, %v5439_v63, %v1810_v27  ;;  %vm1806_vm4 = vweird.f32 %v6382_v21  ;;  %v3475_v44 = vsel %vm3468_vm6, %v3471_v12, %v3474_v34 }
 0x269   : > { %v1815_v60 = vsel %vm1808_vm12, %v1811_v9, %v1814_v18  ;;  %5446 = vcosq.f32 %v2008_v39  ;;  %v3476_v11 = vsel %vm1806_vm4, nan, %v3475_v44  ;;  %vm7946_vm14 = vcmp.lt.s32.totalorder %v7852_v52, 0  ;;  %vm7955_vm12 = vmmov %vm7940_vm0 }
 0x26a   : > { %v1816_v24 = vsel %vm1806_vm4, nan, %v1815_v60  ;;  %v2007_v59 = vsel %vm7946_vm14, %v2006_v31, %v6710_v37  ;;  %5448 = vsinq.f32 %v2008_v39  ;;  %v2211_v4 = vsel %vm2128_vm11, %v2210_v29, %v7074_v14  ;;  %5101 = vmatmul.mubr.msk.f32.gmra.mxu0 %vm7940_vm0, %v3476_v11  ;;  %vm7956_vm4 = vmmov %vm7940_vm0 }
 0x26b   : > { %5133 = vmatmul.mubr.msk.f32.gmra.mxu1 %vm7947_vm2, %v1816_v24  ;;  %v3571_v21 = vand.u32 3, %v3570_v57  ;;  %v1910_v51 = vand.u32 3, %v1906_v48  ;;  %v7948_v3 = vand.u32 2147483647, %v6647_v7  ;;  %v2109_v37 = vsub.s32 4, %v6785_v49 }
 0x26c   : > { %v2009_v14 = vsel %vm7427_vm13, 0, %v2007_v59  ;;  %v7951_v29 = vand.u32 2147483647, %v6665_v40  ;;  %vm7954_vm5 = vcmp.lt.s32.totalorder %v6647_v7, 0  ;;  %v2212_v13 = vsub.s32 4, %v6848_v32 }
 0x26d   : > { %vm7459_vm7 = vcmp.le.f32.partialorder %v7948_v3, 0.7853982  ;;  %vm3573_vm10 = vcmp.eq.s32.totalorder %v3571_v21, 0  ;;  %vm1911_vm8 = vcmp.lt.s32.totalorder %v1910_v51, 2  ;;  %vm3576_vm13 = vcmp.eq.s32.totalorder %v3571_v21, 2 }
 0x26e   : > { %v2111_v23 = vsel %vm7459_vm7, %v6647_v7, %v6994_v2  ;;  %vm7472_vm1 = vcmp.le.f32.partialorder %v7951_v29, 0.7853982  ;;  %v2110_v2 = vsel %vm7954_vm5, %v2109_v37, %v6785_v49  ;;  %v3674_v17 = vadd.s32 3, %v2009_v14  ;;  %vm7957_vm5 = vmmov %vm7956_vm4 }
 0x26f   : > { %5450 = vcosq.f32 %v2111_v23  ;;  %v2214_v15 = vsel %vm7472_vm1, %v6665_v40, %v2211_v4  ;;  %v5443_v22 = vpop.eup %5442  ;;  %vm1915_vm3 = vcmp.eq.s32.totalorder %v1910_v51, 2  ;;  %vm1912_vm15 = vcmp.eq.s32.totalorder %v1910_v51, 0 }
 0x270   : > { %v5445_v26 = vpop.eup %5444  ;;  %v1916_v20 = vxor.u32 2147483648, %v5443_v22  ;;  %5452 = vsinq.f32 %v2111_v23  ;;  %v2112_v41 = vsel %vm7459_vm7, 0, %v2110_v2  ;;  %vm3572_vm9 = vcmp.lt.s32.totalorder %v3571_v21, 2  ;;  %v4334_v2 = vld [vmem:[%s7707_s5 + $0x38] sm:$0xff] }
 0x271   : > { %v1913_v55 = vxor.u32 2147483648, %v5445_v26  ;;  %5454 = vcosq.f32 %v2214_v15  ;;  %v2013_v47 = vand.u32 3, %v2009_v14  ;;  %vm1909_vm6 = vweird.f32 %v6472_v1 }
 0x272   : > { %v3578_v54 = vsel %vm3576_vm13, %v1916_v20, %v5445_v26  ;;  %v1917_v28 = vsel %vm1915_vm3, %v1916_v20, %v5445_v26  ;;  %v3675_v0 = vand.u32 3, %v3674_v17  ;;  %v3778_v38 = vadd.s32 3, %v2112_v41  ;;  %v4333_v26 = vld [vmem:[%s7707_s5 + $0x30] sm:$0xff]  ;;  %v4332_v20 = vld [vmem:[%s7707_s5 + $0x28] sm:$0xff]  ;;  %v4331_v17 = vld [vmem:[%s7707_s5 + $0x20] sm:$0xff] }
 0x273   : > { %v3575_v46 = vsel %vm3573_vm10, %v5443_v22, %v1913_v55  ;;  %v1914_v49 = vsel %vm1912_vm15, %v5443_v22, %v1913_v55  ;;  %v2213_v8 = vsel %vm2128_vm11, %v2212_v13, %v6848_v32  ;;  %5456 = vsinq.f32 %v2214_v15  ;;  %v4337_v15 = vld [vmem:[%s7707_s5 + $0x50] sm:$0xff]  ;;  %v4336_v22 = vld [vmem:[%s7707_s5 + $0x48] sm:$0xff]  ;;  %v4330_v55 = vld [vmem:[%s7707_s5 + $0x18] sm:$0xff] }
 0x274   : > { %v3579_v50 = vsel %vm3572_vm9, %v3575_v46, %v3578_v54  ;;  %v1918_v19 = vsel %vm1911_vm8, %v1914_v49, %v1917_v28  ;;  %vm2015_vm14 = vcmp.eq.s32.totalorder %v2013_v47, 0  ;;  %vm2018_vm0 = vcmp.eq.s32.totalorder %v2013_v47, 2  ;;  %5151 = vmatprep.subr.mxu0 %v4337_v15  ;;  %v4329_v13 = vld [vmem:[%s7707_s5 + $0x10] sm:$0xff]  ;;  %v4328_v54 = vld [vmem:[%s7707_s5 + $0x8] sm:$0xff]  ;;  %v4327_v28 = vld [vmem:[%s7707_s5] sm:$0xff] }
 0x275   : > { %v3580_v58 = vsel %vm1909_vm6, nan, %v3579_v50  ;;  %v1919_v62 = vsel %vm1909_vm6, nan, %v1918_v19  ;;  %vm3677_vm2 = vcmp.eq.s32.totalorder %v3675_v0, 0  ;;  %vm3680_vm7 = vcmp.eq.s32.totalorder %v3675_v0, 2  ;;  %5152 = vmatpush3.msra.mxu0 %v4337_v15  ;;  %v4525_v46 = vld [vmem:[%s7709_s7 + $0x70] sm:$0xff]  ;;  %v4524_v49 = vld [vmem:[%s7709_s7 + $0x68] sm:$0xff] }
 0x276   : > { %v5447_v45 = vpop.eup %5446  ;;  %5103 = vmatprep.mubr.msk.f32.mxu0 %vm7955_vm12, %v3580_v58  ;;  %5135 = vmatprep.mubr.msk.f32.mxu1 %vm7956_vm4, %v1919_v62  ;;  %v2215_v63 = vsel %vm7472_vm1, 0, %v2213_v8  ;;  %v3779_v25 = vand.u32 3, %v3778_v38  ;;  %v2116_v32 = vand.u32 3, %v2112_v41  ;;  %vm3676_vm11 = vcmp.lt.s32.totalorder %v3675_v0, 2  ;;  %vm7958_vm1 = vmmov %vm7956_vm4  ;;  %v4526_v41 = vld [vmem:[%s7709_s7 + $0x78] sm:$0xff]  ;;  %v4521_v19 = vld [vmem:[%s7709_s7 + $0x50] sm:$0xff] }
 0x277   : > { %v5449_v53 = vpop.eup %5448  ;;  %v2019_v33 = vxor.u32 2147483648, %v5447_v45  ;;  %vm2014_vm10 = vcmp.lt.s32.totalorder %v2013_v47, 2  ;;  %vm2012_vm8 = vweird.f32 %v7852_v52  ;;  %v3882_v61 = vadd.s32 3, %v2215_v63  ;;  %5153 = vmatprep.subr.mxu0 %v4336_v22  ;;  %5197 = vmatprep.subr.mxu1 %v4526_v41  ;;  %v4523_v47 = vld [vmem:[%s7709_s7 + $0x60] sm:$0xff]  ;;  %v4522_v50 = vld [vmem:[%s7709_s7 + $0x58] sm:$0xff] }
 0x278   : > { %v2016_v1 = vxor.u32 2147483648, %v5449_v53  ;;  %vm3784_vm13 = vcmp.eq.s32.totalorder %v3779_v25, 2  ;;  %vm2121_vm3 = vcmp.eq.s32.totalorder %v2116_v32, 2  ;;  %vm2117_vm15 = vcmp.lt.s32.totalorder %v2116_v32, 2  ;;  %5154 = vmatpush3.msra.mxu0 %v4336_v22  ;;  %5198 = vmatpush3.msra.mxu1 %v4526_v41  ;;  %v7558_v38 = vld [vmem:[%s7706_s4] ss:$0 sm:$0xff] }
 0x279   : > { %v3682_v48 = vsel %vm3680_vm7, %v2019_v33, %v5449_v53  ;;  %v2020_v36 = vsel %vm2018_vm0, %v2019_v33, %v5449_v53  ;;  %vm3781_vm9 = vcmp.eq.s32.totalorder %v3779_v25, 0  ;;  %vm2118_vm6 = vcmp.eq.s32.totalorder %v2116_v32, 0  ;;  %vm7960_vm0 = vmmov %vm7958_vm1  ;;  %5199 = vmatprep.subr.mxu1 %v4525_v46 }
 0x27a   : > { %v3679_v16 = vsel %vm3677_vm2, %v5447_v45, %v2016_v1  ;;  %v2017_v10 = vsel %vm2015_vm14, %v5447_v45, %v2016_v1  ;;  %v3883_v52 = vand.u32 3, %v3882_v61  ;;  %v2219_v12 = vand.u32 3, %v2215_v63  ;;  %vm7959_vm14 = vmmov %vm7958_vm1  ;;  %5200 = vmatpush3.msra.mxu1 %v4525_v46 }
 0x27b   : > { %v3683_v42 = vsel %vm3676_vm11, %v3679_v16, %v3682_v48  ;;  %v2021_v30 = vsel %vm2014_vm10, %v2017_v10, %v2020_v36  ;;  %vm3780_vm12 = vcmp.lt.s32.totalorder %v3779_v25, 2  ;;  %vm2115_vm4 = vweird.f32 %v6647_v7  ;;  %5201 = vmatprep.subr.mxu1 %v4524_v49 }
 0x27c   : > { %v5451_v35 = vpop.eup %5450  ;;  %v3684_v31 = vsel %vm2012_vm8, nan, %v3683_v42  ;;  %v2022_v39 = vsel %vm2012_vm8, nan, %v2021_v30  ;;  %vm3888_vm2 = vcmp.eq.s32.totalorder %v3883_v52, 2  ;;  %vm2224_vm7 = vcmp.eq.s32.totalorder %v2219_v12, 2  ;;  %5202 = vmatpush3.msra.mxu1 %v4524_v49 }
 0x27d   : > { %v2122_v56 = vxor.u32 2147483648, %v5451_v35  ;;  %v5453_v6 = vpop.eup %5452  ;;  %5104 = vmatmul.mubr.msk.f32.gmra.mxu0 %vm7957_vm5, %v3684_v31  ;;  %5136 = vmatmul.mubr.msk.f32.gmra.mxu1 %vm7958_vm1, %v2022_v39  ;;  %vm3885_vm11 = vcmp.eq.s32.totalorder %v3883_v52, 0  ;;  %vm2221_vm10 = vcmp.eq.s32.totalorder %v2219_v12, 0  ;;  %vm3884_vm8 = vcmp.lt.s32.totalorder %v3883_v52, 2 }
 0x27e   : > { %v5455_v27 = vpop.eup %5454  ;;  %v2119_v34 = vxor.u32 2147483648, %v5453_v6  ;;  %vm2220_vm5 = vcmp.lt.s32.totalorder %v2219_v12, 2  ;;  %vm2218_vm1 = vweird.f32 %v6665_v40  ;;  %v4335_v40 = vld [vmem:[%s7707_s5 + $0x40] sm:$0xff]  ;;  %5203 = vmatprep.subr.mxu1 %v4523_v47 }
 0x27f   : > { %v3786_v18 = vsel %vm3784_vm13, %v2122_v56, %v5453_v6  ;;  %v2123_v57 = vsel %vm2121_vm3, %v2122_v56, %v5453_v6  ;;  %v2225_v60 = vxor.u32 2147483648, %v5455_v27  ;;  %vm7961_vm13 = vmmov %vm7960_vm0  ;;  %5155 = vmatprep.subr.mxu0 %v4335_v40  ;;  %5204 = vmatpush3.msra.mxu1 %v4523_v47 }
 0x280   : > { %v3783_v9 = vsel %vm3781_vm9, %v5451_v35, %v2119_v34  ;;  %v2120_v44 = vsel %vm2118_vm6, %v5451_v35, %v2119_v34  ;;  %v5457_v21 = vpop.eup %5456  ;;  %vm7962_vm3 = vmmov %vm7960_vm0  ;;  %5156 = vmatpush3.msra.mxu0 %v4335_v40  ;;  %5205 = vmatprep.subr.mxu1 %v4522_v50 }
 0x281   : > { %v3787_v11 = vsel %vm3780_vm12, %v3783_v9, %v3786_v18  ;;  %v2124_v24 = vsel %vm2117_vm15, %v2120_v44, %v2123_v57  ;;  %v2222_v51 = vxor.u32 2147483648, %v5457_v21  ;;  %v3890_v3 = vsel %vm3888_vm2, %v2225_v60, %v5457_v21  ;;  %5157 = vmatprep.subr.mxu0 %v4334_v2  ;;  %5206 = vmatpush3.msra.mxu1 %v4522_v50 }
 0x282   : > { %v3788_v59 = vsel %vm2115_vm4, nan, %v3787_v11  ;;  %v2125_v4 = vsel %vm2115_vm4, nan, %v2124_v24  ;;  %v2226_v5 = vsel %vm2224_vm7, %v2225_v60, %v5457_v21  ;;  %5158 = vmatpush3.msra.mxu0 %v4334_v2  ;;  %5207 = vmatprep.subr.mxu1 %v4521_v19 }
 0x283   : > { %5106 = vmatprep.mubr.msk.f32.mxu0 %vm7959_vm14, %v3788_v59  ;;  %5138 = vmatprep.mubr.msk.f32.mxu1 %vm7960_vm0, %v2125_v4  ;;  %v3887_v37 = vsel %vm3885_vm11, %v5455_v27, %v2222_v51  ;;  %v2223_v7 = vsel %vm2221_vm10, %v5455_v27, %v2222_v51 }
 0x284   : > { %v3891_v23 = vsel %vm3884_vm8, %v3887_v37, %v3890_v3  ;;  %v2227_v14 = vsel %vm2220_vm5, %v2223_v7, %v2226_v5  ;;  %5159 = vmatprep.subr.mxu0 %v4333_v26  ;;  %5208 = vmatpush3.msra.mxu1 %v4521_v19 }
 0x285   : > { %v3892_v29 = vsel %vm2218_vm1, nan, %v3891_v23  ;;  %v2228_v43 = vsel %vm2218_vm1, nan, %v2227_v14  ;;  %5160 = vmatpush3.msra.mxu0 %v4333_v26 }
 0x286   : > { %5107 = vmatmul.mubr.msk.f32.gmra.mxu0 %vm7961_vm13, %v3892_v29  ;;  %5139 = vmatmul.mubr.msk.f32.gmra.mxu1 %vm7962_vm3, %v2228_v43 }
 0x287   : > { %5161 = vmatprep.subr.mxu0 %v4332_v20 }
 0x288   : > { %5162 = vmatpush3.msra.mxu0 %v4332_v20 }
 0x289   : > { %5163 = vmatprep.subr.mxu0 %v4331_v17 }
 0x28a   : > { %5164 = vmatpush3.msra.mxu0 %v4331_v17 }
 0x28b   : > { %5165 = vmatprep.subr.mxu0 %v4330_v55 }
 0x28c   : > { %5166 = vmatpush3.msra.mxu0 %v4330_v55 }
 0x28d   : > { %5167 = vmatprep.subr.mxu0 %v4329_v13 }
 0x28e   : > { %5168 = vmatpush3.msra.mxu0 %v4329_v13 }
 0x28f   : > { %5169 = vmatprep.subr.mxu0 %v4328_v54 }
 0x290   : > { %5170 = vmatpush3.msra.mxu0 %v4328_v54 }
 0x291   : > { %5171 = vmatprep.subr.mxu0 %v4327_v28 }
 0x292   : > { %5172 = vmatpush3.msra.mxu0 %v4327_v28 }
 0x302   : > { %v5087_v0 = vpop.f32.mrf.mxu0 }
 0x303   : > { %v5119_v58 = vpop.f32.mrf.mxu1 }
 0x304   : > { %v4215_v62 = vadd.f32 %v5119_v58, %v5087_v0  ;;  %v4016_v8 = vpop.f32.mrf.mxu0 }
 0x305   : > { %v4209_v45 = vpop.f32.mrf.mxu1 }
 0x306   : > { %v4210_v53 = vadd.f32 %v4209_v45, %v4016_v8  ;;  %v4296_v33 = vadd.f32 %v7558_v38, %v4215_v62 }
 0x307   : > { %v5090_v1 = vpop.f32.mrf.mxu0 }
 0x308   : > { %v5122_v63 = vpop.f32.mrf.mxu1  ;;  %v4295_v48 = vadd.f32 %v7558_v38, %v4210_v53 }
 0x309   : > { %v4225_v36 = vadd.f32 %v5122_v63, %v5090_v1  ;;  %v4026_v25 = vpop.f32.mrf.mxu0 }
 0x30a   : > { %v4219_v32 = vpop.f32.mrf.mxu1  ;;  %5458 = vtanh.f32 %v4295_v48 }
 0x30b   : > { %v4220_v16 = vadd.f32 %v4219_v32, %v4026_v25  ;;  %5460 = vtanh.f32 %v4296_v33  ;;  %v4298_v10 = vadd.f32 %v7558_v38, %v4225_v36  ;;  %v5093_v35 = vpop.f32.mrf.mxu0 }
 0x30c   : > { %v5125_v42 = vpop.f32.mrf.mxu1 }
 0x30d   : > { %v4297_v30 = vadd.f32 %v7558_v38, %v4220_v16  ;;  %v4235_v61 = vadd.f32 %v5125_v42, %v5093_v35  ;;  %v4036_v31 = vpop.f32.mrf.mxu0 }
 0x30e   : > { %v4229_v39 = vpop.f32.mrf.mxu1 }
 0x30f   : > { %5462 = vtanh.f32 %v4297_v30  ;;  %v4230_v56 = vadd.f32 %v4229_v39, %v4036_v31  ;;  %v4300_v6 = vadd.f32 %v7558_v38, %v4235_v61  ;;  %v4520_v30 = vld [vmem:[%s7709_s7 + $0x48] sm:$0xff]  ;;  %v4518_v61 = vld [vmem:[%s7709_s7 + $0x38] sm:$0xff]  ;;  %v4517_v31 = vld [vmem:[%s7709_s7 + $0x30] sm:$0xff] }
 0x310   : > { %5464 = vtanh.f32 %v4298_v10  ;;  %v5096_v34 = vpop.f32.mrf.mxu0  ;;  %v5128_v18 = vpop.f32.mrf.mxu1  ;;  %5209 = vmatprep.subr.mxu1 %v4520_v30  ;;  %v4516_v39 = vld [vmem:[%s7709_s7 + $0x28] sm:$0xff] }
 0x311   : > { %v4299_v27 = vadd.f32 %v7558_v38, %v4230_v56  ;;  %v4245_v57 = vadd.f32 %v5128_v18, %v5096_v34  ;;  %5210 = vmatpush3.msra.mxu1 %v4520_v30  ;;  %v4515_v56 = vld [vmem:[%s7709_s7 + $0x20] sm:$0xff]  ;;  %v4512_v34 = vld [vmem:[%s7709_s7 + $0x8] sm:$0xff] }
 0x312   : > { %v4046_v52 = vpop.f32.mrf.mxu0  ;;  %v4239_v12 = vpop.f32.mrf.mxu1  ;;  %v4511_v18 = vld [vmem:[%s7709_s7] sm:$0xff] }
 0x313   : > { %5466 = vtanh.f32 %v4299_v27  ;;  %v4240_v9 = vadd.f32 %v4239_v12, %v4046_v52  ;;  %v4302_v44 = vadd.f32 %v7558_v38, %v4245_v57  ;;  %v4513_v27 = vld [vmem:[%s7709_s7 + $0x10] sm:$0xff]  ;;  %v7609_v57 = vld [vmem:[%s7708_s6] ss:$0 sm:$0xff] }
 0x314   : > { %5468 = vtanh.f32 %v4300_v6  ;;  %v4514_v6 = vld [vmem:[%s7709_s7 + $0x18] sm:$0xff] }
 0x315   : > { %v4301_v60 = vadd.f32 %v7558_v38, %v4240_v9 }
 0x317   : > { %v5459_v11 = vpop.eup %5458  ;;  %5470 = vtanh.f32 %v4301_v60 }
 0x318   : > { %v5461_v24 = vpop.eup %5460  ;;  %5173 = vmatprep.mubr.f32.mxu0 %v5459_v11  ;;  %5472 = vtanh.f32 %v4302_v44 }
 0x319   : > { %5174 = vmatmul.mubr.f32.vlgmr.msra.gmra.mxu0 %v5461_v24 }
 0x31c   : > { %v5463_v59 = vpop.eup %5462 }
 0x31d   : > { %v5465_v4 = vpop.eup %5464  ;;  %5176 = vmatprep.mubr.f32.mxu0 %v5463_v59 }
 0x31e   : > { %5177 = vmatmul.mubr.f32.gmra.mxu0 %v5465_v4 }
 0x31f   : > { %v5099_v21 = vpop.f32.mrf.mxu0 }
 0x320   : > { %v5131_v51 = vpop.f32.mrf.mxu1  ;;  %v5467_v3 = vpop.eup %5466 }
 0x321   : > { %v4255_v5 = vadd.f32 %v5131_v51, %v5099_v21  ;;  %v5469_v37 = vpop.eup %5468  ;;  %v4056_v7 = vpop.f32.mrf.mxu0  ;;  %5179 = vmatprep.mubr.f32.mxu0 %v5467_v3 }
 0x322   : > { %v4249_v23 = vpop.f32.mrf.mxu1  ;;  %5180 = vmatmul.mubr.f32.gmra.mxu0 %v5469_v37 }
 0x323   : > { %v4250_v14 = vadd.f32 %v4249_v23, %v4056_v7  ;;  %v4304_v29 = vadd.f32 %v7558_v38, %v4255_v5 }
 0x324   : > { %v5471_v15 = vpop.eup %5470 }
 0x325   : > { %v4303_v43 = vadd.f32 %v7558_v38, %v4250_v14  ;;  %v5473_v22 = vpop.eup %5472  ;;  %5182 = vmatprep.mubr.f32.mxu0 %v5471_v15 }
 0x326   : > { %5183 = vmatmul.mubr.f32.gmra.mxu0 %v5473_v22 }
 0x327   : > { %5474 = vtanh.f32 %v4303_v43 }
 0x328   : > { %5476 = vtanh.f32 %v4304_v29 }
 0x32a   : > { %v5102_v40 = vpop.f32.mrf.mxu0 }
 0x32b   : > { %v5134_v2 = vpop.f32.mrf.mxu1 }
 0x32c   : > { %v4265_v26 = vadd.f32 %v5134_v2, %v5102_v40  ;;  %v4066_v20 = vpop.f32.mrf.mxu0 }
 0x32d   : > { %v4259_v17 = vpop.f32.mrf.mxu1 }
 0x32e   : > { %v4260_v55 = vadd.f32 %v4259_v17, %v4066_v20  ;;  %v4306_v13 = vadd.f32 %v7558_v38, %v4265_v26 }
 0x330   : > { %v4305_v54 = vadd.f32 %v7558_v38, %v4260_v55 }
 0x332   : > { %5478 = vtanh.f32 %v4305_v54 }
 0x333   : > { %5480 = vtanh.f32 %v4306_v13 }
 0x334   : > { %v5475_v28 = vpop.eup %5474 }
 0x335   : > { %v5477_v41 = vpop.eup %5476  ;;  %5185 = vmatprep.mubr.f32.mxu0 %v5475_v28 }
 0x336   : > { %5186 = vmatmul.mubr.f32.gmra.mxu0 %v5477_v41 }
 0x33d   : > { %v5105_v46 = vpop.f32.mrf.mxu0  ;;  %v5137_v49 = vpop.f32.mrf.mxu1 }
 0x33e   : > { %v4275_v47 = vadd.f32 %v5137_v49, %v5105_v46 }
 0x33f   : > { %v5479_v50 = vpop.eup %5478  ;;  %v4076_v19 = vpop.f32.mrf.mxu0 }
 0x340   : > { %v4269_v0 = vpop.f32.mrf.mxu1  ;;  %v5481_v58 = vpop.eup %5480  ;;  %5188 = vmatprep.mubr.f32.mxu0 %v5479_v50  ;;  %v4308_v8 = vadd.f32 %v7558_v38, %v4275_v47 }
 0x341   : > { %v4270_v62 = vadd.f32 %v4269_v0, %v4076_v19  ;;  %5189 = vmatmul.mubr.f32.gmra.mxu0 %v5481_v58 }
 0x343   : > { %v4307_v45 = vadd.f32 %v7558_v38, %v4270_v62 }
 0x345   : > { %5482 = vtanh.f32 %v4307_v45 }
 0x346   : > { %5484 = vtanh.f32 %v4308_v8  ;;  %v5108_v53 = vpop.f32.mrf.mxu0  ;;  %v5140_v33 = vpop.f32.mrf.mxu1 }
 0x347   : > { %v4285_v1 = vadd.f32 %v5140_v33, %v5108_v53 }
 0x348   : > { %v4086_v63 = vpop.f32.mrf.mxu0  ;;  %v4279_v48 = vpop.f32.mrf.mxu1 }
 0x349   : > { %v4280_v36 = vadd.f32 %v4279_v48, %v4086_v63  ;;  %v4310_v25 = vadd.f32 %v7558_v38, %v4285_v1 }
 0x34b   : > { %v4309_v32 = vadd.f32 %v7558_v38, %v4280_v36  ;;  %v4519_v38 = vld [vmem:[%s7709_s7 + $0x40] sm:$0xff] }
 0x34c   : > { %5211 = vmatprep.subr.mxu1 %v4519_v38 }
 0x34d   : > { %5486 = vtanh.f32 %v4309_v32  ;;  %5212 = vmatpush3.msra.mxu1 %v4519_v38  ;;  %v4966_v32 = vld [vmem:[%s7710_s8] ss:$0 sm:$0xff] }
 0x34e   : > { %5488 = vtanh.f32 %v4310_v25  ;;  %5213 = vmatprep.subr.mxu1 %v4518_v61 }
 0x34f   : > { %5214 = vmatpush3.msra.mxu1 %v4518_v61 }
 0x350   : > { %5215 = vmatprep.subr.mxu1 %v4517_v31 }
 0x351   : > { %5216 = vmatpush3.msra.mxu1 %v4517_v31 }
 0x352   : > { %v5483_v16 = vpop.eup %5482  ;;  %5217 = vmatprep.subr.mxu1 %v4516_v39 }
 0x353   : > { %v5485_v10 = vpop.eup %5484  ;;  %5191 = vmatprep.mubr.f32.mxu0 %v5483_v16  ;;  %5218 = vmatpush3.msra.mxu1 %v4516_v39 }
 0x354   : > { %5192 = vmatmul.mubr.f32.gmra.mxu0 %v5485_v10  ;;  %5219 = vmatprep.subr.mxu1 %v4515_v56 }
 0x355   : > { %5220 = vmatpush3.msra.mxu1 %v4515_v56 }
 0x356   : > { %5221 = vmatprep.subr.mxu1 %v4514_v6 }
 0x357   : > { %5222 = vmatpush3.msra.mxu1 %v4514_v6 }
 0x358   : > { %5223 = vmatprep.subr.mxu1 %v4513_v27 }
 0x359   : > { %5224 = vmatpush3.msra.mxu1 %v4513_v27 }
 0x35a   : > { %v5487_v35 = vpop.eup %5486  ;;  %5225 = vmatprep.subr.mxu1 %v4512_v34 }
 0x35b   : > { %v5489_v42 = vpop.eup %5488  ;;  %5194 = vmatprep.mubr.f32.mxu0 %v5487_v35  ;;  %5226 = vmatpush3.msra.mxu1 %v4512_v34 }
 0x35c   : > { %5195 = vmatmul.mubr.f32.gmra.mxu0 %v5489_v42  ;;  %5227 = vmatprep.subr.mxu1 %v4511_v18 }
 0x35d   : > { %5228 = vmatpush3.msra.mxu1 %v4511_v18 }
 0x3d9   : > { %v5175_v52 = vpop.f32.mrf.mxu0 }
 0x3da   : > { %v4422_v12 = vadd.f32 %v5175_v52, %v7609_v57 }
 0x3db   : > { %v4416_v9 = vpop.f32.mrf.mxu0 }
 0x3dc   : > { %v4417_v44 = vadd.f32 %v7609_v57, %v4416_v9 }
 0x3de   : > { %v5178_v60 = vpop.f32.mrf.mxu0  ;;  %5490 = vtanh.f32 %v4417_v44 }
 0x3df   : > { %5492 = vtanh.f32 %v4422_v12  ;;  %v4432_v11 = vadd.f32 %v5178_v60, %v7609_v57 }
 0x3e0   : > { %v4426_v24 = vpop.f32.mrf.mxu0 }
 0x3e1   : > { %v4427_v59 = vadd.f32 %v7609_v57, %v4426_v24 }
 0x3e2   : > { %v5181_v4 = vpop.f32.mrf.mxu0 }
 0x3e3   : > { %5494 = vtanh.f32 %v4427_v59  ;;  %v4442_v21 = vadd.f32 %v5181_v4, %v7609_v57 }
 0x3e4   : > { %5496 = vtanh.f32 %v4432_v11  ;;  %v4436_v51 = vpop.f32.mrf.mxu0 }
 0x3e5   : > { %v4437_v3 = vadd.f32 %v7609_v57, %v4436_v51 }
 0x3e6   : > { %v5184_v5 = vpop.f32.mrf.mxu0 }
 0x3e7   : > { %5498 = vtanh.f32 %v4437_v3  ;;  %v4452_v37 = vadd.f32 %v5184_v5, %v7609_v57 }
 0x3e8   : > { %5500 = vtanh.f32 %v4442_v21  ;;  %v4446_v7 = vpop.f32.mrf.mxu0 }
 0x3e9   : > { %v4447_v23 = vadd.f32 %v7609_v57, %v4446_v7 }
 0x3eb   : > { %v5491_v14 = vpop.eup %5490  ;;  %5502 = vtanh.f32 %v4447_v23 }
 0x3ec   : > { %v5493_v29 = vpop.eup %5492  ;;  %5229 = vmatprep.mubr.f32.mxu1 %v5491_v14  ;;  %5504 = vtanh.f32 %v4452_v37 }
 0x3ed   : > { %5230 = vmatmul.mubr.f32.vlgmr.msra.gmra.mxu1 %v5493_v29 }
 0x3f0   : > { %v5495_v43 = vpop.eup %5494 }
 0x3f1   : > { %v5497_v15 = vpop.eup %5496  ;;  %5232 = vmatprep.mubr.f32.mxu1 %v5495_v43 }
 0x3f2   : > { %5233 = vmatmul.mubr.f32.gmra.mxu1 %v5497_v15 }
 0x3f4   : > { %v5499_v22 = vpop.eup %5498 }
 0x3f5   : > { %v5501_v40 = vpop.eup %5500  ;;  %5235 = vmatprep.mubr.f32.mxu1 %v5499_v22 }
 0x3f6   : > { %v5187_v2 = vpop.f32.mrf.mxu0  ;;  %5236 = vmatmul.mubr.f32.gmra.mxu1 %v5501_v40 }
 0x3f7   : > { %v4462_v26 = vadd.f32 %v5187_v2, %v7609_v57 }
 0x3f8   : > { %v4456_v20 = vpop.f32.mrf.mxu0  ;;  %v5503_v55 = vpop.eup %5502 }
 0x3f9   : > { %v4457_v17 = vadd.f32 %v7609_v57, %v4456_v20  ;;  %v5505_v13 = vpop.eup %5504  ;;  %5238 = vmatprep.mubr.f32.mxu1 %v5503_v55 }
 0x3fa   : > { %5239 = vmatmul.mubr.f32.gmra.mxu1 %v5505_v13 }
 0x3fb   : > { %5506 = vtanh.f32 %v4457_v17 }
 0x3fc   : > { %5508 = vtanh.f32 %v4462_v26 }
 0x401   : > { %v5190_v54 = vpop.f32.mrf.mxu0 }
 0x402   : > { %v4472_v28 = vadd.f32 %v5190_v54, %v7609_v57 }
 0x403   : > { %v4466_v41 = vpop.f32.mrf.mxu0 }
 0x404   : > { %v4467_v46 = vadd.f32 %v7609_v57, %v4466_v41 }
 0x406   : > { %5510 = vtanh.f32 %v4467_v46 }
 0x407   : > { %5512 = vtanh.f32 %v4472_v28 }
 0x408   : > { %v5507_v49 = vpop.eup %5506 }
 0x409   : > { %v5509_v47 = vpop.eup %5508  ;;  %5241 = vmatprep.mubr.f32.mxu1 %v5507_v49 }
 0x40a   : > { %5242 = vmatmul.mubr.f32.gmra.mxu1 %v5509_v47 }
 0x413   : > { %v5511_v50 = vpop.eup %5510 }
 0x414   : > { %v5193_v19 = vpop.f32.mrf.mxu0  ;;  %v5513_v0 = vpop.eup %5512  ;;  %5244 = vmatprep.mubr.f32.mxu1 %v5511_v50 }
 0x415   : > { %v4482_v58 = vadd.f32 %v5193_v19, %v7609_v57  ;;  %5245 = vmatmul.mubr.f32.gmra.mxu1 %v5513_v0 }
 0x416   : > { %v4476_v62 = vpop.f32.mrf.mxu0 }
 0x417   : > { %v4477_v8 = vadd.f32 %v7609_v57, %v4476_v62 }
 0x419   : > { %5514 = vtanh.f32 %v4477_v8 }
 0x41a   : > { %5516 = vtanh.f32 %v4482_v58 }
 0x41c   : > { %v5196_v45 = vpop.f32.mrf.mxu0 }
 0x41d   : > { %v4492_v53 = vadd.f32 %v5196_v45, %v7609_v57 }
 0x41e   : > { %v4486_v33 = vpop.f32.mrf.mxu0 }
 0x41f   : > { %v4487_v1 = vadd.f32 %v7609_v57, %v4486_v33 }
 0x421   : > { %5518 = vtanh.f32 %v4487_v1 }
 0x422   : > { %5520 = vtanh.f32 %v4492_v53 }
 0x426   : > { %v5515_v63 = vpop.eup %5514 }
 0x427   : > { %v5517_v48 = vpop.eup %5516  ;;  %5247 = vmatprep.mubr.f32.mxu1 %v5515_v63 }
 0x428   : > { %5248 = vmatmul.mubr.f32.gmra.mxu1 %v5517_v48 }
 0x42e   : > { %v5519_v36 = vpop.eup %5518 }
 0x42f   : > { %v5521_v25 = vpop.eup %5520  ;;  %5250 = vmatprep.mubr.f32.mxu1 %v5519_v36 }
 0x430   : > { %5251 = vmatmul.mubr.f32.gmra.mxu1 %v5521_v25 }
 0x4ad   : > { %v5231_v16 = vpop.f32.mrf.mxu1 }
 0x4ae   : > { %v4606_v10 = vadd.f32 %v5231_v16, %v4966_v32 }
 0x4af   : > { %v4600_v35 = vpop.f32.mrf.mxu1 }
 0x4b0   : > { %4680 = vst [vmem:[%s7633_s14 + $0x8] sm:$0xff] %v4606_v10  ;;  %v4601_v42 = vadd.f32 %v4966_v32, %v4600_v35 }
 0x4b2   : > { %v5234_v30 = vpop.f32.mrf.mxu1  ;;  %4679 = vst [vmem:[%s7633_s14] sm:$0xff] %v4601_v42 }
 0x4b3   : > { %v4616_v38 = vadd.f32 %v5234_v30, %v4966_v32 }
 0x4b4   : > { %v4610_v61 = vpop.f32.mrf.mxu1 }
 0x4b5   : > { %4682 = vst [vmem:[%s7633_s14 + $0x18] sm:$0xff] %v4616_v38  ;;  %v4611_v31 = vadd.f32 %v4966_v32, %v4610_v61 }
 0x4b6   : > { %v5237_v39 = vpop.f32.mrf.mxu1 }
 0x4b7   : > { %4681 = vst [vmem:[%s7633_s14 + $0x10] sm:$0xff] %v4611_v31  ;;  %v4626_v56 = vadd.f32 %v5237_v39, %v4966_v32 }
 0x4b8   : > { %v4620_v6 = vpop.f32.mrf.mxu1 }
 0x4b9   : > { %4684 = vst [vmem:[%s7633_s14 + $0x28] sm:$0xff] %v4626_v56  ;;  %v4621_v27 = vadd.f32 %v4966_v32, %v4620_v6 }
 0x4ba   : > { %v5240_v34 = vpop.f32.mrf.mxu1 }
 0x4bb   : > { %4683 = vst [vmem:[%s7633_s14 + $0x20] sm:$0xff] %v4621_v27  ;;  %v4636_v18 = vadd.f32 %v5240_v34, %v4966_v32 }
 0x4bc   : > { %v4630_v57 = vpop.f32.mrf.mxu1 }
 0x4bd   : > { %4686 = vst [vmem:[%s7633_s14 + $0x38] sm:$0xff] %v4636_v18  ;;  %v4631_v52 = vadd.f32 %v4966_v32, %v4630_v57 }
 0x4bf   : > { %4685 = vst [vmem:[%s7633_s14 + $0x30] sm:$0xff] %v4631_v52 }
 0x4ca   : > { %v5243_v12 = vpop.f32.mrf.mxu1 }
 0x4cb   : > { %v4646_v9 = vadd.f32 %v5243_v12, %v4966_v32 }
 0x4cc   : > { %v4640_v44 = vpop.f32.mrf.mxu1 }
 0x4cd   : > { %4688 = vst [vmem:[%s7633_s14 + $0x48] sm:$0xff] %v4646_v9  ;;  %v4641_v60 = vadd.f32 %v4966_v32, %v4640_v44 }
 0x4cf   : > { %4687 = vst [vmem:[%s7633_s14 + $0x40] sm:$0xff] %v4641_v60 }
 0x4d5   : > { %v5246_v11 = vpop.f32.mrf.mxu1 }
 0x4d6   : > { %v4656_v24 = vadd.f32 %v5246_v11, %v4966_v32 }
 0x4d7   : > { %v4650_v59 = vpop.f32.mrf.mxu1 }
 0x4d8   : > { %4690 = vst [vmem:[%s7633_s14 + $0x58] sm:$0xff] %v4656_v24  ;;  %v4651_v4 = vadd.f32 %v4966_v32, %v4650_v59 }
 0x4da   : > { %4689 = vst [vmem:[%s7633_s14 + $0x50] sm:$0xff] %v4651_v4 }
 0x4e8   : > { %v5249_v21 = vpop.f32.mrf.mxu1 }
 0x4e9   : > { %v4666_v51 = vadd.f32 %v5249_v21, %v4966_v32 }
 0x4ea   : > { %v4660_v3 = vpop.f32.mrf.mxu1 }
 0x4eb   : > { %4692 = vst [vmem:[%s7633_s14 + $0x68] sm:$0xff] %v4666_v51  ;;  %v4661_v5 = vadd.f32 %v4966_v32, %v4660_v3 }
 0x4ed   : > { %4691 = vst [vmem:[%s7633_s14 + $0x60] sm:$0xff] %v4661_v5 }
 0x4f0   : > { %v5252_v37 = vpop.f32.mrf.mxu1 }
 0x4f1   : > { %v4676_v7 = vadd.f32 %v5252_v37, %v4966_v32 }
 0x4f2   : > { %v4670_v23 = vpop.f32.mrf.mxu1 }
 0x4f3   : > { %4694 = vst [vmem:[%s7633_s14 + $0x78] sm:$0xff] %v4676_v7  ;;  %v4671_v14 = vadd.f32 %v4966_v32, %v4670_v23 }
 0x4f5   : > { %4693 = vst [vmem:[%s7633_s14 + $0x70] sm:$0xff] %v4671_v14 }
 0x4f6   : > { %5587 = shalt.err (!%p5584_p3)
}
 0x4f7   : > { %s5588_s26 = scalar_lea.hbm %s7654_s23, 2048  ;;  %s5592_s16 = scalar_lea.hbm %s7711_s9, 4096 }
 0x4f8   : > { %p5589_p2 = scmp.ne.s32.totalorder %s7654_s23, %s5588_s26  ;;  %p5593_p7 = scmp.lt.s32.totalorder %s7654_s23, %s7711_s9 }
 0x4f9   : > { %p5594_p6 = scmp.lt.s32.totalorder %s5592_s16, %s5588_s26 }
 0x4fa   : > { %p5590_p4 = pnand %p5589_p2, %p5747_p5 }
 0x4fb   : > { %p5595_p9 = por %p5594_p6, %p5593_p7 }
 0x4fc   : > { %p5591_p13 = pneg %p5590_p4 }
 0x4fe   : > { %p5596_p10 = pnand %p5595_p9, %p5591_p13 }
 0x500   : > { %5599 = shalt.err (!%p5596_p10)
}
 0x501   : > { %s5657_s13 = smov 128   ;;  %s5658_s24 = smov 8  }
 0x502   : > { %5325 = dma.vmem_to_hbm [thread:$0]  (%p5747_p5), %s7656_s17, 2048, %s7654_s23, %s7662_s21, %s5657_s13, %s5657_s13, %s5658_s24  }
 0x503 PF: > { %p5342_p12 = scmp.ge.s32.totalorder %s5642_s12, 2  ;;  %s4724_s27 = sand.u32 1, %s5630_s30  }
 0x504   : > { %p7963_p8 = scmp.ne.s32.totalorder %s7789_s20, 0  ;;  %s4725_s28 = scalar_lea.sflag [#allocation4], %s4724_s27 }
 0x506   : > { %p5335_p11 = pnand %p5342_p12, %p7963_p8 }
 0x508   : > { %p5336_p0 = pneg %p5335_p11 }
 0x50a   : > { %5625 = dma.done.wait (%p5336_p0), %s4725_s28, 2048  }
 0x50b   : > { %5627 = vsyncadd (%p5336_p0), %s4725_s28, 4294965248  ;;  %p21_p1 = scmp.ge.s32.totalorder %s5734_s15, 4   ;;  %s7964_s30 = smov %s5634_s10 }
 0x50c   : > { %s7965_s10 = smov %s5638_s11  ;;  %s7966_s11 = smov %s5745_s18 }
 0x50d   : > { %s7967_s12 = smov %s5734_s15  ;;  %23 = sbr.rel (!%p21_p1) target bundleno = 5 (0x5), region = 100 }
 0x512   :  { %4730 = vsyncpa [#allocation3], 1 }
 0x513   :  { %4732 = vsyncpa [#allocation3 + $0x1], 1 }
 0x514   :  { %4733 = vsyncpa [#allocation6], 1 }
 0x515   :  { %4734 = vsyncpa [#allocation4], 1 }
 0x516   :  { %4736 = vsyncpa [#allocation4 + $0x1], 1 }

</bundles_post_ra>
